<compile_context>
chip_gen: v7x
topology: tpu7x:2x2x1
jax: 0.10.0
libtpu: 0.0.40
codegen_flags: <defaults>
</compile_context>

<pallas_src>
import functools

import jax
import jax.numpy as jnp
from jax.experimental import pallas as pl
from jax.experimental.pallas import tpu as pltpu

EMBED_DIM = 1792
HIDDEN = 512
LEAKY_SLOPE = 0.01
BN_EPS = 1e-5
OUT_PAD = 128          # lane-dense padded logits width per head
N_HEADS = 2


# ----------------------------------------------------------------------------
# Fused kernel: single invocation, both heads at once.
#   xs_ref : (B, 1792)        bf16  pooled features
#   w1_ref : (1792, 1024)     bf16  [head1 W1*bn_scale | head2 W1*bn_scale]
#   b1_ref : (1, 1024)        f32   b1*bn_scale + bn_shift, both heads
#   w2_ref : (1024, 256)      bf16  block-diagonal, zero-padded to 128 lanes/head
#   b2_ref : (1, 256)         f32
#   o_ref  : (B, 256)         f32   lane-dense slab; wrapper slices per task
# ----------------------------------------------------------------------------
def fused_heads_kernel(xs_ref, w1_ref, b1_ref, w2_ref, b2_ref, o_ref):
    h = jnp.dot(xs_ref[...], w1_ref[...], preferred_element_type=jnp.float32)
    h = h + b1_ref[...]                                  # Linear bias + folded BN
    h = jnp.where(h >= 0, h, LEAKY_SLOPE * h)            # LeakyReLU(0.01)
    o = jnp.dot(h.astype(jnp.bfloat16), w2_ref[...],
                preferred_element_type=jnp.float32)
    o_ref[...] = o + b2_ref[...]


def fused_heads(xs_bf16, fp):
    """xs_bf16: (B, 1792) bf16 pooled features; fp: packed head params.

    Returns a lane-dense (B, N_HEADS * OUT_PAD) f32 logits slab."""
    B, C = xs_bf16.shape
    n_hidden = N_HEADS * HIDDEN
    n_out = N_HEADS * OUT_PAD

    cost = pl.CostEstimate(
        flops=2 * B * C * n_hidden + 2 * B * n_hidden * n_out,
        transcendentals=0,
        bytes_accessed=int(fp["w1"].size * 2 + fp["w2"].size * 2
                           + fp["b1"].size * 4 + fp["b2"].size * 4
                           + xs_bf16.size * 2 + B * n_out * 4),
    )

    return pl.pallas_call(
        fused_heads_kernel,
        out_shape=jax.ShapeDtypeStruct((B, n_out), jnp.float32),
        grid=(1,),
        in_specs=[
            pl.BlockSpec((B, C), lambda i: (0, 0)),
            pl.BlockSpec((C, n_hidden), lambda i: (0, 0)),
            pl.BlockSpec((1, n_hidden), lambda i: (0, 0)),
            pl.BlockSpec((n_hidden, n_out), lambda i: (0, 0)),
            pl.BlockSpec((1, n_out), lambda i: (0, 0)),
        ],
        out_specs=pl.BlockSpec((B, n_out), lambda i: (0, 0)),
        compiler_params=pltpu.CompilerParams(
            dimension_semantics=("arbitrary",)),
        cost_estimate=cost,
    )(xs_bf16, fp["w1"], fp["b1"], fp["w2"], fp["b2"])


# ----------------------------------------------------------------------------
# Parameter construction (deterministic, synthetic, PyTorch-layout-equivalent)
# and one-time folding/packing (done outside jit, like weight preprocessing).
# ----------------------------------------------------------------------------
def make_expert_params(key, out_dim):
    k = jax.random.split(key, 8)
    return dict(
        w1=jax.random.normal(k[0], (EMBED_DIM, HIDDEN), jnp.float32) * 0.02,
        b1=jax.random.normal(k[1], (HIDDEN,), jnp.float32) * 0.01,
        gamma=1.0 + 0.1 * jax.random.normal(k[2], (HIDDEN,), jnp.float32),
        beta=0.1 * jax.random.normal(k[3], (HIDDEN,), jnp.float32),
        running_mean=0.1 * jax.random.normal(k[4], (HIDDEN,), jnp.float32),
        running_var=jnp.abs(
            1.0 + 0.1 * jax.random.normal(k[5], (HIDDEN,), jnp.float32)),
        w2=jax.random.normal(k[6], (HIDDEN, out_dim), jnp.float32) * 0.05,
        b2=jax.random.normal(k[7], (out_dim,), jnp.float32) * 0.01,
    )


def fuse_head_params(p_list):
    """Fold eval BatchNorm into W1/bias, concatenate both heads' first-layer
    weights on lanes, pack the second layer block-diagonally with 128-lane
    zero padding per head, and cast the big weights to bf16."""
    n = len(p_list)
    w1_cols, b1_cols, out_dims = [], [], []
    w2 = jnp.zeros((n * HIDDEN, n * OUT_PAD), jnp.float32)
    b2 = jnp.zeros((1, n * OUT_PAD), jnp.float32)
    for i, p in enumerate(p_list):
        scale = p["gamma"] / jnp.sqrt(p["running_var"] + BN_EPS)
        shift = p["beta"] - p["running_mean"] * scale
        # x @ W1 + b1 -> BN  ==  x @ (W1*scale) + (b1*scale + shift)
        w1_cols.append(p["w1"] * scale[None, :])
        b1_cols.append(p["b1"] * scale + shift)
        d = p["w2"].shape[1]
        out_dims.append(d)
        w2 = w2.at[i * HIDDEN:(i + 1) * HIDDEN,
                   i * OUT_PAD:i * OUT_PAD + d].set(p["w2"])
        b2 = b2.at[0, i * OUT_PAD:i * OUT_PAD + d].set(p["b2"])
    fused = dict(
        w1=jnp.concatenate(w1_cols, axis=1).astype(jnp.bfloat16),   # (1792,1024)
        b1=jnp.concatenate(b1_cols)[None, :],                       # (1,1024) f32
        w2=w2.astype(jnp.bfloat16),                                 # (1024,256)
        b2=b2,                                                      # (1,256) f32
    )
    return fused, tuple(out_dims)


@functools.partial(jax.jit, static_argnames=("out_dims",))
def multitask_forward(x_nchw, fused, out_dims):
    """x_nchw: pre-pool feature map (B, 1792, H, W) -> (out1, out2)."""
    # AdaptiveAvgPool2d(1) + flatten; Dropout is eval-mode identity.
    xs = jnp.mean(x_nchw, axis=(2, 3)).astype(jnp.bfloat16)   # (B, 1792) bf16
    out = fused_heads(xs, fused)                              # (B, 256) f32
    return (out[:, :out_dims[0]],
            out[:, OUT_PAD:OUT_PAD + out_dims[1]])


if __name__ == "__main__":
    num_classes = {"task1": 7, "task2": 2}
    out_dims_list = list(num_classes.values())

    key = jax.random.PRNGKey(0)
    kx, k1, k2 = jax.random.split(key, 3)

    # Small, module-consistent shapes: B=2 pre-pool feature maps (B, 1792, 3, 3).
    B, H, W = 2, 3, 3
    x = jax.random.normal(kx, (B, EMBED_DIM, H, W), jnp.float32)

    params1 = make_expert_params(k1, out_dims_list[0])
    params2 = make_expert_params(k2, out_dims_list[1])

    fused, out_dims = fuse_head_params([params1, params2])

    out1, out2 = multitask_forward(x, fused, out_dims)
    jax.block_until_ready((out1, out2))

    # Plain-JAX f32 reference (unquantized weights); kernel path uses bf16
    # weights/activations, so tolerance is loosened accordingly.
    xf = jnp.mean(x, axis=(2, 3))

    def ref_head(xf, p):
        h = xf @ p["w1"] + p["b1"]
        scale = p["gamma"] / jnp.sqrt(p["running_var"] + BN_EPS)
        h = h * scale + (p["beta"] - p["running_mean"] * scale)
        h = jnp.where(h >= 0, h, LEAKY_SLOPE * h)
        return h @ p["w2"] + p["b2"]

    r1, r2 = ref_head(xf, params1), ref_head(xf, params2)
    assert out1.shape == (B, out_dims[0]) and out2.shape == (B, out_dims[1])
    assert jnp.allclose(out1, r1, atol=3e-2, rtol=3e-2), float(
        jnp.max(jnp.abs(out1 - r1)))
    assert jnp.allclose(out2, r2, atol=3e-2, rtol=3e-2), float(
        jnp.max(jnp.abs(out2 - r2)))

    print("KERNEL_OK")
</pallas_src>

<mosaic_0001>
module attributes {stable_mosaic.version = 11 : i64} {
  func.func @fused_heads_kernel(%arg0: i32, %arg1: memref<2x1792xbf16, #tpu.memory_space<vmem>>, %arg2: memref<1792x1024xbf16, #tpu.memory_space<vmem>>, %arg3: memref<1x1024xf32, #tpu.memory_space<vmem>>, %arg4: memref<1024x256xbf16, #tpu.memory_space<vmem>>, %arg5: memref<1x256xf32, #tpu.memory_space<vmem>>, %arg6: memref<2x256xf32, #tpu.memory_space<vmem>>) attributes {dimension_semantics = [#tpu.dimension_semantics<arbitrary>], iteration_bounds = array<i64: 1>, scalar_prefetch = 0 : i64, scratch_operands = 0 : i64, tpu.core_type = #tpu.core_type<tc>, window_params = [{pipeline_mode = #tpu.pipeline_mode<synchronous>, transform_indices = @transform_0, window_bounds = array<i64: 2, 1792>}, {pipeline_mode = #tpu.pipeline_mode<synchronous>, transform_indices = @transform_1, window_bounds = array<i64: 1792, 1024>}, {pipeline_mode = #tpu.pipeline_mode<synchronous>, transform_indices = @transform_2, window_bounds = array<i64: 1, 1024>}, {pipeline_mode = #tpu.pipeline_mode<synchronous>, transform_indices = @transform_3, window_bounds = array<i64: 1024, 256>}, {pipeline_mode = #tpu.pipeline_mode<synchronous>, transform_indices = @transform_4, window_bounds = array<i64: 1, 256>}, {pipeline_mode = #tpu.pipeline_mode<synchronous>, transform_indices = @transform_5, window_bounds = array<i64: 2, 256>}]} {
    %c0 = arith.constant 0 : index
    %c0_0 = arith.constant 0 : index
    %0 = vector.load %arg1[%c0, %c0_0] : memref<2x1792xbf16, #tpu.memory_space<vmem>>, vector<2x1792xbf16>
    %c0_1 = arith.constant 0 : index
    %c0_2 = arith.constant 0 : index
    %1 = vector.load %arg2[%c0_1, %c0_2] : memref<1792x1024xbf16, #tpu.memory_space<vmem>>, vector<1792x1024xbf16>
    %cst = arith.constant dense<0.000000e+00> : vector<2x1024xf32>
    %2 = tpu.matmul %0, %1, %cst {dimension_numbers = #tpu.dot_dimension_numbers<[1], [0], [0], [1], [0, 0, 1, 1], [], []>} : vector<2x1792xbf16>, vector<1792x1024xbf16>, vector<2x1024xf32> -> vector<2x1024xf32>
    %c0_3 = arith.constant 0 : index
    %c0_4 = arith.constant 0 : index
    %3 = vector.load %arg3[%c0_3, %c0_4] : memref<1x1024xf32, #tpu.memory_space<vmem>>, vector<1x1024xf32>
    %4 = vector.broadcast %3 : vector<1x1024xf32> to vector<2x1024xf32>
    %5 = arith.addf %2, %4 : vector<2x1024xf32>
    %cst_5 = arith.constant 0.000000e+00 : f32
    %6 = vector.broadcast %cst_5 : f32 to vector<2x1024xf32>
    %7 = arith.cmpf oge, %5, %6 : vector<2x1024xf32>
    %cst_6 = arith.constant 0.00999999977 : f32
    %8 = vector.broadcast %cst_6 : f32 to vector<2x1024xf32>
    %9 = arith.mulf %8, %5 : vector<2x1024xf32>
    %10 = arith.select %7, %5, %9 : vector<2x1024xi1>, vector<2x1024xf32>
    %11 = arith.truncf %10 : vector<2x1024xf32> to vector<2x1024xbf16>
    %c0_7 = arith.constant 0 : index
    %c0_8 = arith.constant 0 : index
    %12 = vector.load %arg4[%c0_7, %c0_8] : memref<1024x256xbf16, #tpu.memory_space<vmem>>, vector<1024x256xbf16>
    %cst_9 = arith.constant dense<0.000000e+00> : vector<2x256xf32>
    %13 = tpu.matmul %11, %12, %cst_9 {dimension_numbers = #tpu.dot_dimension_numbers<[1], [0], [0], [1], [0, 0, 1, 1], [], []>} : vector<2x1024xbf16>, vector<1024x256xbf16>, vector<2x256xf32> -> vector<2x256xf32>
    %c0_10 = arith.constant 0 : index
    %c0_11 = arith.constant 0 : index
    %14 = vector.load %arg5[%c0_10, %c0_11] : memref<1x256xf32, #tpu.memory_space<vmem>>, vector<1x256xf32>
    %15 = vector.broadcast %14 : vector<1x256xf32> to vector<2x256xf32>
    %16 = arith.addf %13, %15 : vector<2x256xf32>
    %c0_12 = arith.constant 0 : index
    %c0_13 = arith.constant 0 : index
    %17 = vector.load %arg6[%c0_12, %c0_13] : memref<2x256xf32, #tpu.memory_space<vmem>>, vector<2x256xf32>
    tpu.vector_store %arg6[%c0_12, %c0_13], %16 {strides = array<i32>} : memref<2x256xf32, #tpu.memory_space<vmem>>, vector<2x256xf32>,
    return
  }
  func.func @transform_0(%arg0: i32) -> (i32, i32) {
    %c0_i32 = arith.constant 0 : i32
    %c0_i32_0 = arith.constant 0 : i32
    %c0_i32_1 = arith.constant 0 : i32
    return %c0_i32, %c0_i32_0 : i32, i32
  }
  func.func @transform_1(%arg0: i32) -> (i32, i32) {
    %c0_i32 = arith.constant 0 : i32
    %c0_i32_0 = arith.constant 0 : i32
    %c0_i32_1 = arith.constant 0 : i32
    return %c0_i32, %c0_i32_0 : i32, i32
  }
  func.func @transform_2(%arg0: i32) -> (i32, i32) {
    %c0_i32 = arith.constant 0 : i32
    %c0_i32_0 = arith.constant 0 : i32
    %c0_i32_1 = arith.constant 0 : i32
    return %c0_i32, %c0_i32_0 : i32, i32
  }
  func.func @transform_3(%arg0: i32) -> (i32, i32) {
    %c0_i32 = arith.constant 0 : i32
    %c0_i32_0 = arith.constant 0 : i32
    %c0_i32_1 = arith.constant 0 : i32
    return %c0_i32, %c0_i32_0 : i32, i32
  }
  func.func @transform_4(%arg0: i32) -> (i32, i32) {
    %c0_i32 = arith.constant 0 : i32
    %c0_i32_0 = arith.constant 0 : i32
    %c0_i32_1 = arith.constant 0 : i32
    return %c0_i32, %c0_i32_0 : i32, i32
  }
  func.func @transform_5(%arg0: i32) -> (i32, i32) {
    %c0_i32 = arith.constant 0 : i32
    %c0_i32_0 = arith.constant 0 : i32
    %c0_i32_1 = arith.constant 0 : i32
    return %c0_i32, %c0_i32_0 : i32, i32
  }
}

</mosaic_0001>

<bundles_post_ra>
// kernel: multitask_forward.1
= control target key start
LH: loop header
LB: loop body
LE: loop exit
PB: predicated region body
PF: predicated region fallthrough
CT: control target
= control target key end

     0   :  { %10 = vsyncpa [#allocation3], 0  ;;  %s9471_s0 = inlined_call_operand.vmem [shape: bf16[2,1792], index: 0, kind: input, shape index: {}]   ;;  %s9472_s1 = inlined_call_operand.hbm [shape: bf16[1792,1024], index: 1, kind: input, shape index: {}]   ;;  %s9473_s2 = inlined_call_operand.hbm [shape: f32[1,1024], index: 2, kind: input, shape index: {}]   ;;  %s9474_s3 = inlined_call_operand.hbm [shape: bf16[1024,256], index: 3, kind: input, shape index: {}]   ;;  %s9475_s4 = inlined_call_operand.hbm [shape: f32[1,256], index: 4, kind: input, shape index: {}]   ;;  %s9476_s5 = inlined_call_operand.vmem [shape: f32[2,256], index: 5, kind: output, shape index: {}]  }
   0x1   :  { %11 = vsyncpa [#allocation5], 0 }
   0x2   :  { %12 = vsyncpa [#allocation8], 0  ;;  %s9186_s18 = smov [#allocation4]   ;;  %s9187_s20 = smov [#allocation2]  }
   0x3   :  { %s33_s19 = sshll.u32 %s9186_s18, 4  ;;  %s20_s21 = sshll.u32 %s9187_s20, 4  ;;  %s34_s19 = int_to_ptr.vmem [resolvable:$true] %s33_s19  ;;  %s9225_s21 = int_to_ptr.vmem [resolvable:$true] %s20_s21 }
   0x4   :  { %s9092_s24 = scalar_lea.hbm %s9473_s2, 128 }
   0x5   :  { %p9093_p0 = scmp.ne.s32.totalorder %s9473_s2, %s9092_s24  ;;  %p9096_p1 = scmp.lt.u32.totalorder %s9092_s24, %s9473_s2 }
   0x7   :  { %p9098_p2 = pnand %p9096_p1, %p9093_p0 }
   0x9   :  { %9101 = shalt.err (!%p9098_p2)
}
   0xa   :  { %s9102_s29 = scalar_lea.vmem %s34_s19, 128  ;;  %p9107_p4 = scmp.lt.s32.totalorder %s34_s19, %s34_s19 }
   0xb   :  { %p9103_p3 = scmp.ne.s32.totalorder %s34_s19, %s9102_s29  ;;  %p9108_p5 = scmp.lt.s32.totalorder %s9102_s29, %s9102_s29 }
   0xd   :  { %p9109_p6 = por %p9108_p5, %p9107_p4 }
   0xf   :  { %p9110_p7 = pnand %p9109_p6, %p9103_p3 }
  0x11   :  { %9113 = shalt.err (!%p9110_p7)
}
  0x12   :  { %36 = dma.hbm_to_vmem [thread:$0]  %s9473_s2, 128, %s34_s19, [#allocation5]  }
  0x13   :  { %s9114_s9 = scalar_lea.hbm %s9472_s1, 114688 }
  0x14   :  { %p9115_p8 = scmp.ne.s32.totalorder %s9472_s1, %s9114_s9  ;;  %p9118_p9 = scmp.lt.u32.totalorder %s9114_s9, %s9472_s1 }
  0x16   :  { %p9120_p10 = pnand %p9118_p9, %p9115_p8 }
  0x18   :  { %9123 = shalt.err (!%p9120_p10)
}
  0x19   :  { %s9124_s14 = scalar_lea.vmem %s9225_s21, 114688  ;;  %p9129_p12 = scmp.lt.s32.totalorder %s9225_s21, %s9225_s21 }
  0x1a   :  { %p9125_p11 = scmp.ne.s32.totalorder %s9225_s21, %s9124_s14  ;;  %p9130_p13 = scmp.lt.s32.totalorder %s9124_s14, %s9124_s14 }
  0x1c   :  { %p9131_p0 = por %p9130_p13, %p9129_p12 }
  0x1e   :  { %p9132_p1 = pnand %p9131_p0, %p9125_p11 }
  0x20   :  { %9135 = shalt.err (!%p9132_p1)
}
  0x21   :  { %s9188_s2 = smov 512   ;;  %s9189_s15 = smov 32  }
  0x22   :  { %26 = dma.hbm_to_vmem [thread:$0]  %s9472_s1, 114688, %s9225_s21, [#allocation3], %s9188_s2, %s9188_s2, %s9189_s15  }
  0x23   :  { %s9190_s18 = smov [#allocation6]   ;;  %s9136_s23 = scalar_lea.hbm %s9474_s3, 16384 }
  0x24   :  { %s42_s19 = sshll.u32 %s9190_s18, 4  ;;  %p9137_p2 = scmp.ne.s32.totalorder %s9474_s3, %s9136_s23  ;;  %s43_s19 = int_to_ptr.vmem [resolvable:$true] %s42_s19 }
  0x25   :  { %p9140_p3 = scmp.lt.u32.totalorder %s9136_s23, %s9474_s3 }
  0x27   :  { %p9142_p4 = pnand %p9140_p3, %p9137_p2 }
  0x29   :  { %9145 = shalt.err (!%p9142_p4)
}
  0x2a   :  { %s9146_s28 = scalar_lea.vmem %s43_s19, 16384  ;;  %p9151_p6 = scmp.lt.s32.totalorder %s43_s19, %s43_s19 }
  0x2b   :  { %p9147_p5 = scmp.ne.s32.totalorder %s43_s19, %s9146_s28  ;;  %p9152_p7 = scmp.lt.s32.totalorder %s9146_s28, %s9146_s28 }
  0x2d   :  { %p9153_p8 = por %p9152_p7, %p9151_p6 }
  0x2f   :  { %p9154_p9 = pnand %p9153_p8, %p9147_p5 }
  0x31   :  { %9157 = shalt.err (!%p9154_p9)
}
  0x32   :  { %s9191_s1 = smov 128   ;;  %s9192_s21 = smov 8  }
  0x33   :  { %48 = dma.hbm_to_vmem [thread:$0]  %s9474_s3, 16384, %s43_s19, [#allocation5], %s9191_s1, %s9191_s1, %s9192_s21  }
  0x34   :  { %s9193_s6 = smov [#allocation7]   ;;  %s9158_s10 = scalar_lea.hbm %s9475_s4, 32 }
  0x35   :  { %s55_s7 = sshll.u32 %s9193_s6, 4  ;;  %p9159_p10 = scmp.ne.s32.totalorder %s9475_s4, %s9158_s10  ;;  %s56_s7 = int_to_ptr.vmem [resolvable:$true] %s55_s7 }
  0x36   :  { %p9162_p11 = scmp.lt.u32.totalorder %s9158_s10, %s9475_s4 }
  0x38   :  { %p9164_p12 = pnand %p9162_p11, %p9159_p10 }
  0x3a   :  { %9167 = shalt.err (!%p9164_p12)
}
  0x3b   :  { %s9168_s2 = scalar_lea.vmem %s56_s7, 32  ;;  %p9173_p0 = scmp.lt.s32.totalorder %s56_s7, %s56_s7 }
  0x3c   :  { %p9169_p13 = scmp.ne.s32.totalorder %s56_s7, %s9168_s2  ;;  %p9174_p1 = scmp.lt.s32.totalorder %s9168_s2, %s9168_s2 }
  0x3e   :  { %p9175_p2 = por %p9174_p1, %p9173_p0 }
  0x40   :  { %p9176_p3 = pnand %p9175_p2, %p9169_p13 }
  0x42   :  { %9179 = shalt.err (!%p9176_p3)
}
  0x43   :  { %58 = dma.hbm_to_vmem [thread:$0]  %s9475_s4, 32, %s56_s7, [#allocation8]  }
  0x44   :  { %9180 = dma.done.wait [#allocation3], 114688  }
  0x45   :  { %9181 = vsyncadd [#allocation3], 4294852608 }
  0x46   :  { %9182 = dma.done.wait [#allocation5], 16512  }
  0x47   :  { %9183 = vsyncadd [#allocation5], 4294950784 }
  0x48   :  { %9184 = dma.done.wait [#allocation8], 32  }
  0x49   :  { %9185 = vsyncadd [#allocation8], 4294967264  ;;  %v73_v0 = vld [vmem:[#allocation2] sm:$0xff]  ;;  %v971_v32 = vlaneseq  ;;  %v9194_v33 = vmov 1966171168  }
  0x4a   :  { %v77_v1 = vld [vmem:[#allocation2 + $0x20] sm:$0xff]  ;;  %v1015_v34 = vunpack.c.l.s4 %v9194_v33 }
  0x4b   :  { %v329_v2 = vld [vmem:[#allocation2 + $0x800] sm:$0xff]  ;;  %v7747_v3 = vcombine.high %v73_v0, %v77_v1  ;;  %v7746_v5 = vcombine.low %v73_v0, %v77_v1  ;;  %v9280_v43 = vshrl.u32 %v971_v32, 7 }
  0x4c   :  { %v333_v4 = vld [vmem:[#allocation2 + $0x820] sm:$0xff]  ;;  %v1016_v44 = vunpack.c.0.s8 %v1015_v34 }
  0x4d   :  { %v81_v6 = vld [vmem:[#allocation2 + $0x40] sm:$0xff]  ;;  %v8003_v8 = vcombine.high %v329_v2, %v333_v4  ;;  %v8002_v9 = vcombine.low %v329_v2, %v333_v4  ;;  %5603 = vmatprep.subr.bf16.mxu1 %v7747_v3 }
  0x4e   :  { %v85_v7 = vld [vmem:[#allocation2 + $0x60] sm:$0xff]  ;;  %5604 = vmatpush1.bf16.msra.mxu1 %v7746_v5  ;;  %v9283_v53 = vsub.s32 %v1016_v44, %v9280_v43 }
  0x4f   :  { %v7755_v10 = vcombine.high %v81_v6, %v85_v7  ;;  %v337_v11 = vld [vmem:[#allocation2 + $0x840] sm:$0xff]  ;;  %5685 = vmatprep.subr.bf16.mxu0 %v8003_v8  ;;  %v7754_v18 = vcombine.low %v81_v6, %v85_v7 }
  0x50   :  { %v341_v12 = vld [vmem:[#allocation2 + $0x860] sm:$0xff]  ;;  %5686 = vmatpush1.bf16.msra.mxu0 %v8002_v9 }
  0x51   :  { %v89_v13 = vld [vmem:[#allocation2 + $0x80] sm:$0xff]  ;;  %v8011_v14 = vcombine.high %v337_v11, %v341_v12  ;;  %5605 = vmatprep.subr.bf16.mxu1 %v7755_v10  ;;  %v8010_v19 = vcombine.low %v337_v11, %v341_v12 }
  0x52   :  { %v93_v15 = vld [vmem:[#allocation2 + $0xa0] sm:$0xff]  ;;  %5606 = vmatpush1.bf16.msra.mxu1 %v7754_v18 }
  0x53   :  { %v345_v16 = vld [vmem:[#allocation2 + $0x880] sm:$0xff]  ;;  %v7763_v20 = vcombine.high %v89_v13, %v93_v15  ;;  %5687 = vmatprep.subr.bf16.mxu0 %v8011_v14  ;;  %v7762_v26 = vcombine.low %v89_v13, %v93_v15 }
  0x54   :  { %v349_v17 = vld [vmem:[#allocation2 + $0x8a0] sm:$0xff]  ;;  %5688 = vmatpush1.bf16.msra.mxu0 %v8010_v19 }
  0x55   :  { %v8019_v21 = vcombine.high %v345_v16, %v349_v17  ;;  %v97_v22 = vld [vmem:[#allocation2 + $0xc0] sm:$0xff]  ;;  %5607 = vmatprep.subr.bf16.mxu1 %v7763_v20  ;;  %v8018_v27 = vcombine.low %v345_v16, %v349_v17 }
  0x56   :  { %v101_v23 = vld [vmem:[#allocation2 + $0xe0] sm:$0xff]  ;;  %5608 = vmatpush1.bf16.msra.mxu1 %v7762_v26 }
  0x57   :  { %v353_v24 = vld [vmem:[#allocation2 + $0x8c0] sm:$0xff]  ;;  %v7771_v28 = vcombine.high %v97_v22, %v101_v23  ;;  %5689 = vmatprep.subr.bf16.mxu0 %v8019_v21  ;;  %v7770_v37 = vcombine.low %v97_v22, %v101_v23 }
  0x58   :  { %v357_v25 = vld [vmem:[#allocation2 + $0x8e0] sm:$0xff]  ;;  %5690 = vmatpush1.bf16.msra.mxu0 %v8018_v27 }
  0x59   :  { %v8027_v29 = vcombine.high %v353_v24, %v357_v25  ;;  %v105_v30 = vld [vmem:[#allocation2 + $0x100] sm:$0xff]  ;;  %5609 = vmatprep.subr.bf16.mxu1 %v7771_v28  ;;  %v8026_v38 = vcombine.low %v353_v24, %v357_v25 }
  0x5a   :  { %v109_v31 = vld [vmem:[#allocation2 + $0x120] sm:$0xff]  ;;  %5610 = vmatpush1.bf16.msra.mxu1 %v7770_v37 }
  0x5b   :  { %v361_v35 = vld [vmem:[#allocation2 + $0x900] sm:$0xff]  ;;  %v7779_v39 = vcombine.high %v105_v30, %v109_v31  ;;  %5691 = vmatprep.subr.bf16.mxu0 %v8027_v29  ;;  %v7778_v47 = vcombine.low %v105_v30, %v109_v31 }
  0x5c   :  { %v365_v36 = vld [vmem:[#allocation2 + $0x920] sm:$0xff]  ;;  %5692 = vmatpush1.bf16.msra.mxu0 %v8026_v38 }
  0x5d   :  { %v8035_v40 = vcombine.high %v361_v35, %v365_v36  ;;  %v113_v41 = vld [vmem:[#allocation2 + $0x140] sm:$0xff]  ;;  %5611 = vmatprep.subr.bf16.mxu1 %v7779_v39  ;;  %v8034_v48 = vcombine.low %v361_v35, %v365_v36 }
  0x5e   :  { %v117_v42 = vld [vmem:[#allocation2 + $0x160] sm:$0xff]  ;;  %5612 = vmatpush1.bf16.msra.mxu1 %v7778_v47 }
  0x5f   :  { %v369_v45 = vld [vmem:[#allocation2 + $0x940] sm:$0xff]  ;;  %v7787_v49 = vcombine.high %v113_v41, %v117_v42  ;;  %5693 = vmatprep.subr.bf16.mxu0 %v8035_v40  ;;  %v7786_v56 = vcombine.low %v113_v41, %v117_v42 }
  0x60   :  { %v373_v46 = vld [vmem:[#allocation2 + $0x960] sm:$0xff]  ;;  %5694 = vmatpush1.bf16.msra.mxu0 %v8034_v48 }
  0x61   :  { %v8043_v50 = vcombine.high %v369_v45, %v373_v46  ;;  %v121_v51 = vld [vmem:[#allocation2 + $0x180] sm:$0xff]  ;;  %5613 = vmatprep.subr.bf16.mxu1 %v7787_v49  ;;  %v8042_v57 = vcombine.low %v369_v45, %v373_v46 }
  0x62   :  { %v125_v52 = vld [vmem:[#allocation2 + $0x1a0] sm:$0xff]  ;;  %5614 = vmatpush1.bf16.msra.mxu1 %v7786_v56 }
  0x63   :  { %v377_v54 = vld [vmem:[#allocation2 + $0x980] sm:$0xff]  ;;  %v7795_v58 = vcombine.high %v121_v51, %v125_v52  ;;  %5695 = vmatprep.subr.bf16.mxu0 %v8043_v50  ;;  %v7794_v3 = vcombine.low %v121_v51, %v125_v52 }
  0x64   :  { %v381_v55 = vld [vmem:[#allocation2 + $0x9a0] sm:$0xff]  ;;  %5696 = vmatpush1.bf16.msra.mxu0 %v8042_v57 }
  0x65   :  { %v71_v59 = vld [vmem:[%s9471_s0] sm:$0xff]  ;;  %v8051_v60 = vcombine.high %v377_v54, %v381_v55  ;;  %5615 = vmatprep.subr.bf16.mxu1 %v7795_v58  ;;  %v8050_v6 = vcombine.low %v377_v54, %v381_v55 }
  0x66   :  { %v129_v61 = vld [vmem:[#allocation2 + $0x1c0] sm:$0xff]  ;;  %v9289_v63 = vrot.slane %v71_v59, %v9283_v53  ;;  %v1013_v0 = vcombine.high %v71_v59, %v71_v59  ;;  %5616 = vmatpush1.bf16.msra.mxu1 %v7794_v3 }
  0x67   :  { %v133_v62 = vld [vmem:[#allocation2 + $0x1e0] sm:$0xff]  ;;  %5697 = vmatprep.subr.bf16.mxu0 %v8051_v60 }
  0x68   :  { %v385_v1 = vld [vmem:[#allocation2 + $0x9c0] sm:$0xff]  ;;  %v1028_v4 = vcombine.high %v9289_v63, %v9289_v63  ;;  %v9294_v5 = vrot.slane %v1013_v0, %v9283_v53  ;;  %v7803_v7 = vcombine.high %v129_v61, %v133_v62  ;;  %v7802_v15 = vcombine.low %v129_v61, %v133_v62  ;;  %5698 = vmatpush1.bf16.msra.mxu0 %v8050_v6 }
  0x69   :  { %v389_v2 = vld [vmem:[#allocation2 + $0x9e0] sm:$0xff] }
  0x6a   :  { %v8059_v8 = vcombine.high %v385_v1, %v389_v2  ;;  %v137_v9 = vld [vmem:[#allocation2 + $0x200] sm:$0xff]  ;;  %v9297_v11 = vrot.slane %v1028_v4, %v9283_v53  ;;  %v1029_v12 = vcombine.high %v9294_v5, %v9294_v5  ;;  %5617 = vmatprep.subr.bf16.mxu1 %v7803_v7  ;;  %v8058_v17 = vcombine.low %v385_v1, %v389_v2 }
  0x6b   :  { %v141_v10 = vld [vmem:[#allocation2 + $0x220] sm:$0xff]  ;;  %5618 = vmatpush1.bf16.msra.mxu1 %v7802_v15 }
  0x6c   :  { %v393_v13 = vld [vmem:[#allocation2 + $0xa00] sm:$0xff]  ;;  %5635 = vmatprep.mubr.bf16.mxu1 %v9297_v11  ;;  %v9303_v16 = vrot.slane %v1029_v12, %v9283_v53  ;;  %v7811_v18 = vcombine.high %v137_v9, %v141_v10  ;;  %5699 = vmatprep.subr.bf16.mxu0 %v8059_v8  ;;  %v7810_v24 = vcombine.low %v137_v9, %v141_v10 }
  0x6d   :  { %v397_v14 = vld [vmem:[#allocation2 + $0xa20] sm:$0xff]  ;;  %5700 = vmatpush1.bf16.msra.mxu0 %v8058_v17 }
  0x6e   :  { %v8067_v19 = vcombine.high %v393_v13, %v397_v14  ;;  %v145_v20 = vld [vmem:[#allocation2 + $0x240] sm:$0xff]  ;;  %5717 = vmatprep.mubr.bf16.mxu0 %v9303_v16  ;;  %5619 = vmatprep.subr.bf16.mxu1 %v7811_v18  ;;  %v8066_v25 = vcombine.low %v393_v13, %v397_v14 }
  0x6f   :  { %v149_v21 = vld [vmem:[#allocation2 + $0x260] sm:$0xff]  ;;  %5620 = vmatpush1.bf16.msra.mxu1 %v7810_v24 }
  0x70   :  { %v401_v22 = vld [vmem:[#allocation2 + $0xa40] sm:$0xff]  ;;  %v7819_v26 = vcombine.high %v145_v20, %v149_v21  ;;  %5701 = vmatprep.subr.bf16.mxu0 %v8067_v19  ;;  %v7818_v32 = vcombine.low %v145_v20, %v149_v21 }
  0x71   :  { %v405_v23 = vld [vmem:[#allocation2 + $0xa60] sm:$0xff]  ;;  %5702 = vmatpush1.bf16.msra.mxu0 %v8066_v25 }
  0x72   :  { %v8075_v27 = vcombine.high %v401_v22, %v405_v23  ;;  %v153_v28 = vld [vmem:[#allocation2 + $0x280] sm:$0xff]  ;;  %5621 = vmatprep.subr.bf16.mxu1 %v7819_v26  ;;  %v8074_v33 = vcombine.low %v401_v22, %v405_v23 }
  0x73   :  { %v157_v29 = vld [vmem:[#allocation2 + $0x2a0] sm:$0xff]  ;;  %5622 = vmatpush1.bf16.msra.mxu1 %v7818_v32  ;;  %v9312_v32 = vrot.slane %v9294_v5, %v9283_v53  ;;  %v9321_v5 = vcombine.high %v9303_v16, %v9303_v16 }
  0x74   :  { %v409_v30 = vld [vmem:[#allocation2 + $0xa80] sm:$0xff]  ;;  %v7827_v34 = vcombine.high %v153_v28, %v157_v29  ;;  %5703 = vmatprep.subr.bf16.mxu0 %v8075_v27  ;;  %v7826_v40 = vcombine.low %v153_v28, %v157_v29  ;;  %v9308_v28 = vrot.slane %v9289_v63, %v9283_v53  ;;  %v9316_v63 = vcombine.high %v9297_v11, %v9297_v11 }
  0x75   :  { %v413_v31 = vld [vmem:[#allocation2 + $0xaa0] sm:$0xff]  ;;  %5704 = vmatpush1.bf16.msra.mxu0 %v8074_v33 }
  0x76   :  { %v8083_v35 = vcombine.high %v409_v30, %v413_v31  ;;  %v161_v36 = vld [vmem:[#allocation2 + $0x2c0] sm:$0xff]  ;;  %5623 = vmatprep.subr.bf16.mxu1 %v7827_v34  ;;  %v8082_v41 = vcombine.low %v409_v30, %v413_v31 }
  0x77   :  { %v165_v37 = vld [vmem:[#allocation2 + $0x2e0] sm:$0xff]  ;;  %5624 = vmatpush1.bf16.msra.mxu1 %v7826_v40 }
  0x78   :  { %v417_v38 = vld [vmem:[#allocation2 + $0xac0] sm:$0xff]  ;;  %v7835_v42 = vcombine.high %v161_v36, %v165_v37  ;;  %5705 = vmatprep.subr.bf16.mxu0 %v8083_v35  ;;  %v7834_v49 = vcombine.low %v161_v36, %v165_v37 }
  0x79   :  { %v421_v39 = vld [vmem:[#allocation2 + $0xae0] sm:$0xff]  ;;  %5706 = vmatpush1.bf16.msra.mxu0 %v8082_v41 }
  0x7a   :  { %v8091_v44 = vcombine.high %v417_v38, %v421_v39  ;;  %v169_v45 = vld [vmem:[#allocation2 + $0x300] sm:$0xff]  ;;  %5625 = vmatprep.subr.bf16.mxu1 %v7835_v42  ;;  %v8090_v50 = vcombine.low %v417_v38, %v421_v39 }
  0x7b   :  { %v173_v46 = vld [vmem:[#allocation2 + $0x320] sm:$0xff]  ;;  %5626 = vmatpush1.bf16.msra.mxu1 %v7834_v49 }
  0x7c   :  { %v425_v47 = vld [vmem:[#allocation2 + $0xb00] sm:$0xff]  ;;  %v7843_v51 = vcombine.high %v169_v45, %v173_v46  ;;  %5707 = vmatprep.subr.bf16.mxu0 %v8091_v44  ;;  %v7842_v58 = vcombine.low %v169_v45, %v173_v46 }
  0x7d   :  { %v429_v48 = vld [vmem:[#allocation2 + $0xb20] sm:$0xff]  ;;  %5708 = vmatpush1.bf16.msra.mxu0 %v8090_v50 }
  0x7e   :  { %v8099_v52 = vcombine.high %v425_v47, %v429_v48  ;;  %v177_v54 = vld [vmem:[#allocation2 + $0x340] sm:$0xff]  ;;  %5627 = vmatprep.subr.bf16.mxu1 %v7843_v51  ;;  %v8098_v59 = vcombine.low %v425_v47, %v429_v48 }
  0x7f   :  { %v181_v55 = vld [vmem:[#allocation2 + $0x360] sm:$0xff]  ;;  %5628 = vmatpush1.bf16.msra.mxu1 %v7842_v58 }
  0x80   :  { %v433_v56 = vld [vmem:[#allocation2 + $0xb40] sm:$0xff]  ;;  %v7851_v60 = vcombine.high %v177_v54, %v181_v55  ;;  %5709 = vmatprep.subr.bf16.mxu0 %v8099_v52  ;;  %v7850_v3 = vcombine.low %v177_v54, %v181_v55 }
  0x81   :  { %v437_v57 = vld [vmem:[#allocation2 + $0xb60] sm:$0xff]  ;;  %5710 = vmatpush1.bf16.msra.mxu0 %v8098_v59 }
  0x82   :  { %v8107_v61 = vcombine.high %v433_v56, %v437_v57  ;;  %v185_v62 = vld [vmem:[#allocation2 + $0x380] sm:$0xff]  ;;  %5629 = vmatprep.subr.bf16.mxu1 %v7851_v60  ;;  %v8106_v4 = vcombine.low %v433_v56, %v437_v57 }
  0x83   :  { %v189_v0 = vld [vmem:[#allocation2 + $0x3a0] sm:$0xff]  ;;  %5630 = vmatpush1.bf16.msra.mxu1 %v7850_v3 }
  0x84   :  { %v441_v1 = vld [vmem:[#allocation2 + $0xb80] sm:$0xff]  ;;  %v7859_v6 = vcombine.high %v185_v62, %v189_v0  ;;  %5711 = vmatprep.subr.bf16.mxu0 %v8107_v61  ;;  %v7858_v13 = vcombine.low %v185_v62, %v189_v0 }
  0x85   :  { %v445_v2 = vld [vmem:[#allocation2 + $0xba0] sm:$0xff]  ;;  %5712 = vmatpush1.bf16.msra.mxu0 %v8106_v4 }
  0x86   :  { %v8115_v7 = vcombine.high %v441_v1, %v445_v2  ;;  %v193_v8 = vld [vmem:[#allocation2 + $0x3c0] sm:$0xff]  ;;  %5631 = vmatprep.subr.bf16.mxu1 %v7859_v6  ;;  %v8114_v14 = vcombine.low %v441_v1, %v445_v2 }
  0x87   :  { %v197_v9 = vld [vmem:[#allocation2 + $0x3e0] sm:$0xff]  ;;  %5632 = vmatpush1.bf16.msra.mxu1 %v7858_v13 }
  0x88   :  { %v449_v10 = vld [vmem:[#allocation2 + $0xbc0] sm:$0xff]  ;;  %v7867_v15 = vcombine.high %v193_v8, %v197_v9  ;;  %5713 = vmatprep.subr.bf16.mxu0 %v8115_v7  ;;  %v7866_v22 = vcombine.low %v193_v8, %v197_v9 }
  0x89   :  { %v453_v12 = vld [vmem:[#allocation2 + $0xbe0] sm:$0xff]  ;;  %5714 = vmatpush1.bf16.msra.mxu0 %v8114_v14 }
  0x8a   :  { %v8123_v17 = vcombine.high %v449_v10, %v453_v12  ;;  %v201_v18 = vld [vmem:[#allocation2 + $0x400] sm:$0xff]  ;;  %5633 = vmatprep.subr.bf16.mxu1 %v7867_v15  ;;  %v8122_v23 = vcombine.low %v449_v10, %v453_v12 }
  0x8b   :  { %v205_v19 = vld [vmem:[#allocation2 + $0x420] sm:$0xff]  ;;  %5634 = vmatpush1.bf16.msra.mxu1 %v7866_v22 }
  0x8c   :  { %v457_v20 = vld [vmem:[#allocation2 + $0xc00] sm:$0xff]  ;;  %v7875_v24 = vcombine.high %v201_v18, %v205_v19  ;;  %5715 = vmatprep.subr.bf16.mxu0 %v8123_v17  ;;  %v7874_v31 = vcombine.low %v201_v18, %v205_v19 }
  0x8d   :  { %v461_v21 = vld [vmem:[#allocation2 + $0xc20] sm:$0xff]  ;;  %5716 = vmatpush1.bf16.msra.mxu0 %v8122_v23 }
  0x8e   :  { %v8131_v25 = vcombine.high %v457_v20, %v461_v21  ;;  %v209_v26 = vld [vmem:[#allocation2 + $0x440] sm:$0xff]  ;;  %5644 = vmatprep.subr.bf16.mxu1 %v7875_v24  ;;  %v8130_v33 = vcombine.low %v457_v20, %v461_v21  ;;  %5636 = vmatmul.mubr.bf16.vlgmr.msra.gmra.mrb[0].mxu1 %v9308_v28 }
  0x8f   :  { %v213_v27 = vld [vmem:[#allocation2 + $0x460] sm:$0xff]  ;;  %5645 = vmatpush1.bf16.msra.mxu1 %v7874_v31  ;;  %5676 = vmatprep.mubr.bf16.mxu1 %v9316_v63 }
  0x90   :  { %v465_v29 = vld [vmem:[#allocation2 + $0xc40] sm:$0xff]  ;;  %v7883_v34 = vcombine.high %v209_v26, %v213_v27  ;;  %5726 = vmatprep.subr.bf16.mxu0 %v8131_v25  ;;  %5718 = vmatmul.mubr.bf16.vlgmr.msra.gmra.mrb[0].mxu0 %v9312_v32  ;;  %v7882_v40 = vcombine.low %v209_v26, %v213_v27 }
  0x91   :  { %v469_v30 = vld [vmem:[#allocation2 + $0xc60] sm:$0xff]  ;;  %5727 = vmatpush1.bf16.msra.mxu0 %v8130_v33  ;;  %5758 = vmatprep.mubr.bf16.mxu0 %v9321_v5 }
  0x92   :  { %v217_v35 = vld [vmem:[#allocation2 + $0x480] sm:$0xff]  ;;  %v8139_v38 = vcombine.high %v465_v29, %v469_v30  ;;  %5646 = vmatprep.subr.bf16.mxu1 %v7883_v34  ;;  %v8138_v41 = vcombine.low %v465_v29, %v469_v30 }
  0x93   :  { %v221_v36 = vld [vmem:[#allocation2 + $0x4a0] sm:$0xff]  ;;  %5647 = vmatpush1.bf16.msra.mxu1 %v7882_v40 }
  0x94   :  { %v473_v37 = vld [vmem:[#allocation2 + $0xc80] sm:$0xff]  ;;  %v7891_v42 = vcombine.high %v217_v35, %v221_v36  ;;  %5728 = vmatprep.subr.bf16.mxu0 %v8139_v38  ;;  %v7890_v49 = vcombine.low %v217_v35, %v221_v36 }
  0x95   :  { %v477_v39 = vld [vmem:[#allocation2 + $0xca0] sm:$0xff]  ;;  %5729 = vmatpush1.bf16.msra.mxu0 %v8138_v41 }
  0x96   :  { %v225_v44 = vld [vmem:[#allocation2 + $0x4c0] sm:$0xff]  ;;  %v8147_v47 = vcombine.high %v473_v37, %v477_v39  ;;  %5648 = vmatprep.subr.bf16.mxu1 %v7891_v42  ;;  %v8146_v50 = vcombine.low %v473_v37, %v477_v39 }
  0x97   :  { %v229_v45 = vld [vmem:[#allocation2 + $0x4e0] sm:$0xff]  ;;  %5649 = vmatpush1.bf16.msra.mxu1 %v7890_v49 }
  0x98   :  { %v481_v46 = vld [vmem:[#allocation2 + $0xcc0] sm:$0xff]  ;;  %v7899_v51 = vcombine.high %v225_v44, %v229_v45  ;;  %5730 = vmatprep.subr.bf16.mxu0 %v8147_v47  ;;  %v7898_v58 = vcombine.low %v225_v44, %v229_v45 }
  0x99   :  { %v485_v48 = vld [vmem:[#allocation2 + $0xce0] sm:$0xff]  ;;  %5731 = vmatpush1.bf16.msra.mxu0 %v8146_v50 }
  0x9a   :  { %v233_v52 = vld [vmem:[#allocation2 + $0x500] sm:$0xff]  ;;  %v8155_v56 = vcombine.high %v481_v46, %v485_v48  ;;  %5650 = vmatprep.subr.bf16.mxu1 %v7899_v51  ;;  %v8154_v59 = vcombine.low %v481_v46, %v485_v48 }
  0x9b   :  { %v237_v54 = vld [vmem:[#allocation2 + $0x520] sm:$0xff]  ;;  %5651 = vmatpush1.bf16.msra.mxu1 %v7898_v58 }
  0x9c   :  { %v489_v55 = vld [vmem:[#allocation2 + $0xd00] sm:$0xff]  ;;  %v7907_v60 = vcombine.high %v233_v52, %v237_v54  ;;  %5732 = vmatprep.subr.bf16.mxu0 %v8155_v56  ;;  %v7906_v3 = vcombine.low %v233_v52, %v237_v54 }
  0x9d   :  { %v493_v57 = vld [vmem:[#allocation2 + $0xd20] sm:$0xff]  ;;  %5733 = vmatpush1.bf16.msra.mxu0 %v8154_v59 }
  0x9e   :  { %v241_v61 = vld [vmem:[#allocation2 + $0x540] sm:$0xff]  ;;  %v8163_v1 = vcombine.high %v489_v55, %v493_v57  ;;  %5652 = vmatprep.subr.bf16.mxu1 %v7907_v60  ;;  %v8162_v4 = vcombine.low %v489_v55, %v493_v57 }
  0x9f   :  { %v245_v62 = vld [vmem:[#allocation2 + $0x560] sm:$0xff]  ;;  %5653 = vmatpush1.bf16.msra.mxu1 %v7906_v3 }
  0xa0   :  { %v497_v0 = vld [vmem:[#allocation2 + $0xd40] sm:$0xff]  ;;  %v7915_v6 = vcombine.high %v241_v61, %v245_v62  ;;  %5734 = vmatprep.subr.bf16.mxu0 %v8163_v1  ;;  %v7914_v13 = vcombine.low %v241_v61, %v245_v62 }
  0xa1   :  { %v501_v2 = vld [vmem:[#allocation2 + $0xd60] sm:$0xff]  ;;  %5735 = vmatpush1.bf16.msra.mxu0 %v8162_v4 }
  0xa2   :  { %v249_v7 = vld [vmem:[#allocation2 + $0x580] sm:$0xff]  ;;  %v8171_v10 = vcombine.high %v497_v0, %v501_v2  ;;  %5654 = vmatprep.subr.bf16.mxu1 %v7915_v6  ;;  %v8170_v14 = vcombine.low %v497_v0, %v501_v2 }
  0xa3   :  { %v253_v8 = vld [vmem:[#allocation2 + $0x5a0] sm:$0xff]  ;;  %5655 = vmatpush1.bf16.msra.mxu1 %v7914_v13 }
  0xa4   :  { %v505_v9 = vld [vmem:[#allocation2 + $0xd80] sm:$0xff]  ;;  %v7923_v15 = vcombine.high %v249_v7, %v253_v8  ;;  %5736 = vmatprep.subr.bf16.mxu0 %v8171_v10  ;;  %v7922_v22 = vcombine.low %v249_v7, %v253_v8 }
  0xa5   :  { %v509_v12 = vld [vmem:[#allocation2 + $0xda0] sm:$0xff]  ;;  %5737 = vmatpush1.bf16.msra.mxu0 %v8170_v14 }
  0xa6   :  { %v257_v17 = vld [vmem:[#allocation2 + $0x5c0] sm:$0xff]  ;;  %v8179_v20 = vcombine.high %v505_v9, %v509_v12  ;;  %5656 = vmatprep.subr.bf16.mxu1 %v7923_v15  ;;  %v8178_v23 = vcombine.low %v505_v9, %v509_v12 }
  0xa7   :  { %v261_v18 = vld [vmem:[#allocation2 + $0x5e0] sm:$0xff]  ;;  %5657 = vmatpush1.bf16.msra.mxu1 %v7922_v22 }
  0xa8   :  { %v513_v19 = vld [vmem:[#allocation2 + $0xdc0] sm:$0xff]  ;;  %v7931_v24 = vcombine.high %v257_v17, %v261_v18  ;;  %5738 = vmatprep.subr.bf16.mxu0 %v8179_v20  ;;  %v7930_v31 = vcombine.low %v257_v17, %v261_v18 }
  0xa9   :  { %v517_v21 = vld [vmem:[#allocation2 + $0xde0] sm:$0xff]  ;;  %5739 = vmatpush1.bf16.msra.mxu0 %v8178_v23 }
  0xaa   :  { %v265_v25 = vld [vmem:[#allocation2 + $0x600] sm:$0xff]  ;;  %v8187_v29 = vcombine.high %v513_v19, %v517_v21  ;;  %5658 = vmatprep.subr.bf16.mxu1 %v7931_v24  ;;  %v8186_v33 = vcombine.low %v513_v19, %v517_v21 }
  0xab   :  { %v269_v26 = vld [vmem:[#allocation2 + $0x620] sm:$0xff]  ;;  %5659 = vmatpush1.bf16.msra.mxu1 %v7930_v31  ;;  %v9329_v31 = vld [vmem:[%s9471_s0 + $0x8] sm:$0x3f] }
  0xac   :  { %v521_v27 = vld [vmem:[#allocation2 + $0xe00] sm:$0xff]  ;;  %v7939_v34 = vcombine.high %v265_v25, %v269_v26  ;;  %5740 = vmatprep.subr.bf16.mxu0 %v8187_v29  ;;  %v7938_v40 = vcombine.low %v265_v25, %v269_v26 }
  0xad   :  { %v525_v30 = vld [vmem:[#allocation2 + $0xe20] sm:$0xff]  ;;  %5741 = vmatpush1.bf16.msra.mxu0 %v8186_v33 }
  0xae   :  { %v273_v35 = vld [vmem:[#allocation2 + $0x640] sm:$0xff]  ;;  %v8195_v38 = vcombine.high %v521_v27, %v525_v30  ;;  %5660 = vmatprep.subr.bf16.mxu1 %v7939_v34  ;;  %v8194_v41 = vcombine.low %v521_v27, %v525_v30 }
  0xaf   :  { %v277_v36 = vld [vmem:[#allocation2 + $0x660] sm:$0xff]  ;;  %5661 = vmatpush1.bf16.msra.mxu1 %v7938_v40  ;;  %v78_v40 = vld [vmem:[#allocation2 + $0x28] sm:$0xff] }
  0xb0   :  { %v529_v37 = vld [vmem:[#allocation2 + $0xe40] sm:$0xff]  ;;  %v7947_v42 = vcombine.high %v273_v35, %v277_v36  ;;  %5742 = vmatprep.subr.bf16.mxu0 %v8195_v38  ;;  %v7946_v49 = vcombine.low %v273_v35, %v277_v36  ;;  %v74_v38 = vld [vmem:[#allocation2 + $0x8] sm:$0xff] }
  0xb1   :  { %v533_v39 = vld [vmem:[#allocation2 + $0xe60] sm:$0xff]  ;;  %5743 = vmatpush1.bf16.msra.mxu0 %v8194_v41  ;;  %v9333_v41 = vrot.slane %v9329_v31, %v9283_v53 }
  0xb2   :  { %v281_v44 = vld [vmem:[#allocation2 + $0x680] sm:$0xff]  ;;  %v8203_v47 = vcombine.high %v529_v37, %v533_v39  ;;  %5662 = vmatprep.subr.bf16.mxu1 %v7947_v42  ;;  %v8202_v50 = vcombine.low %v529_v37, %v533_v39 }
  0xb3   :  { %v285_v45 = vld [vmem:[#allocation2 + $0x6a0] sm:$0xff]  ;;  %5663 = vmatpush1.bf16.msra.mxu1 %v7946_v49 }
  0xb4   :  { %v537_v46 = vld [vmem:[#allocation2 + $0xe80] sm:$0xff]  ;;  %v7955_v51 = vcombine.high %v281_v44, %v285_v45  ;;  %5744 = vmatprep.subr.bf16.mxu0 %v8203_v47  ;;  %v7954_v58 = vcombine.low %v281_v44, %v285_v45  ;;  %v7749_v45 = vcombine.high %v74_v38, %v78_v40 }
  0xb5   :  { %v541_v48 = vld [vmem:[#allocation2 + $0xea0] sm:$0xff]  ;;  %5745 = vmatpush1.bf16.msra.mxu0 %v8202_v50  ;;  %v86_v50 = vld [vmem:[#allocation2 + $0x68] sm:$0xff] }
  0xb6   :  { %v289_v52 = vld [vmem:[#allocation2 + $0x6c0] sm:$0xff]  ;;  %v8211_v56 = vcombine.high %v537_v46, %v541_v48  ;;  %5664 = vmatprep.subr.bf16.mxu1 %v7955_v51  ;;  %v8210_v59 = vcombine.low %v537_v46, %v541_v48  ;;  %v82_v48 = vld [vmem:[#allocation2 + $0x48] sm:$0xff]  ;;  %v1077_v51 = vcombine.high %v9333_v41, %v9333_v41 }
  0xb7   :  { %v293_v54 = vld [vmem:[#allocation2 + $0x6e0] sm:$0xff]  ;;  %5665 = vmatpush1.bf16.msra.mxu1 %v7954_v58 }
  0xb8   :  { %v545_v55 = vld [vmem:[#allocation2 + $0xec0] sm:$0xff]  ;;  %v7963_v60 = vcombine.high %v289_v52, %v293_v54  ;;  %5746 = vmatprep.subr.bf16.mxu0 %v8211_v56  ;;  %v7962_v3 = vcombine.low %v289_v52, %v293_v54  ;;  %v9339_v52 = vcombine.high %v9308_v28, %v9308_v28  ;;  %v7748_v54 = vcombine.low %v74_v38, %v78_v40 }
  0xb9   :  { %v549_v57 = vld [vmem:[#allocation2 + $0xee0] sm:$0xff]  ;;  %5747 = vmatpush1.bf16.msra.mxu0 %v8210_v59  ;;  %v90_v59 = vld [vmem:[#allocation2 + $0x88] sm:$0xff] }
  0xba   :  { %v297_v61 = vld [vmem:[#allocation2 + $0x700] sm:$0xff]  ;;  %v8219_v1 = vcombine.high %v545_v55, %v549_v57  ;;  %5666 = vmatprep.subr.bf16.mxu1 %v7963_v60  ;;  %v8218_v4 = vcombine.low %v545_v55, %v549_v57  ;;  %v9343_v55 = vcombine.high %v9312_v32, %v9312_v32  ;;  %v7757_v57 = vcombine.high %v82_v48, %v86_v50  ;;  %v94_v60 = vld [vmem:[#allocation2 + $0xa8] sm:$0xff] }
  0xbb   :  { %v301_v62 = vld [vmem:[#allocation2 + $0x720] sm:$0xff]  ;;  %5667 = vmatpush1.bf16.msra.mxu1 %v7962_v3  ;;  %v7765_v3 = vcombine.high %v90_v59, %v94_v60 }
  0xbc   :  { %v553_v0 = vld [vmem:[#allocation2 + $0xf00] sm:$0xff]  ;;  %v7971_v6 = vcombine.high %v297_v61, %v301_v62  ;;  %5748 = vmatprep.subr.bf16.mxu0 %v8219_v1  ;;  %v7970_v13 = vcombine.low %v297_v61, %v301_v62  ;;  %v9346_v61 = vrot.slane %v1077_v51, %v9283_v53  ;;  %v7756_v1 = vcombine.low %v82_v48, %v86_v50 }
  0xbd   :  { %v557_v2 = vld [vmem:[#allocation2 + $0xf20] sm:$0xff]  ;;  %5749 = vmatpush1.bf16.msra.mxu0 %v8218_v4 }
  0xbe   :  { %v305_v7 = vld [vmem:[#allocation2 + $0x740] sm:$0xff]  ;;  %v8227_v10 = vcombine.high %v553_v0, %v557_v2  ;;  %5668 = vmatprep.subr.bf16.mxu1 %v7971_v6  ;;  %v8226_v14 = vcombine.low %v553_v0, %v557_v2  ;;  %v98_v6 = vld [vmem:[#allocation2 + $0xc8] sm:$0xff] }
  0xbf   :  { %v309_v8 = vld [vmem:[#allocation2 + $0x760] sm:$0xff]  ;;  %5669 = vmatpush1.bf16.msra.mxu1 %v7970_v13 }
  0xc0   :  { %v561_v9 = vld [vmem:[#allocation2 + $0xf40] sm:$0xff]  ;;  %v7979_v15 = vcombine.high %v305_v7, %v309_v8  ;;  %5750 = vmatprep.subr.bf16.mxu0 %v8227_v10  ;;  %v7978_v22 = vcombine.low %v305_v7, %v309_v8  ;;  %v102_v7 = vld [vmem:[#allocation2 + $0xe8] sm:$0xff]  ;;  %v7764_v10 = vcombine.low %v90_v59, %v94_v60 }
  0xc1   :  { %v565_v12 = vld [vmem:[#allocation2 + $0xf60] sm:$0xff]  ;;  %5751 = vmatpush1.bf16.msra.mxu0 %v8226_v14  ;;  %v7773_v13 = vcombine.high %v98_v6, %v102_v7 }
  0xc2   :  { %v313_v17 = vld [vmem:[#allocation2 + $0x780] sm:$0xff]  ;;  %v8235_v20 = vcombine.high %v561_v9, %v565_v12  ;;  %5670 = vmatprep.subr.bf16.mxu1 %v7979_v15  ;;  %v8234_v24 = vcombine.low %v561_v9, %v565_v12  ;;  %v106_v15 = vld [vmem:[#allocation2 + $0x108] sm:$0xff] }
  0xc3   :  { %v317_v18 = vld [vmem:[#allocation2 + $0x7a0] sm:$0xff]  ;;  %5671 = vmatpush1.bf16.msra.mxu1 %v7978_v22 }
  0xc4   :  { %v569_v19 = vld [vmem:[#allocation2 + $0xf80] sm:$0xff]  ;;  %v7987_v25 = vcombine.high %v313_v17, %v317_v18  ;;  %5752 = vmatprep.subr.bf16.mxu0 %v8235_v20  ;;  %v7986_v33 = vcombine.low %v313_v17, %v317_v18  ;;  %v110_v17 = vld [vmem:[#allocation2 + $0x128] sm:$0xff]  ;;  %v7772_v20 = vcombine.low %v98_v6, %v102_v7 }
  0xc5   :  { %v573_v21 = vld [vmem:[#allocation2 + $0xfa0] sm:$0xff]  ;;  %5753 = vmatpush1.bf16.msra.mxu0 %v8234_v24  ;;  %v7781_v22 = vcombine.high %v106_v15, %v110_v17  ;;  %v114_v24 = vld [vmem:[#allocation2 + $0x148] sm:$0xff] }
  0xc6   :  { %v321_v23 = vld [vmem:[#allocation2 + $0x7c0] sm:$0xff]  ;;  %v8243_v30 = vcombine.high %v569_v19, %v573_v21  ;;  %5672 = vmatprep.subr.bf16.mxu1 %v7987_v25  ;;  %v8242_v34 = vcombine.low %v569_v19, %v573_v21  ;;  %v118_v25 = vld [vmem:[#allocation2 + $0x168] sm:$0xff] }
  0xc7   :  { %v325_v26 = vld [vmem:[#allocation2 + $0x7e0] sm:$0xff]  ;;  %5673 = vmatpush1.bf16.msra.mxu1 %v7986_v33  ;;  %v7789_v33 = vcombine.high %v114_v24, %v118_v25 }
  0xc8   :  { %v577_v27 = vld [vmem:[#allocation2 + $0xfc0] sm:$0xff]  ;;  %v7995_v35 = vcombine.high %v321_v23, %v325_v26  ;;  %5754 = vmatprep.subr.bf16.mxu0 %v8243_v30  ;;  %v7994_v42 = vcombine.low %v321_v23, %v325_v26 }
  0xc9   :  { %v581_v29 = vld [vmem:[#allocation2 + $0xfe0] sm:$0xff]  ;;  %5755 = vmatpush1.bf16.msra.mxu0 %v8242_v34 }
  0xca   :  { %v585_v36 = vld [vmem:[#allocation2 + $0x1000] sm:$0xff]  ;;  %v8251_v39 = vcombine.high %v577_v27, %v581_v29  ;;  %5674 = vmatprep.subr.bf16.mxu1 %v7995_v35  ;;  %v8250_v44 = vcombine.low %v577_v27, %v581_v29  ;;  %v7780_v29 = vcombine.low %v106_v15, %v110_v17  ;;  %v122_v35 = vld [vmem:[#allocation2 + $0x188] sm:$0xff] }
  0xcb   :  { %v589_v37 = vld [vmem:[#allocation2 + $0x1020] sm:$0xff]  ;;  %5675 = vmatpush1.bf16.msra.mxu1 %v7994_v42 }
  0xcc   :  { %v593_v46 = vld [vmem:[#allocation2 + $0x1040] sm:$0xff]  ;;  %5756 = vmatprep.subr.bf16.mxu0 %v8251_v39  ;;  %v8259_v49 = vcombine.high %v585_v36, %v589_v37  ;;  %v8258_v56 = vcombine.low %v585_v36, %v589_v37  ;;  %5890 = vmatprep.subr.bf16.mxu1 %v7749_v45  ;;  %v126_v36 = vld [vmem:[#allocation2 + $0x1a8] sm:$0xff]  ;;  %v7788_v39 = vcombine.low %v114_v24, %v118_v25 }
  0xcd   :  { %v597_v47 = vld [vmem:[#allocation2 + $0x1060] sm:$0xff]  ;;  %5757 = vmatpush1.bf16.msra.mxu0 %v8250_v44  ;;  %v7797_v42 = vcombine.high %v122_v35, %v126_v36  ;;  %v130_v45 = vld [vmem:[#allocation2 + $0x1c8] sm:$0xff] }
  0xce   :  { %5767 = vmatprep.subr.bf16.mxu0 %v8259_v49  ;;  %v8267_v58 = vcombine.high %v593_v46, %v597_v47  ;;  %5677 = vmatmul.mubr.bf16.vlgmr.msra.gmra.mrb[0].mxu1 %v9339_v52  ;;  %v601_v62 = vld [vmem:[#allocation2 + $0x1080] sm:$0xff]  ;;  %v8266_v2 = vcombine.low %v593_v46, %v597_v47  ;;  %v134_v46 = vld [vmem:[#allocation2 + $0x1e8] sm:$0xff]  ;;  %v7796_v49 = vcombine.low %v122_v35, %v126_v36 }
  0xcf   :  { %v605_v0 = vld [vmem:[#allocation2 + $0x10a0] sm:$0xff]  ;;  %5891 = vmatpush1.bf16.msra.mxu1 %v7748_v54  ;;  %5922 = vmatprep.mubr.bf16.mxu1 %v9297_v11  ;;  %v7805_v51 = vcombine.high %v130_v45, %v134_v46  ;;  %v7804_v60 = vcombine.low %v130_v45, %v134_v46 }
  0xd0   :  { %5759 = vmatmul.mubr.bf16.vlgmr.msra.gmra.mrb[0].mxu0 %v9343_v55  ;;  %5892 = vmatprep.subr.bf16.mxu1 %v7757_v57  ;;  %v8275_v4 = vcombine.high %v601_v62, %v605_v0  ;;  %v609_v8 = vld [vmem:[#allocation2 + $0x10c0] sm:$0xff]  ;;  %v8274_v12 = vcombine.low %v601_v62, %v605_v0  ;;  %v142_v57 = vld [vmem:[#allocation2 + $0x228] sm:$0xff] }
  0xd1   :  { %5768 = vmatpush1.bf16.msra.mxu0 %v8258_v56  ;;  %5799 = vmatprep.mubr.bf16.mxu0 %v9346_v61  ;;  %v613_v9 = vld [vmem:[#allocation2 + $0x10e0] sm:$0xff]  ;;  %v138_v56 = vld [vmem:[#allocation2 + $0x208] sm:$0xff] }
  0xd2   :  { %5769 = vmatprep.subr.bf16.mxu0 %v8267_v58  ;;  %v8283_v14 = vcombine.high %v609_v8, %v613_v9  ;;  %v617_v18 = vld [vmem:[#allocation2 + $0x1100] sm:$0xff]  ;;  %v8282_v21 = vcombine.low %v609_v8, %v613_v9  ;;  %v7813_v0 = vcombine.high %v138_v56, %v142_v57  ;;  %v7812_v7 = vcombine.low %v138_v56, %v142_v57 }
  0xd3   :  { %5893 = vmatpush1.bf16.msra.mxu1 %v7756_v1  ;;  %v621_v19 = vld [vmem:[#allocation2 + $0x1120] sm:$0xff] }
  0xd4   :  { %5894 = vmatprep.subr.bf16.mxu1 %v7765_v3  ;;  %v8291_v23 = vcombine.high %v617_v18, %v621_v19  ;;  %v625_v26 = vld [vmem:[#allocation2 + $0x1140] sm:$0xff]  ;;  %v8290_v30 = vcombine.low %v617_v18, %v621_v19  ;;  %v150_v3 = vld [vmem:[#allocation2 + $0x268] sm:$0xff] }
  0xd5   :  { %5770 = vmatpush1.bf16.msra.mxu0 %v8266_v2  ;;  %v629_v27 = vld [vmem:[#allocation2 + $0x1160] sm:$0xff]  ;;  %v146_v2 = vld [vmem:[#allocation2 + $0x248] sm:$0xff] }
  0xd6   :  { %5771 = vmatprep.subr.bf16.mxu0 %v8275_v4  ;;  %v8299_v34 = vcombine.high %v625_v26, %v629_v27  ;;  %v633_v37 = vld [vmem:[#allocation2 + $0x1180] sm:$0xff]  ;;  %v8298_v40 = vcombine.low %v625_v26, %v629_v27  ;;  %v7821_v9 = vcombine.high %v146_v2, %v150_v3  ;;  %v7820_v17 = vcombine.low %v146_v2, %v150_v3 }
  0xd7   :  { %5895 = vmatpush1.bf16.msra.mxu1 %v7764_v10  ;;  %v637_v38 = vld [vmem:[#allocation2 + $0x11a0] sm:$0xff] }
  0xd8   :  { %5896 = vmatprep.subr.bf16.mxu1 %v7773_v13  ;;  %v8307_v44 = vcombine.high %v633_v37, %v637_v38  ;;  %v641_v47 = vld [vmem:[#allocation2 + $0x11c0] sm:$0xff]  ;;  %v8306_v50 = vcombine.low %v633_v37, %v637_v38  ;;  %v158_v13 = vld [vmem:[#allocation2 + $0x2a8] sm:$0xff] }
  0xd9   :  { %5772 = vmatpush1.bf16.msra.mxu0 %v8274_v12  ;;  %v645_v48 = vld [vmem:[#allocation2 + $0x11e0] sm:$0xff]  ;;  %v154_v12 = vld [vmem:[#allocation2 + $0x288] sm:$0xff] }
  0xda   :  { %5773 = vmatprep.subr.bf16.mxu0 %v8283_v14  ;;  %v8315_v54 = vcombine.high %v641_v47, %v645_v48  ;;  %v649_v58 = vld [vmem:[#allocation2 + $0x1200] sm:$0xff]  ;;  %v8314_v62 = vcombine.low %v641_v47, %v645_v48  ;;  %v7829_v19 = vcombine.high %v154_v12, %v158_v13  ;;  %v7828_v25 = vcombine.low %v154_v12, %v158_v13 }
  0xdb   :  { %5897 = vmatpush1.bf16.msra.mxu1 %v7772_v20  ;;  %v653_v59 = vld [vmem:[#allocation2 + $0x1220] sm:$0xff] }
  0xdc   :  { %5898 = vmatprep.subr.bf16.mxu1 %v7781_v22  ;;  %v8323_v1 = vcombine.high %v649_v58, %v653_v59  ;;  %v657_v4 = vld [vmem:[#allocation2 + $0x1240] sm:$0xff]  ;;  %v8322_v8 = vcombine.low %v649_v58, %v653_v59  ;;  %v166_v22 = vld [vmem:[#allocation2 + $0x2e8] sm:$0xff] }
  0xdd   :  { %5774 = vmatpush1.bf16.msra.mxu0 %v8282_v21  ;;  %v661_v6 = vld [vmem:[#allocation2 + $0x1260] sm:$0xff]  ;;  %v162_v21 = vld [vmem:[#allocation2 + $0x2c8] sm:$0xff] }
  0xde   :  { %5775 = vmatprep.subr.bf16.mxu0 %v8291_v23  ;;  %v8331_v10 = vcombine.high %v657_v4, %v661_v6  ;;  %v665_v14 = vld [vmem:[#allocation2 + $0x1280] sm:$0xff]  ;;  %v8330_v18 = vcombine.low %v657_v4, %v661_v6  ;;  %v7837_v27 = vcombine.high %v162_v21, %v166_v22  ;;  %v7836_v36 = vcombine.low %v162_v21, %v166_v22 }
  0xdf   :  { %5899 = vmatpush1.bf16.msra.mxu1 %v7780_v29  ;;  %v669_v15 = vld [vmem:[#allocation2 + $0x12a0] sm:$0xff] }
  0xe0   :  { %5900 = vmatprep.subr.bf16.mxu1 %v7789_v33  ;;  %v8339_v20 = vcombine.high %v665_v14, %v669_v15  ;;  %v673_v23 = vld [vmem:[#allocation2 + $0x12c0] sm:$0xff]  ;;  %v8338_v26 = vcombine.low %v665_v14, %v669_v15  ;;  %v174_v33 = vld [vmem:[#allocation2 + $0x328] sm:$0xff] }
  0xe1   :  { %5776 = vmatpush1.bf16.msra.mxu0 %v8290_v30  ;;  %v677_v24 = vld [vmem:[#allocation2 + $0x12e0] sm:$0xff]  ;;  %v170_v30 = vld [vmem:[#allocation2 + $0x308] sm:$0xff] }
  0xe2   :  { %5777 = vmatprep.subr.bf16.mxu0 %v8299_v34  ;;  %v8347_v29 = vcombine.high %v673_v23, %v677_v24  ;;  %v681_v34 = vld [vmem:[#allocation2 + $0x1300] sm:$0xff]  ;;  %v8346_v37 = vcombine.low %v673_v23, %v677_v24  ;;  %v7845_v38 = vcombine.high %v170_v30, %v174_v33  ;;  %v7844_v46 = vcombine.low %v170_v30, %v174_v33 }
  0xe3   :  { %5901 = vmatpush1.bf16.msra.mxu1 %v7788_v39  ;;  %v685_v35 = vld [vmem:[#allocation2 + $0x1320] sm:$0xff]  ;;  %v9354_v23 = vrot.slane %v9333_v41, %v9283_v53  ;;  %v9358_v30 = vcombine.high %v9346_v61, %v9346_v61 }
  0xe4   :  { %5902 = vmatprep.subr.bf16.mxu1 %v7797_v42  ;;  %v8355_v39 = vcombine.high %v681_v34, %v685_v35  ;;  %v182_v42 = vld [vmem:[#allocation2 + $0x368] sm:$0xff]  ;;  %v693_v45 = vld [vmem:[#allocation2 + $0x1360] sm:$0xff]  ;;  %v8354_v47 = vcombine.low %v681_v34, %v685_v35 }
  0xe5   :  { %5778 = vmatpush1.bf16.msra.mxu0 %v8298_v40  ;;  %v178_v40 = vld [vmem:[#allocation2 + $0x348] sm:$0xff]  ;;  %v701_v56 = vld [vmem:[#allocation2 + $0x13a0] sm:$0xff] }
  0xe6   :  { %5779 = vmatprep.subr.bf16.mxu0 %v8307_v44  ;;  %v689_v44 = vld [vmem:[#allocation2 + $0x1340] sm:$0xff]  ;;  %v7853_v48 = vcombine.high %v178_v40, %v182_v42  ;;  %v7852_v57 = vcombine.low %v178_v40, %v182_v42 }
  0xe7   :  { %5903 = vmatpush1.bf16.msra.mxu1 %v7796_v49  ;;  %v8363_v49 = vcombine.high %v689_v44, %v693_v45  ;;  %v8362_v58 = vcombine.low %v689_v44, %v693_v45  ;;  %v709_v2 = vld [vmem:[#allocation2 + $0x13e0] sm:$0xff] }
  0xe8   :  { %5904 = vmatprep.subr.bf16.mxu1 %v7805_v51  ;;  %v190_v51 = vld [vmem:[#allocation2 + $0x3a8] sm:$0xff]  ;;  %v717_v12 = vld [vmem:[#allocation2 + $0x1420] sm:$0xff] }
  0xe9   :  { %5780 = vmatpush1.bf16.msra.mxu0 %v8306_v50  ;;  %v186_v50 = vld [vmem:[#allocation2 + $0x388] sm:$0xff]  ;;  %v725_v21 = vld [vmem:[#allocation2 + $0x1460] sm:$0xff] }
  0xea   :  { %5781 = vmatprep.subr.bf16.mxu0 %v8315_v54  ;;  %v697_v54 = vld [vmem:[#allocation2 + $0x1380] sm:$0xff]  ;;  %v7861_v59 = vcombine.high %v186_v50, %v190_v51  ;;  %v7860_v3 = vcombine.low %v186_v50, %v190_v51 }
  0xeb   :  { %5905 = vmatpush1.bf16.msra.mxu1 %v7804_v60  ;;  %v8371_v60 = vcombine.high %v697_v54, %v701_v56  ;;  %v8370_v4 = vcombine.low %v697_v54, %v701_v56  ;;  %v729_v33 = vld [vmem:[#allocation2 + $0x1480] sm:$0xff] }
  0xec   :  { %5906 = vmatprep.subr.bf16.mxu1 %v7813_v0  ;;  %v198_v0 = vld [vmem:[#allocation2 + $0x3e8] sm:$0xff]  ;;  %v733_v34 = vld [vmem:[#allocation2 + $0x14a0] sm:$0xff] }
  0xed   :  { %5782 = vmatpush1.bf16.msra.mxu0 %v8314_v62  ;;  %v194_v62 = vld [vmem:[#allocation2 + $0x3c8] sm:$0xff]  ;;  %v737_v40 = vld [vmem:[#allocation2 + $0x14c0] sm:$0xff]  ;;  %v8402_v45 = vcombine.low %v729_v33, %v733_v34 }
  0xee   :  { %5783 = vmatprep.subr.bf16.mxu0 %v8323_v1  ;;  %v705_v1 = vld [vmem:[#allocation2 + $0x13c0] sm:$0xff]  ;;  %v7869_v6 = vcombine.high %v194_v62, %v198_v0  ;;  %v7868_v13 = vcombine.low %v194_v62, %v198_v0 }
  0xef   :  { %5907 = vmatpush1.bf16.msra.mxu1 %v7812_v7  ;;  %v8379_v7 = vcombine.high %v705_v1, %v709_v2  ;;  %v8378_v14 = vcombine.low %v705_v1, %v709_v2  ;;  %v741_v42 = vld [vmem:[#allocation2 + $0x14e0] sm:$0xff] }
  0xf0   :  { %5908 = vmatprep.subr.bf16.mxu1 %v7821_v9  ;;  %v206_v9 = vld [vmem:[#allocation2 + $0x428] sm:$0xff]  ;;  %v745_v50 = vld [vmem:[#allocation2 + $0x1500] sm:$0xff]  ;;  %v8410_v56 = vcombine.low %v737_v40, %v741_v42 }
  0xf1   :  { %5784 = vmatpush1.bf16.msra.mxu0 %v8322_v8  ;;  %v202_v8 = vld [vmem:[#allocation2 + $0x408] sm:$0xff]  ;;  %v749_v51 = vld [vmem:[#allocation2 + $0x1520] sm:$0xff] }
  0xf2   :  { %5785 = vmatprep.subr.bf16.mxu0 %v8331_v10  ;;  %v713_v10 = vld [vmem:[#allocation2 + $0x1400] sm:$0xff]  ;;  %v7877_v15 = vcombine.high %v202_v8, %v206_v9  ;;  %v7876_v22 = vcombine.low %v202_v8, %v206_v9  ;;  %v8418_v2 = vcombine.low %v745_v50, %v749_v51 }
  0xf3   :  { %5909 = vmatpush1.bf16.msra.mxu1 %v7820_v17  ;;  %v8387_v17 = vcombine.high %v713_v10, %v717_v12  ;;  %v8386_v24 = vcombine.low %v713_v10, %v717_v12  ;;  %v753_v62 = vld [vmem:[#allocation2 + $0x1540] sm:$0xff] }
  0xf4   :  { %5910 = vmatprep.subr.bf16.mxu1 %v7829_v19  ;;  %v214_v19 = vld [vmem:[#allocation2 + $0x468] sm:$0xff]  ;;  %v757_v0 = vld [vmem:[#allocation2 + $0x1560] sm:$0xff] }
  0xf5   :  { %5786 = vmatpush1.bf16.msra.mxu0 %v8330_v18  ;;  %v210_v18 = vld [vmem:[#allocation2 + $0x448] sm:$0xff]  ;;  %v761_v8 = vld [vmem:[#allocation2 + $0x1580] sm:$0xff]  ;;  %v8426_v12 = vcombine.low %v753_v62, %v757_v0 }
  0xf6   :  { %5787 = vmatprep.subr.bf16.mxu0 %v8339_v20  ;;  %v721_v20 = vld [vmem:[#allocation2 + $0x1440] sm:$0xff]  ;;  %v7884_v41 = vcombine.low %v210_v18, %v214_v19 }
  0xf7   :  { %5911 = vmatpush1.bf16.msra.mxu1 %v7828_v25  ;;  %v7885_v25 = vcombine.high %v210_v18, %v214_v19  ;;  %v8394_v35 = vcombine.low %v721_v20, %v725_v21  ;;  %v765_v9 = vld [vmem:[#allocation2 + $0x15a0] sm:$0xff] }
  0xf8   :  { %5912 = vmatprep.subr.bf16.mxu1 %v7837_v27  ;;  %v218_v27 = vld [vmem:[#allocation2 + $0x488] sm:$0xff]  ;;  %v769_v18 = vld [vmem:[#allocation2 + $0x15c0] sm:$0xff] }
  0xf9   :  { %5788 = vmatpush1.bf16.msra.mxu0 %v8338_v26  ;;  %v8395_v26 = vcombine.high %v721_v20, %v725_v21  ;;  %v773_v19 = vld [vmem:[#allocation2 + $0x15e0] sm:$0xff]  ;;  %v8434_v21 = vcombine.low %v761_v8, %v765_v9 }
  0xfa   :  { %5789 = vmatprep.subr.bf16.mxu0 %v8347_v29  ;;  %v222_v29 = vld [vmem:[#allocation2 + $0x4a8] sm:$0xff] }
  0xfb   :  { %5913 = vmatpush1.bf16.msra.mxu1 %v7836_v36  ;;  %v7893_v36 = vcombine.high %v218_v27, %v222_v29  ;;  %v7892_v44 = vcombine.low %v218_v27, %v222_v29  ;;  %v777_v27 = vld [vmem:[#allocation2 + $0x1600] sm:$0xff] }
  0xfc   :  { %5914 = vmatprep.subr.bf16.mxu1 %v7845_v38  ;;  %v226_v38 = vld [vmem:[#allocation2 + $0x4c8] sm:$0xff]  ;;  %v781_v29 = vld [vmem:[#allocation2 + $0x1620] sm:$0xff] }
  0xfd   :  { %5790 = vmatpush1.bf16.msra.mxu0 %v8346_v37  ;;  %v8403_v37 = vcombine.high %v729_v33, %v733_v34  ;;  %v8442_v34 = vcombine.low %v769_v18, %v773_v19 }
  0xfe   :  { %5791 = vmatprep.subr.bf16.mxu0 %v8355_v39  ;;  %v230_v39 = vld [vmem:[#allocation2 + $0x4e8] sm:$0xff] }
  0xff   :  { %5915 = vmatpush1.bf16.msra.mxu1 %v7844_v46  ;;  %v7901_v46 = vcombine.high %v226_v38, %v230_v39  ;;  %v7900_v54 = vcombine.low %v226_v38, %v230_v39  ;;  %v785_v38 = vld [vmem:[#allocation2 + $0x1640] sm:$0xff] }
 0x100   :  { %5916 = vmatprep.subr.bf16.mxu1 %v7853_v48  ;;  %v234_v48 = vld [vmem:[#allocation2 + $0x508] sm:$0xff]  ;;  %v789_v39 = vld [vmem:[#allocation2 + $0x1660] sm:$0xff] }
 0x101   :  { %5792 = vmatpush1.bf16.msra.mxu0 %v8354_v47  ;;  %v8411_v47 = vcombine.high %v737_v40, %v741_v42  ;;  %v8450_v42 = vcombine.low %v777_v27, %v781_v29 }
 0x102   :  { %5793 = vmatprep.subr.bf16.mxu0 %v8363_v49  ;;  %v238_v49 = vld [vmem:[#allocation2 + $0x528] sm:$0xff] }
 0x103   :  { %5917 = vmatpush1.bf16.msra.mxu1 %v7852_v57  ;;  %v7909_v57 = vcombine.high %v234_v48, %v238_v49  ;;  %v7908_v1 = vcombine.low %v234_v48, %v238_v49  ;;  %v793_v48 = vld [vmem:[#allocation2 + $0x1680] sm:$0xff] }
 0x104   :  { %5918 = vmatprep.subr.bf16.mxu1 %v7861_v59  ;;  %v242_v59 = vld [vmem:[#allocation2 + $0x548] sm:$0xff]  ;;  %v797_v49 = vld [vmem:[#allocation2 + $0x16a0] sm:$0xff] }
 0x105   :  { %5794 = vmatpush1.bf16.msra.mxu0 %v8362_v58  ;;  %v8419_v58 = vcombine.high %v745_v50, %v749_v51  ;;  %v8458_v51 = vcombine.low %v785_v38, %v789_v39 }
 0x106   :  { %5795 = vmatprep.subr.bf16.mxu0 %v8371_v60  ;;  %v246_v60 = vld [vmem:[#allocation2 + $0x568] sm:$0xff] }
 0x107   :  { %5919 = vmatpush1.bf16.msra.mxu1 %v7860_v3  ;;  %v7917_v3 = vcombine.high %v242_v59, %v246_v60  ;;  %v7916_v10 = vcombine.low %v242_v59, %v246_v60  ;;  %v801_v59 = vld [vmem:[#allocation2 + $0x16c0] sm:$0xff] }
 0x108   :  { %5920 = vmatprep.subr.bf16.mxu1 %v7869_v6  ;;  %v250_v6 = vld [vmem:[#allocation2 + $0x588] sm:$0xff]  ;;  %v805_v60 = vld [vmem:[#allocation2 + $0x16e0] sm:$0xff] }
 0x109   :  { %5796 = vmatpush1.bf16.msra.mxu0 %v8370_v4  ;;  %v8427_v4 = vcombine.high %v753_v62, %v757_v0  ;;  %v8466_v0 = vcombine.low %v793_v48, %v797_v49 }
 0x10a   :  { %5797 = vmatprep.subr.bf16.mxu0 %v8379_v7  ;;  %v254_v7 = vld [vmem:[#allocation2 + $0x5a8] sm:$0xff] }
 0x10b   :  { %5921 = vmatpush1.bf16.msra.mxu1 %v7868_v13  ;;  %v7925_v13 = vcombine.high %v250_v6, %v254_v7  ;;  %v7924_v20 = vcombine.low %v250_v6, %v254_v7  ;;  %v809_v6 = vld [vmem:[#allocation2 + $0x1700] sm:$0xff] }
 0x10c   :  { %5931 = vmatprep.subr.bf16.mxu1 %v7877_v15  ;;  %v258_v15 = vld [vmem:[#allocation2 + $0x5c8] sm:$0xff]  ;;  %v813_v7 = vld [vmem:[#allocation2 + $0x1720] sm:$0xff] }
 0x10d   :  { %5798 = vmatpush1.bf16.msra.mxu0 %v8378_v14  ;;  %v8435_v14 = vcombine.high %v761_v8, %v765_v9  ;;  %v8474_v9 = vcombine.low %v801_v59, %v805_v60 }
 0x10e   :  { %5808 = vmatprep.subr.bf16.mxu0 %v8387_v17  ;;  %5923 = vmatmul.mubr.bf16.vlgmr.msra.gmra.mrb[4].mxu1 %v9308_v28  ;;  %v262_v17 = vld [vmem:[#allocation2 + $0x5e8] sm:$0xff] }
 0x10f   :  { %5932 = vmatpush1.bf16.msra.mxu1 %v7876_v22  ;;  %5963 = vmatprep.mubr.bf16.mxu1 %v9316_v63  ;;  %v7933_v22 = vcombine.high %v258_v15, %v262_v17  ;;  %v7932_v33 = vcombine.low %v258_v15, %v262_v17  ;;  %v817_v15 = vld [vmem:[#allocation2 + $0x1740] sm:$0xff] }
 0x110   :  { %5800 = vmatmul.mubr.bf16.vlgmr.msra.gmra.mrb[0].mxu0 %v9354_v23  ;;  %5933 = vmatprep.subr.bf16.mxu1 %v7885_v25  ;;  %v266_v25 = vld [vmem:[#allocation2 + $0x608] sm:$0xff]  ;;  %v821_v17 = vld [vmem:[#allocation2 + $0x1760] sm:$0xff] }
 0x111   :  { %5809 = vmatpush1.bf16.msra.mxu0 %v8386_v24  ;;  %5840 = vmatprep.mubr.bf16.mxu0 %v9358_v30  ;;  %v8443_v24 = vcombine.high %v769_v18, %v773_v19  ;;  %v8482_v19 = vcombine.low %v809_v6, %v813_v7 }
 0x112   :  { %5810 = vmatprep.subr.bf16.mxu0 %v8395_v26  ;;  %v270_v26 = vld [vmem:[#allocation2 + $0x628] sm:$0xff] }
 0x113   :  { %5934 = vmatpush1.bf16.msra.mxu1 %v7884_v41  ;;  %v7941_v41 = vcombine.high %v266_v25, %v270_v26  ;;  %v7940_v40 = vcombine.low %v266_v25, %v270_v26  ;;  %v825_v25 = vld [vmem:[#allocation2 + $0x1780] sm:$0xff] }
 0x114   :  { %5935 = vmatprep.subr.bf16.mxu1 %v7893_v36  ;;  %v274_v36 = vld [vmem:[#allocation2 + $0x648] sm:$0xff]  ;;  %v829_v26 = vld [vmem:[#allocation2 + $0x17a0] sm:$0xff] }
 0x115   :  { %5811 = vmatpush1.bf16.msra.mxu0 %v8394_v35  ;;  %v8451_v35 = vcombine.high %v777_v27, %v781_v29  ;;  %v8490_v29 = vcombine.low %v817_v15, %v821_v17 }
 0x116   :  { %5812 = vmatprep.subr.bf16.mxu0 %v8403_v37  ;;  %v278_v37 = vld [vmem:[#allocation2 + $0x668] sm:$0xff] }
 0x117   :  { %5936 = vmatpush1.bf16.msra.mxu1 %v7892_v44  ;;  %v7949_v44 = vcombine.high %v274_v36, %v278_v37  ;;  %v7948_v50 = vcombine.low %v274_v36, %v278_v37  ;;  %v1062_v36 = vcombine.high %v9329_v31, %v9329_v31  ;;  %v833_v37 = vld [vmem:[#allocation2 + $0x17c0] sm:$0xff] }
 0x118   :  { %5937 = vmatprep.subr.bf16.mxu1 %v7901_v46  ;;  %v282_v46 = vld [vmem:[#allocation2 + $0x688] sm:$0xff] }
 0x119   :  { %5813 = vmatpush1.bf16.msra.mxu0 %v8402_v45  ;;  %v8459_v45 = vcombine.high %v785_v38, %v789_v39  ;;  %v837_v38 = vld [vmem:[#allocation2 + $0x17e0] sm:$0xff] }
 0x11a   :  { %5814 = vmatprep.subr.bf16.mxu0 %v8411_v47  ;;  %v286_v47 = vld [vmem:[#allocation2 + $0x6a8] sm:$0xff]  ;;  %v8506_v31 = vcombine.low %v833_v37, %v837_v38 }
 0x11b   :  { %5938 = vmatpush1.bf16.msra.mxu1 %v7900_v54  ;;  %v7957_v54 = vcombine.high %v282_v46, %v286_v47  ;;  %v7956_v62 = vcombine.low %v282_v46, %v286_v47  ;;  %v334_v46 = vld [vmem:[#allocation2 + $0x828] sm:$0xff]  ;;  %v9367_v47 = vrot.slane %v1062_v36, %v9283_v53 }
 0x11c   :  { %5939 = vmatprep.subr.bf16.mxu1 %v7909_v57  ;;  %v290_v57 = vld [vmem:[#allocation2 + $0x6c8] sm:$0xff] }
 0x11d   :  { %5815 = vmatpush1.bf16.msra.mxu0 %v8410_v56  ;;  %v8467_v56 = vcombine.high %v793_v48, %v797_v49  ;;  %v841_v48 = vld [vmem:[#allocation2 + $0x1800] sm:$0xff]  ;;  %v370_v36 = vld [vmem:[#allocation2 + $0x948] sm:$0xff] }
 0x11e   :  { %5816 = vmatprep.subr.bf16.mxu0 %v8419_v58  ;;  %v294_v58 = vld [vmem:[#allocation2 + $0x6e8] sm:$0xff]  ;;  %v845_v49 = vld [vmem:[#allocation2 + $0x1820] sm:$0xff] }
 0x11f   :  { %5940 = vmatpush1.bf16.msra.mxu1 %v7908_v1  ;;  %v7965_v1 = vcombine.high %v290_v57, %v294_v58  ;;  %v7964_v8 = vcombine.low %v290_v57, %v294_v58  ;;  %v342_v57 = vld [vmem:[#allocation2 + $0x868] sm:$0xff]  ;;  %v1078_v58 = vcombine.high %v9367_v47, %v9367_v47 }
 0x120   :  { %5941 = vmatprep.subr.bf16.mxu1 %v7917_v3  ;;  %v298_v3 = vld [vmem:[#allocation2 + $0x708] sm:$0xff] }
 0x121   :  { %5817 = vmatpush1.bf16.msra.mxu0 %v8418_v2  ;;  %v8475_v2 = vcombine.high %v801_v59, %v805_v60  ;;  %v849_v59 = vld [vmem:[#allocation2 + $0x1840] sm:$0xff] }
 0x122   :  { %5818 = vmatprep.subr.bf16.mxu0 %v8427_v4  ;;  %v302_v4 = vld [vmem:[#allocation2 + $0x728] sm:$0xff]  ;;  %v853_v60 = vld [vmem:[#allocation2 + $0x1860] sm:$0xff] }
 0x123   :  { %5942 = vmatpush1.bf16.msra.mxu1 %v7916_v10  ;;  %v7973_v10 = vcombine.high %v298_v3, %v302_v4  ;;  %v7972_v18 = vcombine.low %v298_v3, %v302_v4  ;;  %v8523_v3 = vcombine.high %v849_v59, %v853_v60  ;;  %v346_v4 = vld [vmem:[#allocation2 + $0x888] sm:$0xff] }
 0x124   :  { %5943 = vmatprep.subr.bf16.mxu1 %v7925_v13  ;;  %v306_v13 = vld [vmem:[#allocation2 + $0x748] sm:$0xff] }
 0x125   :  { %5819 = vmatpush1.bf16.msra.mxu0 %v8426_v12  ;;  %v8483_v12 = vcombine.high %v809_v6, %v813_v7  ;;  %v350_v6 = vld [vmem:[#allocation2 + $0x8a8] sm:$0xff]  ;;  %v9376_v7 = vrot.slane %v1078_v58, %v9283_v53 }
 0x126   :  { %5820 = vmatprep.subr.bf16.mxu0 %v8435_v14  ;;  %v310_v14 = vld [vmem:[#allocation2 + $0x768] sm:$0xff] }
 0x127   :  { %5944 = vmatpush1.bf16.msra.mxu1 %v7924_v20  ;;  %v7981_v20 = vcombine.high %v306_v13, %v310_v14  ;;  %v7980_v27 = vcombine.low %v306_v13, %v310_v14  ;;  %v8021_v13 = vcombine.high %v346_v4, %v350_v6  ;;  %v390_v58 = vld [vmem:[#allocation2 + $0x9e8] sm:$0xff] }
 0x128   :  { %5945 = vmatprep.subr.bf16.mxu1 %v7933_v22  ;;  %v314_v22 = vld [vmem:[#allocation2 + $0x788] sm:$0xff] }
 0x129   :  { %5821 = vmatpush1.bf16.msra.mxu0 %v8434_v21  ;;  %v8491_v21 = vcombine.high %v817_v15, %v821_v17  ;;  %v354_v15 = vld [vmem:[#allocation2 + $0x8c8] sm:$0xff] }
 0x12a   :  { %5822 = vmatprep.subr.bf16.mxu0 %v8443_v24  ;;  %v318_v24 = vld [vmem:[#allocation2 + $0x7a8] sm:$0xff] }
 0x12b   :  { %5946 = vmatpush1.bf16.msra.mxu1 %v7932_v33  ;;  %v7989_v33 = vcombine.high %v314_v22, %v318_v24  ;;  %v7988_v39 = vcombine.low %v314_v22, %v318_v24  ;;  %v358_v17 = vld [vmem:[#allocation2 + $0x8e8] sm:$0xff] }
 0x12c   :  { %5947 = vmatprep.subr.bf16.mxu1 %v7941_v41  ;;  %v322_v41 = vld [vmem:[#allocation2 + $0x7c8] sm:$0xff]  ;;  %v8029_v22 = vcombine.high %v354_v15, %v358_v17 }
 0x12d   :  { %5823 = vmatpush1.bf16.msra.mxu0 %v8442_v34  ;;  %v8499_v34 = vcombine.high %v825_v25, %v829_v26 }
 0x12e   :  { %5824 = vmatprep.subr.bf16.mxu0 %v8451_v35  ;;  %v326_v35 = vld [vmem:[#allocation2 + $0x7e8] sm:$0xff] }
 0x12f   :  { %5948 = vmatpush1.bf16.msra.mxu1 %v7940_v40  ;;  %v8498_v40 = vcombine.low %v825_v25, %v829_v26  ;;  %v362_v25 = vld [vmem:[#allocation2 + $0x908] sm:$0xff] }
 0x130   :  { %5949 = vmatprep.subr.bf16.mxu1 %v7949_v44  ;;  %v8507_v44 = vcombine.high %v833_v37, %v837_v38  ;;  %v366_v26 = vld [vmem:[#allocation2 + $0x928] sm:$0xff]  ;;  %v881_v38 = vld [vmem:[#allocation2 + $0x1940] sm:$0xff] }
 0x131   :  { %5825 = vmatpush1.bf16.msra.mxu0 %v8450_v42  ;;  %v7997_v42 = vcombine.high %v322_v41, %v326_v35  ;;  %v374_v37 = vld [vmem:[#allocation2 + $0x968] sm:$0xff] }
 0x132   :  { %5826 = vmatprep.subr.bf16.mxu0 %v8459_v45  ;;  %v330_v45 = vld [vmem:[#allocation2 + $0x808] sm:$0xff] }
 0x133   :  { %5950 = vmatpush1.bf16.msra.mxu1 %v7948_v50  ;;  %v7996_v50 = vcombine.low %v322_v41, %v326_v35  ;;  %v8037_v41 = vcombine.high %v362_v25, %v366_v26 }
 0x134   :  { %5951 = vmatprep.subr.bf16.mxu1 %v7957_v54  ;;  %v8515_v54 = vcombine.high %v841_v48, %v845_v49 }
 0x135   :  { %5827 = vmatpush1.bf16.msra.mxu0 %v8458_v51  ;;  %v8005_v51 = vcombine.high %v330_v45, %v334_v46 }
 0x136   :  { %5828 = vmatprep.subr.bf16.mxu0 %v8467_v56  ;;  %v338_v56 = vld [vmem:[#allocation2 + $0x848] sm:$0xff] }
 0x137   :  { %5952 = vmatpush1.bf16.msra.mxu1 %v7956_v62  ;;  %v8004_v62 = vcombine.low %v330_v45, %v334_v46  ;;  %v378_v46 = vld [vmem:[#allocation2 + $0x988] sm:$0xff] }
 0x138   :  { %5953 = vmatprep.subr.bf16.mxu1 %v7965_v1  ;;  %v8514_v1 = vcombine.low %v841_v48, %v845_v49  ;;  %v382_v48 = vld [vmem:[#allocation2 + $0x9a8] sm:$0xff]  ;;  %v889_v49 = vld [vmem:[#allocation2 + $0x1980] sm:$0xff] }
 0x139   :  { %5829 = vmatpush1.bf16.msra.mxu0 %v8466_v0  ;;  %v9373_v0 = vcombine.high %v9354_v23, %v9354_v23 }
 0x13a   :  { %5830 = vmatprep.subr.bf16.mxu0 %v8475_v2  ;;  %v8013_v2 = vcombine.high %v338_v56, %v342_v57 }
 0x13b   :  { %5954 = vmatpush1.bf16.msra.mxu1 %v7964_v8  ;;  %v857_v8 = vld [vmem:[#allocation2 + $0x1880] sm:$0xff] }
 0x13c   :  { %5955 = vmatprep.subr.bf16.mxu1 %v7973_v10  ;;  %v8012_v10 = vcombine.low %v338_v56, %v342_v57  ;;  %v386_v57 = vld [vmem:[#allocation2 + $0x9c8] sm:$0xff] }
 0x13d   :  { %5831 = vmatpush1.bf16.msra.mxu0 %v8474_v9  ;;  %v861_v9 = vld [vmem:[#allocation2 + $0x18a0] sm:$0xff] }
 0x13e   :  { %5832 = vmatprep.subr.bf16.mxu0 %v8483_v12  ;;  %v8522_v12 = vcombine.low %v849_v59, %v853_v60  ;;  %v8531_v14 = vcombine.high %v857_v8, %v861_v9  ;;  %v897_v59 = vld [vmem:[#allocation2 + $0x19c0] sm:$0xff] }
 0x13f   :  { %5956 = vmatpush1.bf16.msra.mxu1 %v7972_v18  ;;  %v865_v18 = vld [vmem:[#allocation2 + $0x18c0] sm:$0xff] }
 0x140   :  { %5957 = vmatprep.subr.bf16.mxu1 %v7981_v20  ;;  %v8020_v20 = vcombine.low %v346_v4, %v350_v6  ;;  %v901_v60 = vld [vmem:[#allocation2 + $0x19e0] sm:$0xff]  ;;  %v394_v4 = vld [vmem:[#allocation2 + $0xa08] sm:$0xff] }
 0x141   :  { %5833 = vmatpush1.bf16.msra.mxu0 %v8482_v19  ;;  %v869_v19 = vld [vmem:[#allocation2 + $0x18e0] sm:$0xff]  ;;  %v398_v6 = vld [vmem:[#allocation2 + $0xa28] sm:$0xff] }
 0x142   :  { %5834 = vmatprep.subr.bf16.mxu0 %v8491_v21  ;;  %v8530_v21 = vcombine.low %v857_v8, %v861_v9  ;;  %v8539_v24 = vcombine.high %v865_v18, %v869_v19  ;;  %v905_v8 = vld [vmem:[#allocation2 + $0x1a00] sm:$0xff] }
 0x143   :  { %5958 = vmatpush1.bf16.msra.mxu1 %v7980_v27  ;;  %v873_v27 = vld [vmem:[#allocation2 + $0x1900] sm:$0xff] }
 0x144   :  { %5959 = vmatprep.subr.bf16.mxu1 %v7989_v33  ;;  %v8028_v33 = vcombine.low %v354_v15, %v358_v17  ;;  %v909_v9 = vld [vmem:[#allocation2 + $0x1a20] sm:$0xff]  ;;  %v402_v15 = vld [vmem:[#allocation2 + $0xa48] sm:$0xff] }
 0x145   :  { %5835 = vmatpush1.bf16.msra.mxu0 %v8490_v29  ;;  %v877_v29 = vld [vmem:[#allocation2 + $0x1920] sm:$0xff]  ;;  %v406_v17 = vld [vmem:[#allocation2 + $0xa68] sm:$0xff] }
 0x146   :  { %5836 = vmatprep.subr.bf16.mxu0 %v8499_v34  ;;  %v8538_v34 = vcombine.low %v865_v18, %v869_v19  ;;  %v8547_v35 = vcombine.high %v873_v27, %v877_v29  ;;  %v913_v18 = vld [vmem:[#allocation2 + $0x1a40] sm:$0xff] }
 0x147   :  { %5960 = vmatpush1.bf16.msra.mxu1 %v7988_v39  ;;  %v885_v39 = vld [vmem:[#allocation2 + $0x1960] sm:$0xff] }
 0x148   :  { %5961 = vmatprep.subr.bf16.mxu1 %v7997_v42  ;;  %v8546_v42 = vcombine.low %v873_v27, %v877_v29  ;;  %v8555_v45 = vcombine.high %v881_v38, %v885_v39  ;;  %v917_v19 = vld [vmem:[#allocation2 + $0x1a60] sm:$0xff] }
 0x149   :  { %5837 = vmatpush1.bf16.msra.mxu0 %v8498_v40  ;;  %v8036_v40 = vcombine.low %v362_v25, %v366_v26  ;;  %v410_v25 = vld [vmem:[#allocation2 + $0xa88] sm:$0xff]  ;;  %v921_v27 = vld [vmem:[#allocation2 + $0x1a80] sm:$0xff] }
 0x14a   :  { %5838 = vmatprep.subr.bf16.mxu0 %v8507_v44  ;;  %v8045_v44 = vcombine.high %v370_v36, %v374_v37  ;;  %v414_v26 = vld [vmem:[#allocation2 + $0xaa8] sm:$0xff]  ;;  %v925_v29 = vld [vmem:[#allocation2 + $0x1aa0] sm:$0xff] }
 0x14b   :  { %5962 = vmatpush1.bf16.msra.mxu1 %v7996_v50  ;;  %v893_v50 = vld [vmem:[#allocation2 + $0x19a0] sm:$0xff] }
 0x14c   :  { %5972 = vmatprep.subr.bf16.mxu1 %v8005_v51  ;;  %v8554_v51 = vcombine.low %v881_v38, %v885_v39  ;;  %v8563_v56 = vcombine.high %v889_v49, %v893_v50  ;;  %v929_v38 = vld [vmem:[#allocation2 + $0x1ac0] sm:$0xff] }
 0x14d   :  { %5839 = vmatpush1.bf16.msra.mxu0 %v8506_v31  ;;  %v8044_v31 = vcombine.low %v370_v36, %v374_v37  ;;  %v418_v36 = vld [vmem:[#allocation2 + $0xac8] sm:$0xff]  ;;  %v933_v39 = vld [vmem:[#allocation2 + $0x1ae0] sm:$0xff] }
 0x14e   :  { %5849 = vmatprep.subr.bf16.mxu0 %v8515_v54  ;;  %5964 = vmatmul.mubr.bf16.vlgmr.msra.gmra.mrb[4].mxu1 %v9339_v52  ;;  %v8053_v54 = vcombine.high %v378_v46, %v382_v48  ;;  %v422_v37 = vld [vmem:[#allocation2 + $0xae8] sm:$0xff] }
 0x14f   :  { %5973 = vmatpush1.bf16.msra.mxu1 %v8004_v62  ;;  %6004 = vmatprep.mubr.bf16.mxu1 %v9303_v16  ;;  %v8052_v62 = vcombine.low %v378_v46, %v382_v48  ;;  %v426_v46 = vld [vmem:[#allocation2 + $0xb08] sm:$0xff] }
 0x150   :  { %5841 = vmatmul.mubr.bf16.vlgmr.msra.gmra.mrb[0].mxu0 %v9373_v0  ;;  %5974 = vmatprep.subr.bf16.mxu1 %v8013_v2  ;;  %v8061_v2 = vcombine.high %v386_v57, %v390_v58  ;;  %v430_v48 = vld [vmem:[#allocation2 + $0xb28] sm:$0xff] }
 0x151   :  { %5850 = vmatpush1.bf16.msra.mxu0 %v8514_v1  ;;  %5881 = vmatprep.mubr.bf16.mxu0 %v9376_v7  ;;  %v8562_v1 = vcombine.low %v889_v49, %v893_v50  ;;  %v937_v49 = vld [vmem:[#allocation2 + $0x1b00] sm:$0xff] }
 0x152   :  { %5851 = vmatprep.subr.bf16.mxu0 %v8523_v3  ;;  %v8571_v3 = vcombine.high %v897_v59, %v901_v60  ;;  %v941_v50 = vld [vmem:[#allocation2 + $0x1b20] sm:$0xff] }
 0x153   :  { %5975 = vmatpush1.bf16.msra.mxu1 %v8012_v10  ;;  %v8060_v10 = vcombine.low %v386_v57, %v390_v58  ;;  %v434_v57 = vld [vmem:[#allocation2 + $0xb48] sm:$0xff] }
 0x154   :  { %5976 = vmatprep.subr.bf16.mxu1 %v8021_v13  ;;  %v8069_v13 = vcombine.high %v394_v4, %v398_v6  ;;  %v438_v58 = vld [vmem:[#allocation2 + $0xb68] sm:$0xff] }
 0x155   :  { %5852 = vmatpush1.bf16.msra.mxu0 %v8522_v12  ;;  %v8570_v12 = vcombine.low %v897_v59, %v901_v60  ;;  %v945_v59 = vld [vmem:[#allocation2 + $0x1b40] sm:$0xff] }
 0x156   :  { %5853 = vmatprep.subr.bf16.mxu0 %v8531_v14  ;;  %v8579_v14 = vcombine.high %v905_v8, %v909_v9  ;;  %v949_v60 = vld [vmem:[#allocation2 + $0x1b60] sm:$0xff] }
 0x157   :  { %5977 = vmatpush1.bf16.msra.mxu1 %v8020_v20  ;;  %v8068_v20 = vcombine.low %v394_v4, %v398_v6  ;;  %v442_v4 = vld [vmem:[#allocation2 + $0xb88] sm:$0xff] }
 0x158   :  { %5978 = vmatprep.subr.bf16.mxu1 %v8029_v22  ;;  %v8077_v22 = vcombine.high %v402_v15, %v406_v17  ;;  %v446_v6 = vld [vmem:[#allocation2 + $0xba8] sm:$0xff] }
 0x159   :  { %5854 = vmatpush1.bf16.msra.mxu0 %v8530_v21  ;;  %v8578_v21 = vcombine.low %v905_v8, %v909_v9  ;;  %v953_v8 = vld [vmem:[#allocation2 + $0x1b80] sm:$0xff] }
 0x15a   :  { %5855 = vmatprep.subr.bf16.mxu0 %v8539_v24  ;;  %v8587_v24 = vcombine.high %v913_v18, %v917_v19  ;;  %v957_v9 = vld [vmem:[#allocation2 + $0x1ba0] sm:$0xff] }
 0x15b   :  { %5979 = vmatpush1.bf16.msra.mxu1 %v8028_v33  ;;  %v8076_v33 = vcombine.low %v402_v15, %v406_v17  ;;  %v450_v15 = vld [vmem:[#allocation2 + $0xbc8] sm:$0xff] }
 0x15c   :  { %5980 = vmatprep.subr.bf16.mxu1 %v8037_v41  ;;  %v8085_v41 = vcombine.high %v410_v25, %v414_v26  ;;  %v454_v17 = vld [vmem:[#allocation2 + $0xbe8] sm:$0xff] }
 0x15d   :  { %5856 = vmatpush1.bf16.msra.mxu0 %v8538_v34  ;;  %v8586_v34 = vcombine.low %v913_v18, %v917_v19  ;;  %v961_v18 = vld [vmem:[#allocation2 + $0x1bc0] sm:$0xff] }
 0x15e   :  { %5857 = vmatprep.subr.bf16.mxu0 %v8547_v35  ;;  %v8595_v35 = vcombine.high %v921_v27, %v925_v29  ;;  %v965_v19 = vld [vmem:[#allocation2 + $0x1be0] sm:$0xff] }
 0x15f   :  { %5981 = vmatpush1.bf16.msra.mxu1 %v8036_v40  ;;  %v8084_v40 = vcombine.low %v410_v25, %v414_v26  ;;  %v458_v25 = vld [vmem:[#allocation2 + $0xc08] sm:$0xff] }
 0x160   :  { %5982 = vmatprep.subr.bf16.mxu1 %v8045_v44  ;;  %v8093_v44 = vcombine.high %v418_v36, %v422_v37  ;;  %v462_v26 = vld [vmem:[#allocation2 + $0xc28] sm:$0xff] }
 0x161   :  { %5858 = vmatpush1.bf16.msra.mxu0 %v8546_v42  ;;  %v8594_v42 = vcombine.low %v921_v27, %v925_v29  ;;  %v75_v27 = vld [vmem:[#allocation2 + $0x10] sm:$0xff] }
 0x162   :  { %5859 = vmatprep.subr.bf16.mxu0 %v8555_v45  ;;  %v8603_v45 = vcombine.high %v929_v38, %v933_v39  ;;  %v79_v29 = vld [vmem:[#allocation2 + $0x30] sm:$0xff] }
 0x163   :  { %5983 = vmatpush1.bf16.msra.mxu1 %v8044_v31  ;;  %v8092_v31 = vcombine.low %v418_v36, %v422_v37  ;;  %v466_v36 = vld [vmem:[#allocation2 + $0xc48] sm:$0xff] }
 0x164   :  { %5984 = vmatprep.subr.bf16.mxu1 %v8053_v54  ;;  %v8101_v54 = vcombine.high %v426_v46, %v430_v48  ;;  %v470_v37 = vld [vmem:[#allocation2 + $0xc68] sm:$0xff] }
 0x165   :  { %5860 = vmatpush1.bf16.msra.mxu0 %v8554_v51  ;;  %v8602_v51 = vcombine.low %v929_v38, %v933_v39  ;;  %v83_v38 = vld [vmem:[#allocation2 + $0x50] sm:$0xff] }
 0x166   :  { %5861 = vmatprep.subr.bf16.mxu0 %v8563_v56  ;;  %v8611_v56 = vcombine.high %v937_v49, %v941_v50  ;;  %v87_v39 = vld [vmem:[#allocation2 + $0x70] sm:$0xff] }
 0x167   :  { %5985 = vmatpush1.bf16.msra.mxu1 %v8052_v62  ;;  %v8100_v62 = vcombine.low %v426_v46, %v430_v48  ;;  %v7759_v46 = vcombine.high %v83_v38, %v87_v39  ;;  %v474_v48 = vld [vmem:[#allocation2 + $0xc88] sm:$0xff] }
 0x168   :  { %5986 = vmatprep.subr.bf16.mxu1 %v8061_v2  ;;  %v8109_v2 = vcombine.high %v434_v57, %v438_v58 }
 0x169   :  { %5862 = vmatpush1.bf16.msra.mxu0 %v8562_v1  ;;  %v8610_v1 = vcombine.low %v937_v49, %v941_v50  ;;  %v478_v49 = vld [vmem:[#allocation2 + $0xca8] sm:$0xff]  ;;  %v91_v50 = vld [vmem:[#allocation2 + $0x90] sm:$0xff] }
 0x16a   :  { %5863 = vmatprep.subr.bf16.mxu0 %v8571_v3  ;;  %v8619_v3 = vcombine.high %v945_v59, %v949_v60 }
 0x16b   :  { %5987 = vmatpush1.bf16.msra.mxu1 %v8060_v10  ;;  %v8108_v10 = vcombine.low %v434_v57, %v438_v58  ;;  %v486_v57 = vld [vmem:[#allocation2 + $0xce8] sm:$0xff]  ;;  %v99_v58 = vld [vmem:[#allocation2 + $0xd0] sm:$0xff] }
 0x16c   :  { %5988 = vmatprep.subr.bf16.mxu1 %v8069_v13  ;;  %v8117_v13 = vcombine.high %v442_v4, %v446_v6 }
 0x16d   :  { %5864 = vmatpush1.bf16.msra.mxu0 %v8570_v12  ;;  %v8618_v12 = vcombine.low %v945_v59, %v949_v60  ;;  %v103_v59 = vld [vmem:[#allocation2 + $0xf0] sm:$0xff]  ;;  %v8148_v60 = vcombine.low %v474_v48, %v478_v49 }
 0x16e   :  { %5865 = vmatprep.subr.bf16.mxu0 %v8579_v14  ;;  %v8627_v14 = vcombine.high %v953_v8, %v957_v9 }
 0x16f   :  { %5989 = vmatpush1.bf16.msra.mxu1 %v8068_v20  ;;  %v8116_v20 = vcombine.low %v442_v4, %v446_v6  ;;  %v494_v4 = vld [vmem:[#allocation2 + $0xd28] sm:$0xff]  ;;  %v107_v6 = vld [vmem:[#allocation2 + $0x110] sm:$0xff] }
 0x170   :  { %5990 = vmatprep.subr.bf16.mxu1 %v8077_v22  ;;  %v8125_v22 = vcombine.high %v450_v15, %v454_v17 }
 0x171   :  { %5866 = vmatpush1.bf16.msra.mxu0 %v8578_v21  ;;  %v8626_v21 = vcombine.low %v953_v8, %v957_v9  ;;  %v111_v8 = vld [vmem:[#allocation2 + $0x130] sm:$0xff] }
 0x172   :  { %5867 = vmatprep.subr.bf16.mxu0 %v8587_v24  ;;  %v8635_v24 = vcombine.high %v961_v18, %v965_v19 }
 0x173   :  { %5991 = vmatpush1.bf16.msra.mxu1 %v8076_v33  ;;  %v8124_v33 = vcombine.low %v450_v15, %v454_v17  ;;  %v502_v15 = vld [vmem:[#allocation2 + $0xd68] sm:$0xff]  ;;  %v115_v17 = vld [vmem:[#allocation2 + $0x150] sm:$0xff] }
 0x174   :  { %5992 = vmatprep.subr.bf16.mxu1 %v8085_v41  ;;  %v8133_v41 = vcombine.high %v458_v25, %v462_v26 }
 0x175   :  { %5868 = vmatpush1.bf16.msra.mxu0 %v8586_v34  ;;  %v8634_v34 = vcombine.low %v961_v18, %v965_v19  ;;  %v119_v18 = vld [vmem:[#allocation2 + $0x170] sm:$0xff] }
 0x176   :  { %5869 = vmatprep.subr.bf16.mxu0 %v8595_v35  ;;  %v7751_v35 = vcombine.high %v75_v27, %v79_v29 }
 0x177   :  { %5993 = vmatpush1.bf16.msra.mxu1 %v8084_v40  ;;  %v9384_v40 = vrot.slane %v9367_v47, %v9283_v53  ;;  %v7758_v53 = vcombine.low %v83_v38, %v87_v39  ;;  %v8149_v47 = vcombine.high %v474_v48, %v478_v49  ;;  %v131_v39 = vld [vmem:[#allocation2 + $0x1d0] sm:$0xff] }
 0x178   :  { %5994 = vmatprep.subr.bf16.mxu1 %v8093_v44  ;;  %v7750_v44 = vcombine.low %v75_v27, %v79_v29  ;;  %v127_v27 = vld [vmem:[#allocation2 + $0x1b0] sm:$0xff] }
 0x179   :  { %5870 = vmatpush1.bf16.msra.mxu0 %v8594_v42  ;;  %v8132_v42 = vcombine.low %v458_v25, %v462_v26  ;;  %v510_v25 = vld [vmem:[#allocation2 + $0xda8] sm:$0xff]  ;;  %v123_v26 = vld [vmem:[#allocation2 + $0x190] sm:$0xff] }
 0x17a   :  { %5871 = vmatprep.subr.bf16.mxu0 %v8603_v45  ;;  %v8141_v45 = vcombine.high %v466_v36, %v470_v37  ;;  %v7798_v48 = vcombine.low %v123_v26, %v127_v27 }
 0x17b   :  { %5995 = vmatpush1.bf16.msra.mxu1 %v8092_v31  ;;  %v95_v31 = vld [vmem:[#allocation2 + $0xb0] sm:$0xff] }
 0x17c   :  { %5996 = vmatprep.subr.bf16.mxu1 %v8101_v54  ;;  %v7767_v54 = vcombine.high %v91_v50, %v95_v31 }
 0x17d   :  { %5872 = vmatpush1.bf16.msra.mxu0 %v8602_v51  ;;  %v8140_v51 = vcombine.low %v466_v36, %v470_v37  ;;  %v514_v36 = vld [vmem:[#allocation2 + $0xdc8] sm:$0xff] }
 0x17e   :  { %5873 = vmatprep.subr.bf16.mxu0 %v8611_v56  ;;  %v482_v56 = vld [vmem:[#allocation2 + $0xcc8] sm:$0xff] }
 0x17f   :  { %5997 = vmatpush1.bf16.msra.mxu1 %v8100_v62  ;;  %v7766_v62 = vcombine.low %v91_v50, %v95_v31  ;;  %v8156_v9 = vcombine.low %v482_v56, %v486_v57  ;;  %v518_v37 = vld [vmem:[#allocation2 + $0xde8] sm:$0xff] }
 0x180   :  { %5998 = vmatprep.subr.bf16.mxu1 %v8109_v2  ;;  %v7775_v2 = vcombine.high %v99_v58, %v103_v59  ;;  %v8189_v49 = vcombine.high %v514_v36, %v518_v37  ;;  %v522_v31 = vld [vmem:[#allocation2 + $0xe08] sm:$0xff] }
 0x181   :  { %5874 = vmatpush1.bf16.msra.mxu0 %v8610_v1  ;;  %v8157_v1 = vcombine.high %v482_v56, %v486_v57 }
 0x182   :  { %5875 = vmatprep.subr.bf16.mxu0 %v8619_v3  ;;  %v490_v3 = vld [vmem:[#allocation2 + $0xd08] sm:$0xff] }
 0x183   :  { %5999 = vmatpush1.bf16.msra.mxu1 %v8108_v10  ;;  %v7774_v10 = vcombine.low %v99_v58, %v103_v59  ;;  %v8164_v19 = vcombine.low %v490_v3, %v494_v4  ;;  %v530_v59 = vld [vmem:[#allocation2 + $0xe48] sm:$0xff] }
 0x184   :  { %6000 = vmatprep.subr.bf16.mxu1 %v8117_v13  ;;  %v7783_v13 = vcombine.high %v107_v6, %v111_v8 }
 0x185   :  { %5876 = vmatpush1.bf16.msra.mxu0 %v8618_v12  ;;  %v8165_v12 = vcombine.high %v490_v3, %v494_v4 }
 0x186   :  { %5877 = vmatprep.subr.bf16.mxu0 %v8627_v14  ;;  %v498_v14 = vld [vmem:[#allocation2 + $0xd48] sm:$0xff] }
 0x187   :  { %6001 = vmatpush1.bf16.msra.mxu1 %v8116_v20  ;;  %v7782_v20 = vcombine.low %v107_v6, %v111_v8  ;;  %v8172_v29 = vcombine.low %v498_v14, %v502_v15  ;;  %v538_v8 = vld [vmem:[#allocation2 + $0xe88] sm:$0xff] }
 0x188   :  { %6002 = vmatprep.subr.bf16.mxu1 %v8125_v22  ;;  %v7791_v22 = vcombine.high %v115_v17, %v119_v18 }
 0x189   :  { %5878 = vmatpush1.bf16.msra.mxu0 %v8626_v21  ;;  %v8173_v21 = vcombine.high %v498_v14, %v502_v15 }
 0x18a   :  { %5879 = vmatprep.subr.bf16.mxu0 %v8635_v24  ;;  %v506_v24 = vld [vmem:[#allocation2 + $0xd88] sm:$0xff] }
 0x18b   :  { %6003 = vmatpush1.bf16.msra.mxu1 %v8124_v33  ;;  %v7790_v33 = vcombine.low %v115_v17, %v119_v18  ;;  %v546_v18 = vld [vmem:[#allocation2 + $0xec8] sm:$0xff] }
 0x18c   :  { %6013 = vmatprep.subr.bf16.mxu1 %v8133_v41 }
 0x18d   :  { %5880 = vmatpush1.bf16.msra.mxu0 %v8634_v34  ;;  %v8181_v34 = vcombine.high %v506_v24, %v510_v25 }
 0x18e   :  { %6177 = vmatprep.subr.bf16.mxu0 %v7751_v35  ;;  %6005 = vmatmul.mubr.bf16.vlgmr.msra.gmra.mrb[4].mxu1 %v9312_v32  ;;  %v7799_v35 = vcombine.high %v123_v26, %v127_v27  ;;  %v554_v27 = vld [vmem:[#allocation2 + $0xf08] sm:$0xff] }
 0x18f   :  { %6014 = vmatpush1.bf16.msra.mxu1 %v8132_v42  ;;  %6045 = vmatprep.mubr.bf16.mxu1 %v9321_v5  ;;  %v135_v42 = vld [vmem:[#allocation2 + $0x1f0] sm:$0xff] }
 0x190   :  { %5882 = vmatmul.mubr.bf16.vlgmr.msra.gmra.mrb[0].mxu0 %v9384_v40  ;;  %6015 = vmatprep.subr.bf16.mxu1 %v8141_v45  ;;  %v8180_v45 = vcombine.low %v506_v24, %v510_v25  ;;  %v7807_v50 = vcombine.high %v131_v39, %v135_v42  ;;  %v7806_v56 = vcombine.low %v131_v39, %v135_v42  ;;  %v562_v42 = vld [vmem:[#allocation2 + $0xf48] sm:$0xff] }
 0x191   :  { %6178 = vmatpush1.bf16.msra.mxu0 %v7750_v44  ;;  %6209 = vmatprep.mubr.bf16.mxu0 %v9297_v11 }
 0x192   :  { %6179 = vmatprep.subr.bf16.mxu0 %v7759_v46 }
 0x193   :  { %6016 = vmatpush1.bf16.msra.mxu1 %v8140_v51  ;;  %v526_v51 = vld [vmem:[#allocation2 + $0xe28] sm:$0xff] }
 0x194   :  { %6017 = vmatprep.subr.bf16.mxu1 %v8149_v47  ;;  %v143_v47 = vld [vmem:[#allocation2 + $0x230] sm:$0xff]  ;;  %v8197_v57 = vcombine.high %v522_v31, %v526_v51 }
 0x195   :  { %6180 = vmatpush1.bf16.msra.mxu0 %v7758_v53  ;;  %v139_v53 = vld [vmem:[#allocation2 + $0x210] sm:$0xff] }
 0x196   :  { %6181 = vmatprep.subr.bf16.mxu0 %v7767_v54  ;;  %v8188_v54 = vcombine.low %v514_v36, %v518_v37  ;;  %v7815_v58 = vcombine.high %v139_v53, %v143_v47  ;;  %v7814_v3 = vcombine.low %v139_v53, %v143_v47  ;;  %v574_v53 = vld [vmem:[#allocation2 + $0xfa8] sm:$0xff]  ;;  %v187_v47 = vld [vmem:[#allocation2 + $0x390] sm:$0xff] }
 0x197   :  { %6018 = vmatpush1.bf16.msra.mxu1 %v8148_v60  ;;  %v534_v60 = vld [vmem:[#allocation2 + $0xe68] sm:$0xff] }
 0x198   :  { %6019 = vmatprep.subr.bf16.mxu1 %v8157_v1  ;;  %v151_v1 = vld [vmem:[#allocation2 + $0x270] sm:$0xff]  ;;  %v8205_v4 = vcombine.high %v530_v59, %v534_v60 }
 0x199   :  { %6182 = vmatpush1.bf16.msra.mxu0 %v7766_v62  ;;  %v147_v62 = vld [vmem:[#allocation2 + $0x250] sm:$0xff] }
 0x19a   :  { %6183 = vmatprep.subr.bf16.mxu0 %v7775_v2  ;;  %v8196_v2 = vcombine.low %v522_v31, %v526_v51  ;;  %v7823_v6 = vcombine.high %v147_v62, %v151_v1  ;;  %v7822_v14 = vcombine.low %v147_v62, %v151_v1  ;;  %v570_v51 = vld [vmem:[#allocation2 + $0xf88] sm:$0xff]  ;;  %v195_v1 = vld [vmem:[#allocation2 + $0x3d0] sm:$0xff] }
 0x19b   :  { %6020 = vmatpush1.bf16.msra.mxu1 %v8156_v9  ;;  %v542_v9 = vld [vmem:[#allocation2 + $0xea8] sm:$0xff] }
 0x19c   :  { %6021 = vmatprep.subr.bf16.mxu1 %v8165_v12  ;;  %v159_v12 = vld [vmem:[#allocation2 + $0x2b0] sm:$0xff]  ;;  %v8213_v15 = vcombine.high %v538_v8, %v542_v9  ;;  %v582_v62 = vld [vmem:[#allocation2 + $0xfe8] sm:$0xff] }
 0x19d   :  { %6184 = vmatpush1.bf16.msra.mxu0 %v7774_v10  ;;  %v155_v10 = vld [vmem:[#allocation2 + $0x290] sm:$0xff] }
 0x19e   :  { %6185 = vmatprep.subr.bf16.mxu0 %v7783_v13  ;;  %v8204_v13 = vcombine.low %v530_v59, %v534_v60  ;;  %v7831_v17 = vcombine.high %v155_v10, %v159_v12  ;;  %v7830_v24 = vcombine.low %v155_v10, %v159_v12  ;;  %v578_v60 = vld [vmem:[#allocation2 + $0xfc8] sm:$0xff]  ;;  %v203_v12 = vld [vmem:[#allocation2 + $0x410] sm:$0xff] }
 0x19f   :  { %6022 = vmatpush1.bf16.msra.mxu1 %v8164_v19  ;;  %v550_v19 = vld [vmem:[#allocation2 + $0xee8] sm:$0xff] }
 0x1a0   :  { %6023 = vmatprep.subr.bf16.mxu1 %v8173_v21  ;;  %v167_v21 = vld [vmem:[#allocation2 + $0x2f0] sm:$0xff]  ;;  %v8221_v25 = vcombine.high %v546_v18, %v550_v19  ;;  %v590_v10 = vld [vmem:[#allocation2 + $0x1028] sm:$0xff] }
 0x1a1   :  { %6186 = vmatpush1.bf16.msra.mxu0 %v7782_v20  ;;  %v9390_v41 = vpop.f32.mrb[0].mxu1  ;;  %v163_v20 = vld [vmem:[#allocation2 + $0x2d0] sm:$0xff] }
 0x1a2   :  { %6187 = vmatprep.subr.bf16.mxu0 %v7791_v22  ;;  %v9392_v38 = vpop.f32.mrb[1].mxu1  ;;  %v8212_v22 = vcombine.low %v538_v8, %v542_v9  ;;  %v7839_v26 = vcombine.high %v163_v20, %v167_v21  ;;  %v7838_v36 = vcombine.low %v163_v20, %v167_v21  ;;  %v586_v9 = vld [vmem:[#allocation2 + $0x1008] sm:$0xff]  ;;  %v211_v21 = vld [vmem:[#allocation2 + $0x450] sm:$0xff] }
 0x1a3   :  { %v5682_v44 = vpop.f32.mrb[2].mxu1  ;;  %6024 = vmatpush1.bf16.msra.mxu1 %v8172_v29  ;;  %v558_v29 = vld [vmem:[#allocation2 + $0xf28] sm:$0xff] }
 0x1a4   :  { %v5683_v46 = vpop.f32.mrb[3].mxu1  ;;  %6025 = vmatprep.subr.bf16.mxu1 %v8181_v34  ;;  %v175_v34 = vld [vmem:[#allocation2 + $0x330] sm:$0xff]  ;;  %v8229_v37 = vcombine.high %v554_v27, %v558_v29  ;;  %v566_v44 = vld [vmem:[#allocation2 + $0xf68] sm:$0xff] }
 0x1a5   :  { %6188 = vmatpush1.bf16.msra.mxu0 %v7790_v33  ;;  %v171_v33 = vld [vmem:[#allocation2 + $0x310] sm:$0xff]  ;;  %v598_v20 = vld [vmem:[#allocation2 + $0x1068] sm:$0xff] }
 0x1a6   :  { %6189 = vmatprep.subr.bf16.mxu0 %v7799_v35  ;;  %v8220_v35 = vcombine.low %v546_v18, %v550_v19  ;;  %v7847_v39 = vcombine.high %v171_v33, %v175_v34  ;;  %v183_v46 = vld [vmem:[#allocation2 + $0x370] sm:$0xff]  ;;  %v594_v19 = vld [vmem:[#allocation2 + $0x1048] sm:$0xff] }
 0x1a7   :  { %6026 = vmatpush1.bf16.msra.mxu1 %v8180_v45  ;;  %v179_v45 = vld [vmem:[#allocation2 + $0x350] sm:$0xff] }
 0x1a8   :  { %6027 = vmatprep.subr.bf16.mxu1 %v8189_v49  ;;  %v7846_v49 = vcombine.low %v171_v33, %v175_v34  ;;  %v7855_v31 = vcombine.high %v179_v45, %v183_v46  ;;  %v606_v33 = vld [vmem:[#allocation2 + $0x10a8] sm:$0xff]  ;;  %v219_v34 = vld [vmem:[#allocation2 + $0x490] sm:$0xff] }
 0x1a9   :  { %6190 = vmatpush1.bf16.msra.mxu0 %v7798_v48  ;;  %v8228_v48 = vcombine.low %v554_v27, %v558_v29  ;;  %v602_v29 = vld [vmem:[#allocation2 + $0x1088] sm:$0xff] }
 0x1aa   :  { %6191 = vmatprep.subr.bf16.mxu0 %v7807_v50  ;;  %v8237_v50 = vcombine.high %v562_v42, %v566_v44 }
 0x1ab   :  { %6028 = vmatpush1.bf16.msra.mxu1 %v8188_v54  ;;  %v191_v54 = vld [vmem:[#allocation2 + $0x3b0] sm:$0xff] }
 0x1ac   :  { %6029 = vmatprep.subr.bf16.mxu1 %v8197_v57  ;;  %v7854_v57 = vcombine.low %v179_v45, %v183_v46  ;;  %v7863_v59 = vcombine.high %v187_v47, %v191_v54  ;;  %v614_v45 = vld [vmem:[#allocation2 + $0x10e8] sm:$0xff]  ;;  %v227_v46 = vld [vmem:[#allocation2 + $0x4d0] sm:$0xff] }
 0x1ad   :  { %6192 = vmatpush1.bf16.msra.mxu0 %v7806_v56  ;;  %v8236_v56 = vcombine.low %v562_v42, %v566_v44  ;;  %v610_v44 = vld [vmem:[#allocation2 + $0x10c8] sm:$0xff] }
 0x1ae   :  { %6193 = vmatprep.subr.bf16.mxu0 %v7815_v58  ;;  %v8245_v58 = vcombine.high %v570_v51, %v574_v53 }
 0x1af   :  { %6030 = vmatpush1.bf16.msra.mxu1 %v8196_v2  ;;  %v199_v2 = vld [vmem:[#allocation2 + $0x3f0] sm:$0xff] }
 0x1b0   :  { %6031 = vmatprep.subr.bf16.mxu1 %v8205_v4  ;;  %v7862_v4 = vcombine.low %v187_v47, %v191_v54  ;;  %v7871_v8 = vcombine.high %v195_v1, %v199_v2  ;;  %v622_v47 = vld [vmem:[#allocation2 + $0x1128] sm:$0xff]  ;;  %v235_v54 = vld [vmem:[#allocation2 + $0x510] sm:$0xff] }
 0x1b1   :  { %6194 = vmatpush1.bf16.msra.mxu0 %v7814_v3  ;;  %v8244_v3 = vcombine.low %v570_v51, %v574_v53  ;;  %v618_v53 = vld [vmem:[#allocation2 + $0x1108] sm:$0xff] }
 0x1b2   :  { %6195 = vmatprep.subr.bf16.mxu0 %v7823_v6  ;;  %v8253_v6 = vcombine.high %v578_v60, %v582_v62 }
 0x1b3   :  { %6032 = vmatpush1.bf16.msra.mxu1 %v8204_v13  ;;  %v207_v13 = vld [vmem:[#allocation2 + $0x430] sm:$0xff] }
 0x1b4   :  { %6033 = vmatprep.subr.bf16.mxu1 %v8213_v15  ;;  %v7870_v15 = vcombine.low %v195_v1, %v199_v2  ;;  %v7879_v18 = vcombine.high %v203_v12, %v207_v13  ;;  %v630_v1 = vld [vmem:[#allocation2 + $0x1168] sm:$0xff]  ;;  %v243_v2 = vld [vmem:[#allocation2 + $0x550] sm:$0xff] }
 0x1b5   :  { %6196 = vmatpush1.bf16.msra.mxu0 %v7822_v14  ;;  %v8252_v14 = vcombine.low %v578_v60, %v582_v62  ;;  %v626_v62 = vld [vmem:[#allocation2 + $0x1148] sm:$0xff] }
 0x1b6   :  { %6197 = vmatprep.subr.bf16.mxu0 %v7831_v17  ;;  %v8261_v17 = vcombine.high %v586_v9, %v590_v10 }
 0x1b7   :  { %6034 = vmatpush1.bf16.msra.mxu1 %v8212_v22  ;;  %v215_v22 = vld [vmem:[#allocation2 + $0x470] sm:$0xff] }
 0x1b8   :  { %6035 = vmatprep.subr.bf16.mxu1 %v8221_v25  ;;  %v7878_v25 = vcombine.low %v203_v12, %v207_v13  ;;  %v7887_v27 = vcombine.high %v211_v21, %v215_v22  ;;  %v638_v12 = vld [vmem:[#allocation2 + $0x11a8] sm:$0xff]  ;;  %v251_v13 = vld [vmem:[#allocation2 + $0x590] sm:$0xff] }
 0x1b9   :  { %6198 = vmatpush1.bf16.msra.mxu0 %v7830_v24  ;;  %v8260_v24 = vcombine.low %v586_v9, %v590_v10  ;;  %v634_v10 = vld [vmem:[#allocation2 + $0x1188] sm:$0xff] }
 0x1ba   :  { %6199 = vmatprep.subr.bf16.mxu0 %v7839_v26  ;;  %v8269_v26 = vcombine.high %v594_v19, %v598_v20 }
 0x1bb   :  { %6036 = vmatpush1.bf16.msra.mxu1 %v8220_v35  ;;  %v223_v35 = vld [vmem:[#allocation2 + $0x4b0] sm:$0xff] }
 0x1bc   :  { %6037 = vmatprep.subr.bf16.mxu1 %v8229_v37  ;;  %v7886_v37 = vcombine.low %v211_v21, %v215_v22  ;;  %v7895_v42 = vcombine.high %v219_v34, %v223_v35  ;;  %v646_v21 = vld [vmem:[#allocation2 + $0x11e8] sm:$0xff]  ;;  %v259_v22 = vld [vmem:[#allocation2 + $0x5d0] sm:$0xff] }
 0x1bd   :  { %6200 = vmatpush1.bf16.msra.mxu0 %v7838_v36  ;;  %v8268_v36 = vcombine.low %v594_v19, %v598_v20  ;;  %v642_v20 = vld [vmem:[#allocation2 + $0x11c8] sm:$0xff] }
 0x1be   :  { %6201 = vmatprep.subr.bf16.mxu0 %v7847_v39  ;;  %v8277_v39 = vcombine.high %v602_v29, %v606_v33 }
 0x1bf   :  { %6038 = vmatpush1.bf16.msra.mxu1 %v8228_v48  ;;  %v231_v48 = vld [vmem:[#allocation2 + $0x4f0] sm:$0xff] }
 0x1c0   :  { %6039 = vmatprep.subr.bf16.mxu1 %v8237_v50  ;;  %v7894_v50 = vcombine.low %v219_v34, %v223_v35  ;;  %v7903_v51 = vcombine.high %v227_v46, %v231_v48  ;;  %v654_v34 = vld [vmem:[#allocation2 + $0x1228] sm:$0xff]  ;;  %v267_v35 = vld [vmem:[#allocation2 + $0x610] sm:$0xff] }
 0x1c1   :  { %6202 = vmatpush1.bf16.msra.mxu0 %v7846_v49  ;;  %v8276_v49 = vcombine.low %v602_v29, %v606_v33  ;;  %v650_v33 = vld [vmem:[#allocation2 + $0x1208] sm:$0xff] }
 0x1c2   :  { %6203 = vmatprep.subr.bf16.mxu0 %v7855_v31  ;;  %v8285_v31 = vcombine.high %v610_v44, %v614_v45 }
 0x1c3   :  { %6040 = vmatpush1.bf16.msra.mxu1 %v8236_v56  ;;  %v239_v56 = vld [vmem:[#allocation2 + $0x530] sm:$0xff] }
 0x1c4   :  { %6041 = vmatprep.subr.bf16.mxu1 %v8245_v58  ;;  %v7902_v58 = vcombine.low %v227_v46, %v231_v48  ;;  %v7911_v60 = vcombine.high %v235_v54, %v239_v56  ;;  %v662_v46 = vld [vmem:[#allocation2 + $0x1268] sm:$0xff]  ;;  %v275_v48 = vld [vmem:[#allocation2 + $0x650] sm:$0xff] }
 0x1c5   :  { %6204 = vmatpush1.bf16.msra.mxu0 %v7854_v57  ;;  %v8284_v57 = vcombine.low %v610_v44, %v614_v45  ;;  %v658_v45 = vld [vmem:[#allocation2 + $0x1248] sm:$0xff] }
 0x1c6   :  { %6205 = vmatprep.subr.bf16.mxu0 %v7863_v59  ;;  %v8293_v59 = vcombine.high %v618_v53, %v622_v47 }
 0x1c7   :  { %6042 = vmatpush1.bf16.msra.mxu1 %v8244_v3  ;;  %v247_v3 = vld [vmem:[#allocation2 + $0x570] sm:$0xff] }
 0x1c8   :  { %6043 = vmatprep.subr.bf16.mxu1 %v8253_v6  ;;  %v7910_v6 = vcombine.low %v235_v54, %v239_v56  ;;  %v7919_v9 = vcombine.high %v243_v2, %v247_v3  ;;  %v670_v54 = vld [vmem:[#allocation2 + $0x12a8] sm:$0xff]  ;;  %v283_v56 = vld [vmem:[#allocation2 + $0x690] sm:$0xff] }
 0x1c9   :  { %6206 = vmatpush1.bf16.msra.mxu0 %v7862_v4  ;;  %v8292_v4 = vcombine.low %v618_v53, %v622_v47  ;;  %v666_v47 = vld [vmem:[#allocation2 + $0x1288] sm:$0xff] }
 0x1ca   :  { %6207 = vmatprep.subr.bf16.mxu0 %v7871_v8  ;;  %v8301_v8 = vcombine.high %v626_v62, %v630_v1 }
 0x1cb   :  { %6044 = vmatpush1.bf16.msra.mxu1 %v8252_v14  ;;  %v255_v14 = vld [vmem:[#allocation2 + $0x5b0] sm:$0xff] }
 0x1cc   :  { %6054 = vmatprep.subr.bf16.mxu1 %v8261_v17  ;;  %v7918_v17 = vcombine.low %v243_v2, %v247_v3  ;;  %v7927_v19 = vcombine.high %v251_v13, %v255_v14  ;;  %v678_v2 = vld [vmem:[#allocation2 + $0x12e8] sm:$0xff]  ;;  %v291_v3 = vld [vmem:[#allocation2 + $0x6d0] sm:$0xff] }
 0x1cd   :  { %6208 = vmatpush1.bf16.msra.mxu0 %v7870_v15  ;;  %v8300_v15 = vcombine.low %v626_v62, %v630_v1  ;;  %v674_v1 = vld [vmem:[#allocation2 + $0x12c8] sm:$0xff] }
 0x1ce   :  { %6218 = vmatprep.subr.bf16.mxu0 %v7879_v18  ;;  %6046 = vmatmul.mubr.bf16.vlgmr.msra.gmra.mrb[4].mxu1 %v9343_v55  ;;  %v8309_v18 = vcombine.high %v634_v10, %v638_v12 }
 0x1cf   :  { %6055 = vmatpush1.bf16.msra.mxu1 %v8260_v24  ;;  %6086 = vmatprep.mubr.bf16.mxu1 %v9346_v61  ;;  %v263_v24 = vld [vmem:[#allocation2 + $0x5f0] sm:$0xff] }
 0x1d0   :  { %6210 = vmatmul.mubr.bf16.vlgmr.msra.gmra.mrb[4].mxu0 %v9308_v28  ;;  %6056 = vmatprep.subr.bf16.mxu1 %v8269_v26  ;;  %v7926_v26 = vcombine.low %v251_v13, %v255_v14  ;;  %v7935_v29 = vcombine.high %v259_v22, %v263_v24  ;;  %v686_v13 = vld [vmem:[#allocation2 + $0x1328] sm:$0xff]  ;;  %v299_v14 = vld [vmem:[#allocation2 + $0x710] sm:$0xff] }
 0x1d1   :  { %6219 = vmatpush1.bf16.msra.mxu0 %v7878_v25  ;;  %6250 = vmatprep.mubr.bf16.mxu0 %v9316_v63  ;;  %v8308_v25 = vcombine.low %v634_v10, %v638_v12  ;;  %v682_v12 = vld [vmem:[#allocation2 + $0x1308] sm:$0xff] }
 0x1d2   :  { %6220 = vmatprep.subr.bf16.mxu0 %v7887_v27  ;;  %v8317_v27 = vcombine.high %v642_v20, %v646_v21 }
 0x1d3   :  { %6057 = vmatpush1.bf16.msra.mxu1 %v8268_v36  ;;  %v271_v36 = vld [vmem:[#allocation2 + $0x630] sm:$0xff] }
 0x1d4   :  { %6058 = vmatprep.subr.bf16.mxu1 %v8277_v39  ;;  %v7934_v39 = vcombine.low %v259_v22, %v263_v24  ;;  %v7943_v44 = vcombine.high %v267_v35, %v271_v36  ;;  %v694_v22 = vld [vmem:[#allocation2 + $0x1368] sm:$0xff]  ;;  %v307_v24 = vld [vmem:[#allocation2 + $0x750] sm:$0xff] }
 0x1d5   :  { %6221 = vmatpush1.bf16.msra.mxu0 %v7886_v37  ;;  %v8316_v37 = vcombine.low %v642_v20, %v646_v21  ;;  %v690_v21 = vld [vmem:[#allocation2 + $0x1348] sm:$0xff] }
 0x1d6   :  { %6222 = vmatprep.subr.bf16.mxu0 %v7895_v42  ;;  %v8325_v42 = vcombine.high %v650_v33, %v654_v34 }
 0x1d7   :  { %6059 = vmatpush1.bf16.msra.mxu1 %v8276_v49  ;;  %v279_v49 = vld [vmem:[#allocation2 + $0x670] sm:$0xff] }
 0x1d8   :  { %6060 = vmatprep.subr.bf16.mxu1 %v8285_v31  ;;  %v7942_v31 = vcombine.low %v267_v35, %v271_v36  ;;  %v7951_v53 = vcombine.high %v275_v48, %v279_v49  ;;  %v702_v35 = vld [vmem:[#allocation2 + $0x13a8] sm:$0xff]  ;;  %v315_v36 = vld [vmem:[#allocation2 + $0x790] sm:$0xff] }
 0x1d9   :  { %6223 = vmatpush1.bf16.msra.mxu0 %v7894_v50  ;;  %v8324_v50 = vcombine.low %v650_v33, %v654_v34  ;;  %v698_v34 = vld [vmem:[#allocation2 + $0x1388] sm:$0xff] }
 0x1da   :  { %6224 = vmatprep.subr.bf16.mxu0 %v7903_v51  ;;  %v8333_v51 = vcombine.high %v658_v45, %v662_v46 }
 0x1db   :  { %6061 = vmatpush1.bf16.msra.mxu1 %v8284_v57  ;;  %v287_v57 = vld [vmem:[#allocation2 + $0x6b0] sm:$0xff] }
 0x1dc   :  { %6062 = vmatprep.subr.bf16.mxu1 %v8293_v59  ;;  %v7950_v59 = vcombine.low %v275_v48, %v279_v49  ;;  %v7959_v62 = vcombine.high %v283_v56, %v287_v57  ;;  %v710_v48 = vld [vmem:[#allocation2 + $0x13e8] sm:$0xff]  ;;  %v323_v49 = vld [vmem:[#allocation2 + $0x7d0] sm:$0xff] }
 0x1dd   :  { %6225 = vmatpush1.bf16.msra.mxu0 %v7902_v58  ;;  %v8332_v58 = vcombine.low %v658_v45, %v662_v46  ;;  %v706_v46 = vld [vmem:[#allocation2 + $0x13c8] sm:$0xff] }
 0x1de   :  { %6226 = vmatprep.subr.bf16.mxu0 %v7911_v60  ;;  %v8341_v60 = vcombine.high %v666_v47, %v670_v54 }
 0x1df   :  { %6063 = vmatpush1.bf16.msra.mxu1 %v8292_v4  ;;  %v295_v4 = vld [vmem:[#allocation2 + $0x6f0] sm:$0xff] }
 0x1e0   :  { %6064 = vmatprep.subr.bf16.mxu1 %v8301_v8  ;;  %v7958_v8 = vcombine.low %v283_v56, %v287_v57  ;;  %v7967_v10 = vcombine.high %v291_v3, %v295_v4  ;;  %v718_v56 = vld [vmem:[#allocation2 + $0x1428] sm:$0xff]  ;;  %v331_v57 = vld [vmem:[#allocation2 + $0x810] sm:$0xff] }
 0x1e1   :  { %6227 = vmatpush1.bf16.msra.mxu0 %v7910_v6  ;;  %v8340_v6 = vcombine.low %v666_v47, %v670_v54  ;;  %v714_v54 = vld [vmem:[#allocation2 + $0x1408] sm:$0xff] }
 0x1e2   :  { %6228 = vmatprep.subr.bf16.mxu0 %v7919_v9  ;;  %v8349_v9 = vcombine.high %v674_v1, %v678_v2 }
 0x1e3   :  { %6065 = vmatpush1.bf16.msra.mxu1 %v8300_v15  ;;  %v303_v15 = vld [vmem:[#allocation2 + $0x730] sm:$0xff] }
 0x1e4   :  { %6066 = vmatprep.subr.bf16.mxu1 %v8309_v18  ;;  %v7966_v18 = vcombine.low %v291_v3, %v295_v4  ;;  %v7975_v20 = vcombine.high %v299_v14, %v303_v15  ;;  %v726_v3 = vld [vmem:[#allocation2 + $0x1468] sm:$0xff]  ;;  %v339_v4 = vld [vmem:[#allocation2 + $0x850] sm:$0xff] }
 0x1e5   :  { %6229 = vmatpush1.bf16.msra.mxu0 %v7918_v17  ;;  %v8348_v17 = vcombine.low %v674_v1, %v678_v2  ;;  %v722_v2 = vld [vmem:[#allocation2 + $0x1448] sm:$0xff] }
 0x1e6   :  { %6230 = vmatprep.subr.bf16.mxu0 %v7927_v19  ;;  %v8357_v19 = vcombine.high %v682_v12, %v686_v13 }
 0x1e7   :  { %6067 = vmatpush1.bf16.msra.mxu1 %v8308_v25  ;;  %v311_v25 = vld [vmem:[#allocation2 + $0x770] sm:$0xff] }
 0x1e8   :  { %6068 = vmatprep.subr.bf16.mxu1 %v8317_v27  ;;  %v7974_v27 = vcombine.low %v299_v14, %v303_v15  ;;  %v7983_v33 = vcombine.high %v307_v24, %v311_v25  ;;  %v734_v14 = vld [vmem:[#allocation2 + $0x14a8] sm:$0xff]  ;;  %v347_v15 = vld [vmem:[#allocation2 + $0x890] sm:$0xff] }
 0x1e9   :  { %6231 = vmatpush1.bf16.msra.mxu0 %v7926_v26  ;;  %v8356_v26 = vcombine.low %v682_v12, %v686_v13  ;;  %v730_v13 = vld [vmem:[#allocation2 + $0x1488] sm:$0xff] }
 0x1ea   :  { %6232 = vmatprep.subr.bf16.mxu0 %v7935_v29  ;;  %v8365_v29 = vcombine.high %v690_v21, %v694_v22 }
 0x1eb   :  { %6069 = vmatpush1.bf16.msra.mxu1 %v8316_v37  ;;  %v319_v37 = vld [vmem:[#allocation2 + $0x7b0] sm:$0xff] }
 0x1ec   :  { %6070 = vmatprep.subr.bf16.mxu1 %v8325_v42  ;;  %v7982_v42 = vcombine.low %v307_v24, %v311_v25  ;;  %v7991_v45 = vcombine.high %v315_v36, %v319_v37  ;;  %v742_v24 = vld [vmem:[#allocation2 + $0x14e8] sm:$0xff]  ;;  %v355_v25 = vld [vmem:[#allocation2 + $0x8d0] sm:$0xff] }
 0x1ed   :  { %6233 = vmatpush1.bf16.msra.mxu0 %v7934_v39  ;;  %v8364_v39 = vcombine.low %v690_v21, %v694_v22  ;;  %v738_v22 = vld [vmem:[#allocation2 + $0x14c8] sm:$0xff] }
 0x1ee   :  { %6234 = vmatprep.subr.bf16.mxu0 %v7943_v44  ;;  %v8373_v44 = vcombine.high %v698_v34, %v702_v35 }
 0x1ef   :  { %6071 = vmatpush1.bf16.msra.mxu1 %v8324_v50  ;;  %v327_v50 = vld [vmem:[#allocation2 + $0x7f0] sm:$0xff] }
 0x1f0   :  { %6072 = vmatprep.subr.bf16.mxu1 %v8333_v51  ;;  %v7990_v51 = vcombine.low %v315_v36, %v319_v37  ;;  %v7999_v47 = vcombine.high %v323_v49, %v327_v50  ;;  %v750_v36 = vld [vmem:[#allocation2 + $0x1528] sm:$0xff]  ;;  %v363_v37 = vld [vmem:[#allocation2 + $0x910] sm:$0xff] }
 0x1f1   :  { %6235 = vmatpush1.bf16.msra.mxu0 %v7942_v31  ;;  %v8372_v31 = vcombine.low %v698_v34, %v702_v35  ;;  %v746_v35 = vld [vmem:[#allocation2 + $0x1508] sm:$0xff] }
 0x1f2   :  { %6236 = vmatprep.subr.bf16.mxu0 %v7951_v53  ;;  %v8381_v53 = vcombine.high %v706_v46, %v710_v48 }
 0x1f3   :  { %6073 = vmatpush1.bf16.msra.mxu1 %v8332_v58  ;;  %v335_v58 = vld [vmem:[#allocation2 + $0x830] sm:$0xff] }
 0x1f4   :  { %6074 = vmatprep.subr.bf16.mxu1 %v8341_v60  ;;  %v7998_v60 = vcombine.low %v323_v49, %v327_v50  ;;  %v8007_v1 = vcombine.high %v331_v57, %v335_v58  ;;  %v758_v49 = vld [vmem:[#allocation2 + $0x1568] sm:$0xff]  ;;  %v371_v50 = vld [vmem:[#allocation2 + $0x950] sm:$0xff] }
 0x1f5   :  { %6237 = vmatpush1.bf16.msra.mxu0 %v7950_v59  ;;  %v8380_v59 = vcombine.low %v706_v46, %v710_v48  ;;  %v754_v48 = vld [vmem:[#allocation2 + $0x1548] sm:$0xff] }
 0x1f6   :  { %6238 = vmatprep.subr.bf16.mxu0 %v7959_v62  ;;  %v8389_v62 = vcombine.high %v714_v54, %v718_v56 }
 0x1f7   :  { %6075 = vmatpush1.bf16.msra.mxu1 %v8340_v6  ;;  %v343_v6 = vld [vmem:[#allocation2 + $0x870] sm:$0xff] }
 0x1f8   :  { %6076 = vmatprep.subr.bf16.mxu1 %v8349_v9  ;;  %v8006_v9 = vcombine.low %v331_v57, %v335_v58  ;;  %v8015_v12 = vcombine.high %v339_v4, %v343_v6  ;;  %v766_v57 = vld [vmem:[#allocation2 + $0x15a8] sm:$0xff]  ;;  %v379_v58 = vld [vmem:[#allocation2 + $0x990] sm:$0xff] }
 0x1f9   :  { %6239 = vmatpush1.bf16.msra.mxu0 %v7958_v8  ;;  %v8388_v8 = vcombine.low %v714_v54, %v718_v56  ;;  %v762_v56 = vld [vmem:[#allocation2 + $0x1588] sm:$0xff] }
 0x1fa   :  { %6240 = vmatprep.subr.bf16.mxu0 %v7967_v10  ;;  %v8397_v10 = vcombine.high %v722_v2, %v726_v3 }
 0x1fb   :  { %6077 = vmatpush1.bf16.msra.mxu1 %v8348_v17  ;;  %v351_v17 = vld [vmem:[#allocation2 + $0x8b0] sm:$0xff] }
 0x1fc   :  { %6078 = vmatprep.subr.bf16.mxu1 %v8357_v19  ;;  %v8014_v19 = vcombine.low %v339_v4, %v343_v6  ;;  %v8023_v21 = vcombine.high %v347_v15, %v351_v17  ;;  %v774_v4 = vld [vmem:[#allocation2 + $0x15e8] sm:$0xff]  ;;  %v387_v6 = vld [vmem:[#allocation2 + $0x9d0] sm:$0xff] }
 0x1fd   :  { %6241 = vmatpush1.bf16.msra.mxu0 %v7966_v18  ;;  %v8396_v18 = vcombine.low %v722_v2, %v726_v3  ;;  %v770_v3 = vld [vmem:[#allocation2 + $0x15c8] sm:$0xff] }
 0x1fe   :  { %6242 = vmatprep.subr.bf16.mxu0 %v7975_v20  ;;  %v8405_v20 = vcombine.high %v730_v13, %v734_v14 }
 0x1ff   :  { %6079 = vmatpush1.bf16.msra.mxu1 %v8356_v26  ;;  %v359_v26 = vld [vmem:[#allocation2 + $0x8f0] sm:$0xff] }
 0x200   :  { %6080 = vmatprep.subr.bf16.mxu1 %v8365_v29  ;;  %v8022_v29 = vcombine.low %v347_v15, %v351_v17  ;;  %v8031_v34 = vcombine.high %v355_v25, %v359_v26  ;;  %v782_v15 = vld [vmem:[#allocation2 + $0x1628] sm:$0xff]  ;;  %v395_v17 = vld [vmem:[#allocation2 + $0xa10] sm:$0xff] }
 0x201   :  { %6243 = vmatpush1.bf16.msra.mxu0 %v7974_v27  ;;  %v8404_v27 = vcombine.low %v730_v13, %v734_v14  ;;  %v778_v14 = vld [vmem:[#allocation2 + $0x1608] sm:$0xff] }
 0x202   :  { %6244 = vmatprep.subr.bf16.mxu0 %v7983_v33  ;;  %v8413_v33 = vcombine.high %v738_v22, %v742_v24 }
 0x203   :  { %6081 = vmatpush1.bf16.msra.mxu1 %v8364_v39  ;;  %v367_v39 = vld [vmem:[#allocation2 + $0x930] sm:$0xff] }
 0x204   :  { %6082 = vmatprep.subr.bf16.mxu1 %v8373_v44  ;;  %v8030_v44 = vcombine.low %v355_v25, %v359_v26  ;;  %v8039_v46 = vcombine.high %v363_v37, %v367_v39  ;;  %v790_v25 = vld [vmem:[#allocation2 + $0x1668] sm:$0xff]  ;;  %v403_v26 = vld [vmem:[#allocation2 + $0xa50] sm:$0xff] }
 0x205   :  { %6245 = vmatpush1.bf16.msra.mxu0 %v7982_v42  ;;  %v8412_v42 = vcombine.low %v738_v22, %v742_v24  ;;  %v786_v24 = vld [vmem:[#allocation2 + $0x1648] sm:$0xff] }
 0x206   :  { %6246 = vmatprep.subr.bf16.mxu0 %v7991_v45  ;;  %v8421_v45 = vcombine.high %v746_v35, %v750_v36 }
 0x207   :  { %6083 = vmatpush1.bf16.msra.mxu1 %v8372_v31  ;;  %v375_v31 = vld [vmem:[#allocation2 + $0x970] sm:$0xff] }
 0x208   :  { %6084 = vmatprep.subr.bf16.mxu1 %v8381_v53  ;;  %v8038_v53 = vcombine.low %v363_v37, %v367_v39  ;;  %v8047_v54 = vcombine.high %v371_v50, %v375_v31  ;;  %v798_v37 = vld [vmem:[#allocation2 + $0x16a8] sm:$0xff]  ;;  %v411_v39 = vld [vmem:[#allocation2 + $0xa90] sm:$0xff] }
 0x209   :  { %6247 = vmatpush1.bf16.msra.mxu0 %v7990_v51  ;;  %v8420_v51 = vcombine.low %v746_v35, %v750_v36  ;;  %v794_v36 = vld [vmem:[#allocation2 + $0x1688] sm:$0xff] }
 0x20a   :  { %6248 = vmatprep.subr.bf16.mxu0 %v7999_v47  ;;  %v8429_v47 = vcombine.high %v754_v48, %v758_v49 }
 0x20b   :  { %6085 = vmatpush1.bf16.msra.mxu1 %v8380_v59  ;;  %v383_v59 = vld [vmem:[#allocation2 + $0x9b0] sm:$0xff] }
 0x20c   :  { %6095 = vmatprep.subr.bf16.mxu1 %v8389_v62  ;;  %v8046_v62 = vcombine.low %v371_v50, %v375_v31  ;;  %v8055_v2 = vcombine.high %v379_v58, %v383_v59  ;;  %v806_v50 = vld [vmem:[#allocation2 + $0x16e8] sm:$0xff]  ;;  %v419_v31 = vld [vmem:[#allocation2 + $0xad0] sm:$0xff] }
 0x20d   :  { %6249 = vmatpush1.bf16.msra.mxu0 %v7998_v60  ;;  %v8428_v60 = vcombine.low %v754_v48, %v758_v49  ;;  %v802_v49 = vld [vmem:[#allocation2 + $0x16c8] sm:$0xff] }
 0x20e   :  { %6259 = vmatprep.subr.bf16.mxu0 %v8007_v1  ;;  %6087 = vmatmul.mubr.bf16.vlgmr.msra.gmra.mrb[4].mxu1 %v9354_v23  ;;  %v8437_v1 = vcombine.high %v762_v56, %v766_v57 }
 0x20f   :  { %6096 = vmatpush1.bf16.msra.mxu1 %v8388_v8  ;;  %6127 = vmatprep.mubr.bf16.mxu1 %v9358_v30  ;;  %v391_v8 = vld [vmem:[#allocation2 + $0x9f0] sm:$0xff] }
 0x210   :  { %6251 = vmatmul.mubr.bf16.vlgmr.msra.gmra.mrb[4].mxu0 %v9339_v52  ;;  %6097 = vmatprep.subr.bf16.mxu1 %v8397_v10  ;;  %v8054_v10 = vcombine.low %v379_v58, %v383_v59  ;;  %v8063_v13 = vcombine.high %v387_v6, %v391_v8  ;;  %v814_v58 = vld [vmem:[#allocation2 + $0x1728] sm:$0xff]  ;;  %v427_v59 = vld [vmem:[#allocation2 + $0xb10] sm:$0xff] }
 0x211   :  { %6260 = vmatpush1.bf16.msra.mxu0 %v8006_v9  ;;  %6291 = vmatprep.mubr.bf16.mxu0 %v9303_v16  ;;  %v8436_v9 = vcombine.low %v762_v56, %v766_v57  ;;  %v810_v57 = vld [vmem:[#allocation2 + $0x1708] sm:$0xff] }
 0x212   :  { %6261 = vmatprep.subr.bf16.mxu0 %v8015_v12  ;;  %v8445_v12 = vcombine.high %v770_v3, %v774_v4 }
 0x213   :  { %6098 = vmatpush1.bf16.msra.mxu1 %v8396_v18  ;;  %v399_v18 = vld [vmem:[#allocation2 + $0xa30] sm:$0xff] }
 0x214   :  { %6099 = vmatprep.subr.bf16.mxu1 %v8405_v20  ;;  %v8062_v20 = vcombine.low %v387_v6, %v391_v8  ;;  %v8071_v22 = vcombine.high %v395_v17, %v399_v18  ;;  %v822_v6 = vld [vmem:[#allocation2 + $0x1768] sm:$0xff]  ;;  %v435_v8 = vld [vmem:[#allocation2 + $0xb50] sm:$0xff] }
 0x215   :  { %6262 = vmatpush1.bf16.msra.mxu0 %v8014_v19  ;;  %v8444_v19 = vcombine.low %v770_v3, %v774_v4  ;;  %v818_v4 = vld [vmem:[#allocation2 + $0x1748] sm:$0xff] }
 0x216   :  { %6263 = vmatprep.subr.bf16.mxu0 %v8023_v21  ;;  %v8453_v21 = vcombine.high %v778_v14, %v782_v15 }
 0x217   :  { %6100 = vmatpush1.bf16.msra.mxu1 %v8404_v27  ;;  %v407_v27 = vld [vmem:[#allocation2 + $0xa70] sm:$0xff] }
 0x218   :  { %6101 = vmatprep.subr.bf16.mxu1 %v8413_v33  ;;  %v8070_v33 = vcombine.low %v395_v17, %v399_v18  ;;  %v8079_v35 = vcombine.high %v403_v26, %v407_v27  ;;  %v830_v17 = vld [vmem:[#allocation2 + $0x17a8] sm:$0xff]  ;;  %v443_v18 = vld [vmem:[#allocation2 + $0xb90] sm:$0xff] }
 0x219   :  { %6264 = vmatpush1.bf16.msra.mxu0 %v8022_v29  ;;  %v8452_v29 = vcombine.low %v778_v14, %v782_v15  ;;  %v826_v15 = vld [vmem:[#allocation2 + $0x1788] sm:$0xff] }
 0x21a   :  { %6265 = vmatprep.subr.bf16.mxu0 %v8031_v34  ;;  %v8461_v34 = vcombine.high %v786_v24, %v790_v25 }
 0x21b   :  { %6102 = vmatpush1.bf16.msra.mxu1 %v8412_v42  ;;  %v415_v42 = vld [vmem:[#allocation2 + $0xab0] sm:$0xff] }
 0x21c   :  { %6103 = vmatprep.subr.bf16.mxu1 %v8421_v45  ;;  %v8078_v45 = vcombine.low %v403_v26, %v407_v27  ;;  %v8087_v48 = vcombine.high %v411_v39, %v415_v42  ;;  %v838_v26 = vld [vmem:[#allocation2 + $0x17e8] sm:$0xff]  ;;  %v451_v27 = vld [vmem:[#allocation2 + $0xbd0] sm:$0xff] }
 0x21d   :  { %6266 = vmatpush1.bf16.msra.mxu0 %v8030_v44  ;;  %v8460_v44 = vcombine.low %v786_v24, %v790_v25  ;;  %v834_v25 = vld [vmem:[#allocation2 + $0x17c8] sm:$0xff] }
 0x21e   :  { %6267 = vmatprep.subr.bf16.mxu0 %v8039_v46  ;;  %v8469_v46 = vcombine.high %v794_v36, %v798_v37 }
 0x21f   :  { %6104 = vmatpush1.bf16.msra.mxu1 %v8420_v51  ;;  %v423_v51 = vld [vmem:[#allocation2 + $0xaf0] sm:$0xff] }
 0x220   :  { %6105 = vmatprep.subr.bf16.mxu1 %v8429_v47  ;;  %v8086_v47 = vcombine.low %v411_v39, %v415_v42  ;;  %v8095_v56 = vcombine.high %v419_v31, %v423_v51  ;;  %v846_v39 = vld [vmem:[#allocation2 + $0x1828] sm:$0xff]  ;;  %v459_v42 = vld [vmem:[#allocation2 + $0xc10] sm:$0xff] }
 0x221   :  { %6268 = vmatpush1.bf16.msra.mxu0 %v8038_v53  ;;  %v8468_v53 = vcombine.low %v794_v36, %v798_v37  ;;  %v842_v37 = vld [vmem:[#allocation2 + $0x1808] sm:$0xff] }
 0x222   :  { %6269 = vmatprep.subr.bf16.mxu0 %v8047_v54  ;;  %v8477_v54 = vcombine.high %v802_v49, %v806_v50 }
 0x223   :  { %6106 = vmatpush1.bf16.msra.mxu1 %v8428_v60  ;;  %v431_v60 = vld [vmem:[#allocation2 + $0xb30] sm:$0xff] }
 0x224   :  { %6107 = vmatprep.subr.bf16.mxu1 %v8437_v1  ;;  %v8094_v1 = vcombine.low %v419_v31, %v423_v51  ;;  %v8103_v3 = vcombine.high %v427_v59, %v431_v60  ;;  %v854_v31 = vld [vmem:[#allocation2 + $0x1868] sm:$0xff]  ;;  %v467_v51 = vld [vmem:[#allocation2 + $0xc50] sm:$0xff] }
 0x225   :  { %6270 = vmatpush1.bf16.msra.mxu0 %v8046_v62  ;;  %v8476_v62 = vcombine.low %v802_v49, %v806_v50  ;;  %v850_v50 = vld [vmem:[#allocation2 + $0x1848] sm:$0xff] }
 0x226   :  { %6271 = vmatprep.subr.bf16.mxu0 %v8055_v2  ;;  %v8485_v2 = vcombine.high %v810_v57, %v814_v58 }
 0x227   :  { %6108 = vmatpush1.bf16.msra.mxu1 %v8436_v9  ;;  %v439_v9 = vld [vmem:[#allocation2 + $0xb70] sm:$0xff] }
 0x228   :  { %6109 = vmatprep.subr.bf16.mxu1 %v8445_v12  ;;  %v8102_v12 = vcombine.low %v427_v59, %v431_v60  ;;  %v8111_v14 = vcombine.high %v435_v8, %v439_v9  ;;  %v862_v59 = vld [vmem:[#allocation2 + $0x18a8] sm:$0xff]  ;;  %v475_v60 = vld [vmem:[#allocation2 + $0xc90] sm:$0xff] }
 0x229   :  { %6272 = vmatpush1.bf16.msra.mxu0 %v8054_v10  ;;  %v8484_v10 = vcombine.low %v810_v57, %v814_v58  ;;  %v858_v58 = vld [vmem:[#allocation2 + $0x1888] sm:$0xff] }
 0x22a   :  { %6273 = vmatprep.subr.bf16.mxu0 %v8063_v13  ;;  %v8493_v13 = vcombine.high %v818_v4, %v822_v6 }
 0x22b   :  { %6110 = vmatpush1.bf16.msra.mxu1 %v8444_v19  ;;  %v447_v19 = vld [vmem:[#allocation2 + $0xbb0] sm:$0xff] }
 0x22c   :  { %6111 = vmatprep.subr.bf16.mxu1 %v8453_v21  ;;  %v8110_v21 = vcombine.low %v435_v8, %v439_v9  ;;  %v8119_v24 = vcombine.high %v443_v18, %v447_v19  ;;  %v870_v8 = vld [vmem:[#allocation2 + $0x18e8] sm:$0xff]  ;;  %v483_v9 = vld [vmem:[#allocation2 + $0xcd0] sm:$0xff] }
 0x22d   :  { %6274 = vmatpush1.bf16.msra.mxu0 %v8062_v20  ;;  %v8492_v20 = vcombine.low %v818_v4, %v822_v6  ;;  %v866_v6 = vld [vmem:[#allocation2 + $0x18c8] sm:$0xff] }
 0x22e   :  { %6275 = vmatprep.subr.bf16.mxu0 %v8071_v22  ;;  %v8501_v22 = vcombine.high %v826_v15, %v830_v17 }
 0x22f   :  { %6112 = vmatpush1.bf16.msra.mxu1 %v8452_v29  ;;  %v455_v29 = vld [vmem:[#allocation2 + $0xbf0] sm:$0xff] }
 0x230   :  { %6113 = vmatprep.subr.bf16.mxu1 %v8461_v34  ;;  %v8118_v34 = vcombine.low %v443_v18, %v447_v19  ;;  %v8127_v36 = vcombine.high %v451_v27, %v455_v29  ;;  %v878_v18 = vld [vmem:[#allocation2 + $0x1928] sm:$0xff]  ;;  %v491_v19 = vld [vmem:[#allocation2 + $0xd10] sm:$0xff] }
 0x231   :  { %6276 = vmatpush1.bf16.msra.mxu0 %v8070_v33  ;;  %v8500_v33 = vcombine.low %v826_v15, %v830_v17  ;;  %v874_v17 = vld [vmem:[#allocation2 + $0x1908] sm:$0xff] }
 0x232   :  { %6277 = vmatprep.subr.bf16.mxu0 %v8079_v35  ;;  %v8509_v35 = vcombine.high %v834_v25, %v838_v26 }
 0x233   :  { %6114 = vmatpush1.bf16.msra.mxu1 %v8460_v44  ;;  %v463_v44 = vld [vmem:[#allocation2 + $0xc30] sm:$0xff] }
 0x234   :  { %6115 = vmatprep.subr.bf16.mxu1 %v8469_v46  ;;  %v8126_v46 = vcombine.low %v451_v27, %v455_v29  ;;  %v8135_v49 = vcombine.high %v459_v42, %v463_v44  ;;  %v882_v27 = vld [vmem:[#allocation2 + $0x1948] sm:$0xff] }
 0x235   :  { %6278 = vmatpush1.bf16.msra.mxu0 %v8078_v45  ;;  %v8508_v45 = vcombine.low %v834_v25, %v838_v26  ;;  %v973_v25 = vsub.s32 0, %v9280_v43  ;;  %v886_v29 = vld [vmem:[#allocation2 + $0x1968] sm:$0xff] }
 0x236   :  { %6279 = vmatprep.subr.bf16.mxu0 %v8087_v48  ;;  %v8517_v48 = vcombine.high %v842_v37, %v846_v39 }
 0x237   :  { %6116 = vmatpush1.bf16.msra.mxu1 %v8468_v53  ;;  %v471_v53 = vld [vmem:[#allocation2 + $0xc70] sm:$0xff] }
 0x238   :  { %6117 = vmatprep.subr.bf16.mxu1 %v8477_v54  ;;  %v8134_v54 = vcombine.low %v459_v42, %v463_v44  ;;  %v8143_v57 = vcombine.high %v467_v51, %v471_v53  ;;  %v8557_v42 = vcombine.high %v882_v27, %v886_v29 }
 0x239   :  { %6280 = vmatpush1.bf16.msra.mxu0 %v8086_v47  ;;  %v8516_v47 = vcombine.low %v842_v37, %v846_v39  ;;  %v8548_v37 = vcombine.low %v874_v17, %v878_v18 }
 0x23a   :  { %6281 = vmatprep.subr.bf16.mxu0 %v8095_v56  ;;  %v8525_v56 = vcombine.high %v850_v50, %v854_v31 }
 0x23b   :  { %6118 = vmatpush1.bf16.msra.mxu1 %v8476_v62  ;;  %v479_v62 = vld [vmem:[#allocation2 + $0xcb0] sm:$0xff] }
 0x23c   :  { %6119 = vmatprep.subr.bf16.mxu1 %v8485_v2  ;;  %v8142_v2 = vcombine.low %v467_v51, %v471_v53  ;;  %v8151_v4 = vcombine.high %v475_v60, %v479_v62  ;;  %v8556_v51 = vcombine.low %v882_v27, %v886_v29 }
 0x23d   :  { %6282 = vmatpush1.bf16.msra.mxu0 %v8094_v1  ;;  %v8524_v1 = vcombine.low %v850_v50, %v854_v31  ;;  %v507_v50 = vld [vmem:[#allocation2 + $0xd90] sm:$0xff] }
 0x23e   :  { %6283 = vmatprep.subr.bf16.mxu0 %v8103_v3  ;;  %v8533_v3 = vcombine.high %v858_v58, %v862_v59  ;;  %v511_v31 = vld [vmem:[#allocation2 + $0xdb0] sm:$0xff] }
 0x23f   :  { %6120 = vmatpush1.bf16.msra.mxu1 %v8484_v10  ;;  %v487_v10 = vld [vmem:[#allocation2 + $0xcf0] sm:$0xff] }
 0x240   :  { %6121 = vmatprep.subr.bf16.mxu1 %v8493_v13  ;;  %v8150_v13 = vcombine.low %v475_v60, %v479_v62  ;;  %v8159_v15 = vcombine.high %v483_v9, %v487_v10  ;;  %v515_v62 = vld [vmem:[#allocation2 + $0xdd0] sm:$0xff] }
 0x241   :  { %6284 = vmatpush1.bf16.msra.mxu0 %v8102_v12  ;;  %v8532_v12 = vcombine.low %v858_v58, %v862_v59  ;;  %v902_v58 = vld [vmem:[#allocation2 + $0x19e8] sm:$0xff] }
 0x242   :  { %6285 = vmatprep.subr.bf16.mxu0 %v8111_v14  ;;  %v8541_v14 = vcombine.high %v866_v6, %v870_v8 }
 0x243   :  { %6122 = vmatpush1.bf16.msra.mxu1 %v8492_v20  ;;  %v495_v20 = vld [vmem:[#allocation2 + $0xd30] sm:$0xff] }
 0x244   :  { %6123 = vmatprep.subr.bf16.mxu1 %v8501_v22  ;;  %v8158_v22 = vcombine.low %v483_v9, %v487_v10  ;;  %v8167_v26 = vcombine.high %v491_v19, %v495_v20  ;;  %v8166_v39 = vcombine.low %v491_v19, %v495_v20 }
 0x245   :  { %6286 = vmatpush1.bf16.msra.mxu0 %v8110_v21  ;;  %v8540_v21 = vcombine.low %v866_v6, %v870_v8 }
 0x246   :  { %6287 = vmatprep.subr.bf16.mxu0 %v8119_v24  ;;  %v8549_v24 = vcombine.high %v874_v17, %v878_v18 }
 0x247   :  { %6124 = vmatpush1.bf16.msra.mxu1 %v8500_v33  ;;  %v969_v33 = vld [vmem:[#allocation4] sm:$0xff] }
 0x248   :  { %6125 = vmatprep.subr.bf16.mxu1 %v8509_v35  ;;  %v499_v35 = vld [vmem:[#allocation2 + $0xd50] sm:$0xff]  ;;  %v974_v44 = vrot.slane %v969_v33, %v973_v25 }
 0x249   :  { %6288 = vmatpush1.bf16.msra.mxu0 %v8118_v34  ;;  %v977_v34 = vsub.s32 1, %v9280_v43 }
 0x24a   :  { %6289 = vmatprep.subr.bf16.mxu0 %v8127_v36  ;;  %v503_v36 = vld [vmem:[#allocation2 + $0xd70] sm:$0xff] }
 0x24b   :  { %6126 = vmatpush1.bf16.msra.mxu1 %v8508_v45  ;;  %v8175_v45 = vcombine.high %v499_v35, %v503_v36  ;;  %v8174_v53 = vcombine.low %v499_v35, %v503_v36  ;;  %v922_v36 = vld [vmem:[#allocation2 + $0x1a88] sm:$0xff] }
 0x24c   :  { %6136 = vmatprep.subr.bf16.mxu1 %v8517_v48  ;;  %v894_v48 = vld [vmem:[#allocation2 + $0x19a8] sm:$0xff] }
 0x24d   :  { %6290 = vmatpush1.bf16.msra.mxu0 %v8126_v46  ;;  %v890_v46 = vld [vmem:[#allocation2 + $0x1988] sm:$0xff] }
 0x24e   :  { %6300 = vmatprep.subr.bf16.mxu0 %v8135_v49  ;;  %6128 = vmatmul.mubr.bf16.vlgmr.msra.gmra.mrb[4].mxu1 %v9373_v0  ;;  %v978_v49 = vrot.slane %v969_v33, %v977_v34 }
 0x24f   :  { %6137 = vmatpush1.bf16.msra.mxu1 %v8516_v47  ;;  %6168 = vmatprep.mubr.bf16.mxu1 %v9376_v7  ;;  %v8565_v47 = vcombine.high %v890_v46, %v894_v48 }
 0x250   :  { %6292 = vmatmul.mubr.bf16.vlgmr.msra.gmra.mrb[4].mxu0 %v9312_v32  ;;  %6138 = vmatprep.subr.bf16.mxu1 %v8525_v56  ;;  %v8183_v56 = vcombine.high %v507_v50, %v511_v31  ;;  %v8773_v59 = vadd.f32 %v9392_v38, %v978_v49  ;;  %v910_v38 = vld [vmem:[#allocation2 + $0x1a28] sm:$0xff] }
 0x251   :  { %6301 = vmatpush1.bf16.msra.mxu0 %v8134_v54  ;;  %6332 = vmatprep.mubr.bf16.mxu0 %v9321_v5  ;;  %v8771_v54 = vadd.f32 %v9390_v41, %v974_v44  ;;  %v8182_v41 = vcombine.low %v507_v50, %v511_v31  ;;  %v930_v49 = vld [vmem:[#allocation2 + $0x1ac8] sm:$0xff]  ;;  %v547_v31 = vld [vmem:[#allocation2 + $0xed0] sm:$0xff] }
 0x252   :  { %6302 = vmatprep.subr.bf16.mxu0 %v8143_v57  ;;  %v898_v57 = vld [vmem:[#allocation2 + $0x19c8] sm:$0xff] }
 0x253   :  { %6139 = vmatpush1.bf16.msra.mxu1 %v8524_v1  ;;  %v519_v1 = vld [vmem:[#allocation2 + $0xdf0] sm:$0xff]  ;;  %v8573_v9 = vcombine.high %v898_v57, %v902_v58  ;;  %v8572_v17 = vcombine.low %v898_v57, %v902_v58  ;;  %v934_v50 = vld [vmem:[#allocation2 + $0x1ae8] sm:$0xff] }
 0x254   :  { %6140 = vmatprep.subr.bf16.mxu1 %v8533_v3  ;;  %v8190_v18 = vcombine.low %v515_v62, %v519_v1  ;;  %v938_v57 = vld [vmem:[#allocation2 + $0x1b08] sm:$0xff] }
 0x255   :  { %6303 = vmatpush1.bf16.msra.mxu0 %v8142_v2  ;;  %v942_v58 = vld [vmem:[#allocation2 + $0x1b28] sm:$0xff] }
 0x256   :  { %6304 = vmatprep.subr.bf16.mxu0 %v8151_v4  ;;  %v8564_v4 = vcombine.low %v890_v46, %v894_v48 }
 0x257   :  { %6141 = vmatpush1.bf16.msra.mxu1 %v8532_v12  ;;  %v8191_v12 = vcombine.high %v515_v62, %v519_v1  ;;  %v8604_v62 = vcombine.low %v930_v49, %v934_v50 }
 0x258   :  { %6142 = vmatprep.subr.bf16.mxu1 %v8541_v14  ;;  %v523_v14 = vld [vmem:[#allocation2 + $0xe10] sm:$0xff] }
 0x259   :  { %6305 = vmatpush1.bf16.msra.mxu0 %v8150_v13  ;;  %v906_v13 = vld [vmem:[#allocation2 + $0x1a08] sm:$0xff] }
 0x25a   :  { %6306 = vmatprep.subr.bf16.mxu0 %v8159_v15  ;;  %v527_v15 = vld [vmem:[#allocation2 + $0xe30] sm:$0xff]  ;;  %v8581_v19 = vcombine.high %v906_v13, %v910_v38  ;;  %v8580_v27 = vcombine.low %v906_v13, %v910_v38 }
 0x25b   :  { %6143 = vmatpush1.bf16.msra.mxu1 %v8540_v21  ;;  %v8199_v20 = vcombine.high %v523_v14, %v527_v15  ;;  %v914_v21 = vld [vmem:[#allocation2 + $0x1a48] sm:$0xff]  ;;  %v8198_v29 = vcombine.low %v523_v14, %v527_v15 }
 0x25c   :  { %6144 = vmatprep.subr.bf16.mxu1 %v8549_v24  ;;  %v531_v24 = vld [vmem:[#allocation2 + $0xe50] sm:$0xff]  ;;  %v954_v15 = vld [vmem:[#allocation2 + $0x1b88] sm:$0xff] }
 0x25d   :  { %6307 = vmatpush1.bf16.msra.mxu0 %v8158_v22  ;;  %v918_v22 = vld [vmem:[#allocation2 + $0x1a68] sm:$0xff] }
 0x25e   :  { %6308 = vmatprep.subr.bf16.mxu0 %v8167_v26  ;;  %v535_v26 = vld [vmem:[#allocation2 + $0xe70] sm:$0xff]  ;;  %v8589_v33 = vcombine.high %v914_v21, %v918_v22  ;;  %v8588_v44 = vcombine.low %v914_v21, %v918_v22 }
 0x25f   :  { %6145 = vmatpush1.bf16.msra.mxu1 %v8548_v37  ;;  %v8207_v35 = vcombine.high %v531_v24, %v535_v26  ;;  %v926_v37 = vld [vmem:[#allocation2 + $0x1aa8] sm:$0xff] }
 0x260   :  { %6146 = vmatprep.subr.bf16.mxu1 %v8557_v42  ;;  %v543_v42 = vld [vmem:[#allocation2 + $0xeb0] sm:$0xff]  ;;  %v8597_v46 = vcombine.high %v922_v36, %v926_v37 }
 0x261   :  { %6309 = vmatpush1.bf16.msra.mxu0 %v8166_v39  ;;  %v539_v39 = vld [vmem:[#allocation2 + $0xe90] sm:$0xff] }
 0x262   :  { %6310 = vmatprep.subr.bf16.mxu0 %v8175_v45  ;;  %v8206_v45 = vcombine.low %v531_v24, %v535_v26  ;;  %v8215_v48 = vcombine.high %v539_v39, %v543_v42  ;;  %v962_v26 = vld [vmem:[#allocation2 + $0x1bc8] sm:$0xff] }
 0x263   :  { %v5883_v60 = vpop.f32.mrb[0].mxu0  ;;  %6147 = vmatpush1.bf16.msra.mxu1 %v8556_v51  ;;  %v551_v51 = vld [vmem:[#allocation2 + $0xef0] sm:$0xff] }
 0x264   :  { %v9414_v2 = vadd.f32 %v8771_v54, %v5883_v60  ;;  %v5885_v3 = vpop.f32.mrb[1].mxu0  ;;  %6148 = vmatprep.subr.bf16.mxu1 %v8565_v47  ;;  %v8214_v47 = vcombine.low %v539_v39, %v543_v42  ;;  %v8605_v54 = vcombine.high %v930_v49, %v934_v50  ;;  %v559_v60 = vld [vmem:[#allocation2 + $0xf30] sm:$0xff]  ;;  %v8222_v1 = vcombine.low %v547_v31, %v551_v51  ;;  %v76_v42 = vld [vmem:[#allocation2 + $0x18] sm:$0xff] }
 0x265   :  { %v9416_v6 = vadd.f32 %v8773_v59, %v5885_v3  ;;  %v5887_v8 = vpop.f32.mrb[2].mxu0  ;;  %6311 = vmatpush1.bf16.msra.mxu0 %v8174_v53  ;;  %v8596_v53 = vcombine.low %v922_v36, %v926_v37  ;;  %v555_v59 = vld [vmem:[#allocation2 + $0xf10] sm:$0xff]  ;;  %v8613_v3 = vcombine.high %v938_v57, %v942_v58 }
 0x266   :  { %v5888_v10 = vpop.f32.mrb[3].mxu0  ;;  %6312 = vmatprep.subr.bf16.mxu0 %v8183_v56  ;;  %v8223_v56 = vcombine.high %v547_v31, %v551_v51  ;;  %v946_v8 = vld [vmem:[#allocation2 + $0x1b48] sm:$0xff]  ;;  %v8230_v13 = vcombine.low %v555_v59, %v559_v60  ;;  %v84_v51 = vld [vmem:[#allocation2 + $0x58] sm:$0xff]  ;;  %vm6751_vm1 = vcmp.ge.f32.partialorder %v9414_v2, 0.0 }
 0x267   :  { %6149 = vmatpush1.bf16.msra.mxu1 %v8564_v4  ;;  %v8231_v4 = vcombine.high %v555_v59, %v559_v60  ;;  %v567_v10 = vld [vmem:[#allocation2 + $0xf70] sm:$0xff]  ;;  %v92_v60 = vld [vmem:[#allocation2 + $0x98] sm:$0xff]  ;;  %vm6752_vm0 = vcmp.ge.f32.partialorder %v9416_v6, 0.0 }
 0x268   :  { %6150 = vmatprep.subr.bf16.mxu1 %v8573_v9  ;;  %v563_v9 = vld [vmem:[#allocation2 + $0xf50] sm:$0xff] }
 0x269   :  { %6313 = vmatpush1.bf16.msra.mxu0 %v8182_v41  ;;  %v950_v41 = vld [vmem:[#allocation2 + $0x1b68] sm:$0xff]  ;;  %v8239_v14 = vcombine.high %v563_v9, %v567_v10  ;;  %v8238_v21 = vcombine.low %v563_v9, %v567_v10  ;;  %v100_v10 = vld [vmem:[#allocation2 + $0xd8] sm:$0xff] }
 0x26a   :  { %6314 = vmatprep.subr.bf16.mxu0 %v8191_v12  ;;  %v8612_v12 = vcombine.low %v938_v57, %v942_v58  ;;  %v8621_v38 = vcombine.high %v946_v8, %v950_v41 }
 0x26b   :  { %6151 = vmatpush1.bf16.msra.mxu1 %v8572_v17  ;;  %v958_v17 = vld [vmem:[#allocation2 + $0x1ba8] sm:$0xff] }
 0x26c   :  { %6152 = vmatprep.subr.bf16.mxu1 %v8581_v19  ;;  %v575_v19 = vld [vmem:[#allocation2 + $0xfb0] sm:$0xff]  ;;  %v8629_v22 = vcombine.high %v954_v15, %v958_v17 }
 0x26d   :  { %6315 = vmatpush1.bf16.msra.mxu0 %v8190_v18  ;;  %v571_v18 = vld [vmem:[#allocation2 + $0xf90] sm:$0xff] }
 0x26e   :  { %6316 = vmatprep.subr.bf16.mxu0 %v8199_v20  ;;  %v8620_v20 = vcombine.low %v946_v8, %v950_v41  ;;  %v8247_v24 = vcombine.high %v571_v18, %v575_v19  ;;  %v8246_v36 = vcombine.low %v571_v18, %v575_v19  ;;  %v108_v19 = vld [vmem:[#allocation2 + $0x118] sm:$0xff] }
 0x26f   :  { %6153 = vmatpush1.bf16.msra.mxu1 %v8580_v27  ;;  %v966_v27 = vld [vmem:[#allocation2 + $0x1be8] sm:$0xff] }
 0x270   :  { %6154 = vmatprep.subr.bf16.mxu1 %v8589_v33  ;;  %v583_v33 = vld [vmem:[#allocation2 + $0xff0] sm:$0xff]  ;;  %v8637_v37 = vcombine.high %v962_v26, %v966_v27 }
 0x271   :  { %6317 = vmatpush1.bf16.msra.mxu0 %v8198_v29  ;;  %v579_v29 = vld [vmem:[#allocation2 + $0xfd0] sm:$0xff] }
 0x272   :  { %6318 = vmatprep.subr.bf16.mxu0 %v8207_v35  ;;  %v8628_v35 = vcombine.low %v954_v15, %v958_v17  ;;  %v8255_v39 = vcombine.high %v579_v29, %v583_v33  ;;  %v8254_v49 = vcombine.low %v579_v29, %v583_v33  ;;  %v116_v29 = vld [vmem:[#allocation2 + $0x158] sm:$0xff] }
 0x273   :  { %6155 = vmatpush1.bf16.msra.mxu1 %v8588_v44  ;;  %v80_v44 = vld [vmem:[#allocation2 + $0x38] sm:$0xff] }
 0x274   :  { %6156 = vmatprep.subr.bf16.mxu1 %v8597_v46  ;;  %v591_v46 = vld [vmem:[#allocation2 + $0x1030] sm:$0xff]  ;;  %v7753_v50 = vcombine.high %v76_v42, %v80_v44  ;;  %v120_v33 = vld [vmem:[#allocation2 + $0x178] sm:$0xff] }
 0x275   :  { %6319 = vmatpush1.bf16.msra.mxu0 %v8206_v45  ;;  %v587_v45 = vld [vmem:[#allocation2 + $0x1010] sm:$0xff] }
 0x276   :  { %6320 = vmatprep.subr.bf16.mxu0 %v8215_v48  ;;  %v8636_v48 = vcombine.low %v962_v26, %v966_v27  ;;  %v8263_v31 = vcombine.high %v587_v45, %v591_v46  ;;  %v8262_v57 = vcombine.low %v587_v45, %v591_v46  ;;  %v124_v45 = vld [vmem:[#allocation2 + $0x198] sm:$0xff] }
 0x277   :  { %6157 = vmatpush1.bf16.msra.mxu1 %v8596_v53  ;;  %v88_v53 = vld [vmem:[#allocation2 + $0x78] sm:$0xff] }
 0x278   :  { %6158 = vmatprep.subr.bf16.mxu1 %v8605_v54  ;;  %v599_v54 = vld [vmem:[#allocation2 + $0x1070] sm:$0xff]  ;;  %v7761_v58 = vcombine.high %v84_v51, %v88_v53  ;;  %v128_v46 = vld [vmem:[#allocation2 + $0x1b8] sm:$0xff] }
 0x279   :  { %6321 = vmatpush1.bf16.msra.mxu0 %v8214_v47  ;;  %v595_v47 = vld [vmem:[#allocation2 + $0x1050] sm:$0xff] }
 0x27a   :  { %6322 = vmatprep.subr.bf16.mxu0 %v8223_v56  ;;  %v7752_v56 = vcombine.low %v76_v42, %v80_v44  ;;  %v8271_v59 = vcombine.high %v595_v47, %v599_v54  ;;  %v8270_v8 = vcombine.low %v595_v47, %v599_v54  ;;  %v7793_v42 = vcombine.high %v116_v29, %v120_v33  ;;  %v132_v47 = vld [vmem:[#allocation2 + $0x1d8] sm:$0xff] }
 0x27b   :  { %6159 = vmatpush1.bf16.msra.mxu1 %v8604_v62  ;;  %v96_v62 = vld [vmem:[#allocation2 + $0xb8] sm:$0xff] }
 0x27c   :  { %6160 = vmatprep.subr.bf16.mxu1 %v8613_v3  ;;  %v607_v3 = vld [vmem:[#allocation2 + $0x10b0] sm:$0xff]  ;;  %v7769_v41 = vcombine.high %v92_v60, %v96_v62  ;;  %v136_v54 = vld [vmem:[#allocation2 + $0x1f8] sm:$0xff] }
 0x27d   :  { %6323 = vmatpush1.bf16.msra.mxu0 %v8222_v1  ;;  %v603_v1 = vld [vmem:[#allocation2 + $0x1090] sm:$0xff] }
 0x27e   :  { %6324 = vmatprep.subr.bf16.mxu0 %v8231_v4  ;;  %v7760_v4 = vcombine.low %v84_v51, %v88_v53  ;;  %v8279_v9 = vcombine.high %v603_v1, %v607_v3  ;;  %v8278_v15 = vcombine.low %v603_v1, %v607_v3  ;;  %v7801_v51 = vcombine.high %v124_v45, %v128_v46  ;;  %v140_v1 = vld [vmem:[#allocation2 + $0x218] sm:$0xff] }
 0x27f   :  { %6161 = vmatpush1.bf16.msra.mxu1 %v8612_v12  ;;  %v104_v12 = vld [vmem:[#allocation2 + $0xf8] sm:$0xff] }
 0x280   :  { %6162 = vmatprep.subr.bf16.mxu1 %v8621_v38  ;;  %v615_v38 = vld [vmem:[#allocation2 + $0x10f0] sm:$0xff]  ;;  %v7777_v17 = vcombine.high %v100_v10, %v104_v12  ;;  %v144_v3 = vld [vmem:[#allocation2 + $0x238] sm:$0xff] }
 0x281   :  { %6325 = vmatpush1.bf16.msra.mxu0 %v8230_v13  ;;  %v611_v13 = vld [vmem:[#allocation2 + $0x10d0] sm:$0xff] }
 0x282   :  { %6326 = vmatprep.subr.bf16.mxu0 %v8239_v14  ;;  %v7768_v14 = vcombine.low %v92_v60, %v96_v62  ;;  %v8287_v18 = vcombine.high %v611_v13, %v615_v38  ;;  %v8286_v26 = vcombine.low %v611_v13, %v615_v38  ;;  %v7809_v60 = vcombine.high %v132_v47, %v136_v54  ;;  %v148_v13 = vld [vmem:[#allocation2 + $0x258] sm:$0xff] }
 0x283   :  { %6163 = vmatpush1.bf16.msra.mxu1 %v8620_v20  ;;  %v112_v20 = vld [vmem:[#allocation2 + $0x138] sm:$0xff] }
 0x284   :  { %6164 = vmatprep.subr.bf16.mxu1 %v8629_v22  ;;  %v623_v22 = vld [vmem:[#allocation2 + $0x1130] sm:$0xff]  ;;  %v7785_v27 = vcombine.high %v108_v19, %v112_v20  ;;  %v152_v38 = vld [vmem:[#allocation2 + $0x278] sm:$0xff] }
 0x285   :  { %6327 = vmatpush1.bf16.msra.mxu0 %v8238_v21  ;;  %v619_v21 = vld [vmem:[#allocation2 + $0x1110] sm:$0xff] }
 0x286   :  { %6328 = vmatprep.subr.bf16.mxu0 %v8247_v24  ;;  %v7776_v24 = vcombine.low %v100_v10, %v104_v12  ;;  %v7817_v10 = vcombine.high %v140_v1, %v144_v3 }
 0x287   :  { %6165 = vmatpush1.bf16.msra.mxu1 %v8628_v35  ;;  %v627_v35 = vld [vmem:[#allocation2 + $0x1150] sm:$0xff] }
 0x288   :  { %6166 = vmatprep.subr.bf16.mxu1 %v8637_v37  ;;  %v7784_v37 = vcombine.low %v108_v19, %v112_v20  ;;  %v7825_v19 = vcombine.high %v148_v13, %v152_v38 }
 0x289   :  { %6329 = vmatpush1.bf16.msra.mxu0 %v8246_v36  ;;  %v631_v36 = vld [vmem:[#allocation2 + $0x1170] sm:$0xff] }
 0x28a   :  { %6330 = vmatprep.subr.bf16.mxu0 %v8255_v39  ;;  %v8294_v39 = vcombine.low %v619_v21, %v623_v22  ;;  %v8303_v44 = vcombine.high %v627_v35, %v631_v36 }
 0x28b   :  { %6167 = vmatpush1.bf16.msra.mxu1 %v8636_v48  ;;  %v635_v48 = vld [vmem:[#allocation2 + $0x1190] sm:$0xff] }
 0x28c   :  { %6464 = vmatprep.subr.bf16.mxu1 %v7753_v50  ;;  %v7792_v50 = vcombine.low %v116_v29, %v120_v33 }
 0x28d   :  { %6331 = vmatpush1.bf16.msra.mxu0 %v8254_v49  ;;  %v639_v49 = vld [vmem:[#allocation2 + $0x11b0] sm:$0xff] }
 0x28e   :  { %6341 = vmatprep.subr.bf16.mxu0 %v8263_v31  ;;  %6169 = vmatmul.mubr.bf16.vlgmr.msra.gmra.mrb[4].mxu1 %v9384_v40  ;;  %v8302_v31 = vcombine.low %v627_v35, %v631_v36  ;;  %v8311_v53 = vcombine.high %v635_v48, %v639_v49  ;;  %v164_v35 = vld [vmem:[#allocation2 + $0x2d8] sm:$0xff] }
 0x28f   :  { %6465 = vmatpush1.bf16.msra.mxu1 %v7752_v56  ;;  %6496 = vmatprep.mubr.bf16.mxu1 %v9297_v11  ;;  %v8295_v11 = vcombine.high %v619_v21, %v623_v22  ;;  %v643_v56 = vld [vmem:[#allocation2 + $0x11d0] sm:$0xff]  ;;  %v156_v21 = vld [vmem:[#allocation2 + $0x298] sm:$0xff] }
 0x290   :  { %6333 = vmatmul.mubr.bf16.vlgmr.msra.gmra.mrb[4].mxu0 %v9343_v55  ;;  %6466 = vmatprep.subr.bf16.mxu1 %v7761_v58  ;;  %v7800_v58 = vcombine.low %v124_v45, %v128_v46  ;;  %v160_v22 = vld [vmem:[#allocation2 + $0x2b8] sm:$0xff] }
 0x291   :  { %6342 = vmatpush1.bf16.msra.mxu0 %v8262_v57  ;;  %6373 = vmatprep.mubr.bf16.mxu0 %v9346_v61  ;;  %v647_v57 = vld [vmem:[#allocation2 + $0x11f0] sm:$0xff]  ;;  %v7833_v29 = vcombine.high %v156_v21, %v160_v22  ;;  %v168_v36 = vld [vmem:[#allocation2 + $0x2f8] sm:$0xff] }
 0x292   :  { %6343 = vmatprep.subr.bf16.mxu0 %v8271_v59  ;;  %v8310_v59 = vcombine.low %v635_v48, %v639_v49  ;;  %v8319_v62 = vcombine.high %v643_v56, %v647_v57  ;;  %v7841_v45 = vcombine.high %v164_v35, %v168_v36  ;;  %v172_v48 = vld [vmem:[#allocation2 + $0x318] sm:$0xff] }
 0x293   :  { %6467 = vmatpush1.bf16.msra.mxu1 %v7760_v4  ;;  %v651_v4 = vld [vmem:[#allocation2 + $0x1210] sm:$0xff]  ;;  %v176_v49 = vld [vmem:[#allocation2 + $0x338] sm:$0xff] }
 0x294   :  { %6468 = vmatprep.subr.bf16.mxu1 %v7769_v41  ;;  %v7808_v41 = vcombine.low %v132_v47, %v136_v54  ;;  %v7849_v47 = vcombine.high %v172_v48, %v176_v49 }
 0x295   :  { %6344 = vmatpush1.bf16.msra.mxu0 %v8270_v8  ;;  %v655_v8 = vld [vmem:[#allocation2 + $0x1230] sm:$0xff] }
 0x296   :  { %6345 = vmatprep.subr.bf16.mxu0 %v8279_v9  ;;  %v8318_v9 = vcombine.low %v643_v56, %v647_v57  ;;  %v8327_v12 = vcombine.high %v651_v4, %v655_v8  ;;  %v180_v56 = vld [vmem:[#allocation2 + $0x358] sm:$0xff] }
 0x297   :  { %6469 = vmatpush1.bf16.msra.mxu1 %v7768_v14  ;;  %v659_v14 = vld [vmem:[#allocation2 + $0x1250] sm:$0xff]  ;;  %v184_v57 = vld [vmem:[#allocation2 + $0x378] sm:$0xff] }
 0x298   :  { %6470 = vmatprep.subr.bf16.mxu1 %v7777_v17  ;;  %v7816_v17 = vcombine.low %v140_v1, %v144_v3  ;;  %v7857_v1 = vcombine.high %v180_v56, %v184_v57 }
 0x299   :  { %6346 = vmatpush1.bf16.msra.mxu0 %v8278_v15  ;;  %v663_v15 = vld [vmem:[#allocation2 + $0x1270] sm:$0xff] }
 0x29a   :  { %6347 = vmatprep.subr.bf16.mxu0 %v8287_v18  ;;  %v8326_v18 = vcombine.low %v651_v4, %v655_v8  ;;  %v8335_v20 = vcombine.high %v659_v14, %v663_v15  ;;  %v188_v4 = vld [vmem:[#allocation2 + $0x398] sm:$0xff] }
 0x29b   :  { %6471 = vmatpush1.bf16.msra.mxu1 %v7776_v24  ;;  %v667_v24 = vld [vmem:[#allocation2 + $0x1290] sm:$0xff]  ;;  %v192_v8 = vld [vmem:[#allocation2 + $0x3b8] sm:$0xff] }
 0x29c   :  { %6472 = vmatprep.subr.bf16.mxu1 %v7785_v27  ;;  %v7824_v27 = vcombine.low %v148_v13, %v152_v38  ;;  %v7865_v13 = vcombine.high %v188_v4, %v192_v8 }
 0x29d   :  { %6348 = vmatpush1.bf16.msra.mxu0 %v8286_v26  ;;  %v671_v26 = vld [vmem:[#allocation2 + $0x12b0] sm:$0xff] }
 0x29e   :  { %6349 = vmatprep.subr.bf16.mxu0 %v8295_v11  ;;  %v8334_v11 = vcombine.low %v659_v14, %v663_v15  ;;  %v8343_v33 = vcombine.high %v667_v24, %v671_v26  ;;  %v196_v14 = vld [vmem:[#allocation2 + $0x3d8] sm:$0xff] }
 0x29f   :  { %6473 = vmatpush1.bf16.msra.mxu1 %v7784_v37  ;;  %v675_v37 = vld [vmem:[#allocation2 + $0x12d0] sm:$0xff]  ;;  %v200_v15 = vld [vmem:[#allocation2 + $0x3f8] sm:$0xff] }
 0x2a0   :  { %6474 = vmatprep.subr.bf16.mxu1 %v7793_v42  ;;  %v7832_v42 = vcombine.low %v156_v21, %v160_v22  ;;  %v7873_v21 = vcombine.high %v196_v14, %v200_v15 }
 0x2a1   :  { %6350 = vmatpush1.bf16.msra.mxu0 %v8294_v39  ;;  %v679_v39 = vld [vmem:[#allocation2 + $0x12f0] sm:$0xff] }
 0x2a2   :  { %6351 = vmatprep.subr.bf16.mxu0 %v8303_v44  ;;  %v8342_v44 = vcombine.low %v667_v24, %v671_v26  ;;  %v8351_v46 = vcombine.high %v675_v37, %v679_v39  ;;  %v204_v24 = vld [vmem:[#allocation2 + $0x418] sm:$0xff] }
 0x2a3   :  { %6475 = vmatpush1.bf16.msra.mxu1 %v7792_v50  ;;  %v683_v50 = vld [vmem:[#allocation2 + $0x1310] sm:$0xff]  ;;  %v208_v26 = vld [vmem:[#allocation2 + $0x438] sm:$0xff] }
 0x2a4   :  { %6476 = vmatprep.subr.bf16.mxu1 %v7801_v51  ;;  %v7840_v51 = vcombine.low %v164_v35, %v168_v36  ;;  %v7881_v35 = vcombine.high %v204_v24, %v208_v26 }
 0x2a5   :  { %6352 = vmatpush1.bf16.msra.mxu0 %v8302_v31  ;;  %v687_v31 = vld [vmem:[#allocation2 + $0x1330] sm:$0xff] }
 0x2a6   :  { %6353 = vmatprep.subr.bf16.mxu0 %v8311_v53  ;;  %v8350_v53 = vcombine.low %v675_v37, %v679_v39  ;;  %v8359_v54 = vcombine.high %v683_v50, %v687_v31  ;;  %v212_v37 = vld [vmem:[#allocation2 + $0x458] sm:$0xff] }
 0x2a7   :  { %6477 = vmatpush1.bf16.msra.mxu1 %v7800_v58  ;;  %v691_v58 = vld [vmem:[#allocation2 + $0x1350] sm:$0xff]  ;;  %v216_v39 = vld [vmem:[#allocation2 + $0x478] sm:$0xff] }
 0x2a8   :  { %6478 = vmatprep.subr.bf16.mxu1 %v7809_v60  ;;  %v7848_v60 = vcombine.low %v172_v48, %v176_v49  ;;  %v7889_v48 = vcombine.high %v212_v37, %v216_v39 }
 0x2a9   :  { %6354 = vmatpush1.bf16.msra.mxu0 %v8310_v59  ;;  %v695_v59 = vld [vmem:[#allocation2 + $0x1370] sm:$0xff] }
 0x2aa   :  { %6355 = vmatprep.subr.bf16.mxu0 %v8319_v62  ;;  %v8358_v62 = vcombine.low %v683_v50, %v687_v31  ;;  %v8367_v3 = vcombine.high %v691_v58, %v695_v59  ;;  %v220_v50 = vld [vmem:[#allocation2 + $0x498] sm:$0xff] }
 0x2ab   :  { %6479 = vmatpush1.bf16.msra.mxu1 %v7808_v41  ;;  %v699_v41 = vld [vmem:[#allocation2 + $0x1390] sm:$0xff]  ;;  %v224_v31 = vld [vmem:[#allocation2 + $0x4b8] sm:$0xff] }
 0x2ac   :  { %6480 = vmatprep.subr.bf16.mxu1 %v7817_v10  ;;  %v7856_v10 = vcombine.low %v180_v56, %v184_v57  ;;  %v7897_v56 = vcombine.high %v220_v50, %v224_v31 }
 0x2ad   :  { %6356 = vmatpush1.bf16.msra.mxu0 %v8318_v9  ;;  %v703_v9 = vld [vmem:[#allocation2 + $0x13b0] sm:$0xff] }
 0x2ae   :  { %6357 = vmatprep.subr.bf16.mxu0 %v8327_v12  ;;  %v8366_v12 = vcombine.low %v691_v58, %v695_v59  ;;  %v8375_v38 = vcombine.high %v699_v41, %v703_v9  ;;  %v228_v58 = vld [vmem:[#allocation2 + $0x4d8] sm:$0xff] }
 0x2af   :  { %6481 = vmatpush1.bf16.msra.mxu1 %v7816_v17  ;;  %v707_v17 = vld [vmem:[#allocation2 + $0x13d0] sm:$0xff]  ;;  %v232_v59 = vld [vmem:[#allocation2 + $0x4f8] sm:$0xff] }
 0x2b0   :  { %6482 = vmatprep.subr.bf16.mxu1 %v7825_v19  ;;  %v7864_v19 = vcombine.low %v188_v4, %v192_v8  ;;  %v236_v8 = vld [vmem:[#allocation2 + $0x518] sm:$0xff] }
 0x2b1   :  { %6358 = vmatpush1.bf16.msra.mxu0 %v8326_v18  ;;  %v711_v18 = vld [vmem:[#allocation2 + $0x13f0] sm:$0xff] }
 0x2b2   :  { %6359 = vmatprep.subr.bf16.mxu0 %v8335_v20  ;;  %v8374_v20 = vcombine.low %v699_v41, %v703_v9  ;;  %v8383_v22 = vcombine.high %v707_v17, %v711_v18  ;;  %v240_v41 = vld [vmem:[#allocation2 + $0x538] sm:$0xff]  ;;  %v747_v9 = vld [vmem:[#allocation2 + $0x1510] sm:$0xff] }
 0x2b3   :  { %6483 = vmatpush1.bf16.msra.mxu1 %v7824_v27  ;;  %v715_v27 = vld [vmem:[#allocation2 + $0x1410] sm:$0xff] }
 0x2b4   :  { %6484 = vmatprep.subr.bf16.mxu1 %v7833_v29  ;;  %v7872_v29 = vcombine.low %v196_v14, %v200_v15  ;;  %v244_v14 = vld [vmem:[#allocation2 + $0x558] sm:$0xff] }
 0x2b5   :  { %6360 = vmatpush1.bf16.msra.mxu0 %v8334_v11  ;;  %v719_v11 = vld [vmem:[#allocation2 + $0x1430] sm:$0xff]  ;;  %v248_v15 = vld [vmem:[#allocation2 + $0x578] sm:$0xff] }
 0x2b6   :  { %6361 = vmatprep.subr.bf16.mxu0 %v8343_v33  ;;  %v8382_v33 = vcombine.low %v707_v17, %v711_v18  ;;  %v8391_v36 = vcombine.high %v715_v27, %v719_v11  ;;  %v755_v17 = vld [vmem:[#allocation2 + $0x1550] sm:$0xff] }
 0x2b7   :  { %6485 = vmatpush1.bf16.msra.mxu1 %v7832_v42  ;;  %v723_v42 = vld [vmem:[#allocation2 + $0x1450] sm:$0xff] }
 0x2b8   :  { %6486 = vmatprep.subr.bf16.mxu1 %v7841_v45  ;;  %v7880_v45 = vcombine.low %v204_v24, %v208_v26  ;;  %v759_v18 = vld [vmem:[#allocation2 + $0x1570] sm:$0xff]  ;;  %v252_v24 = vld [vmem:[#allocation2 + $0x598] sm:$0xff] }
 0x2b9   :  { %6362 = vmatpush1.bf16.msra.mxu0 %v8342_v44  ;;  %v727_v44 = vld [vmem:[#allocation2 + $0x1470] sm:$0xff]  ;;  %v256_v26 = vld [vmem:[#allocation2 + $0x5b8] sm:$0xff] }
 0x2ba   :  { %6363 = vmatprep.subr.bf16.mxu0 %v8351_v46  ;;  %v8390_v46 = vcombine.low %v715_v27, %v719_v11  ;;  %v8399_v49 = vcombine.high %v723_v42, %v727_v44  ;;  %v763_v27 = vld [vmem:[#allocation2 + $0x1590] sm:$0xff] }
 0x2bb   :  { %6487 = vmatpush1.bf16.msra.mxu1 %v7840_v51  ;;  %v731_v51 = vld [vmem:[#allocation2 + $0x1490] sm:$0xff] }
 0x2bc   :  { %6488 = vmatprep.subr.bf16.mxu1 %v7849_v47  ;;  %v7888_v47 = vcombine.low %v212_v37, %v216_v39  ;;  %v767_v11 = vld [vmem:[#allocation2 + $0x15b0] sm:$0xff]  ;;  %v260_v37 = vld [vmem:[#allocation2 + $0x5d8] sm:$0xff] }
 0x2bd   :  { %6364 = vmatpush1.bf16.msra.mxu0 %v8350_v53  ;;  %v735_v53 = vld [vmem:[#allocation2 + $0x14b0] sm:$0xff]  ;;  %v264_v39 = vld [vmem:[#allocation2 + $0x5f8] sm:$0xff] }
 0x2be   :  { %6365 = vmatprep.subr.bf16.mxu0 %v8359_v54  ;;  %v8398_v54 = vcombine.low %v723_v42, %v727_v44  ;;  %v8407_v57 = vcombine.high %v731_v51, %v735_v53  ;;  %v771_v42 = vld [vmem:[#allocation2 + $0x15d0] sm:$0xff] }
 0x2bf   :  { %6489 = vmatpush1.bf16.msra.mxu1 %v7848_v60  ;;  %v739_v60 = vld [vmem:[#allocation2 + $0x14d0] sm:$0xff] }
 0x2c0   :  { %6490 = vmatprep.subr.bf16.mxu1 %v7857_v1  ;;  %v8406_v1 = vcombine.low %v731_v51, %v735_v53  ;;  %v775_v44 = vld [vmem:[#allocation2 + $0x15f0] sm:$0xff] }
 0x2c1   :  { %6366 = vmatpush1.bf16.msra.mxu0 %v8358_v62  ;;  %v743_v62 = vld [vmem:[#allocation2 + $0x14f0] sm:$0xff] }
 0x2c2   :  { %6367 = vmatprep.subr.bf16.mxu0 %v8367_v3  ;;  %v7905_v3 = vcombine.high %v228_v58, %v232_v59  ;;  %v8415_v4 = vcombine.high %v739_v60, %v743_v62  ;;  %v779_v51 = vld [vmem:[#allocation2 + $0x1610] sm:$0xff] }
 0x2c3   :  { %6491 = vmatpush1.bf16.msra.mxu1 %v7856_v10  ;;  %v751_v10 = vld [vmem:[#allocation2 + $0x1530] sm:$0xff] }
 0x2c4   :  { %6492 = vmatprep.subr.bf16.mxu1 %v7865_v13  ;;  %v8414_v13 = vcombine.low %v739_v60, %v743_v62  ;;  %v783_v53 = vld [vmem:[#allocation2 + $0x1630] sm:$0xff] }
 0x2c5   :  { %6368 = vmatpush1.bf16.msra.mxu0 %v8366_v12  ;;  %v7904_v12 = vcombine.low %v228_v58, %v232_v59  ;;  %v276_v58 = vld [vmem:[#allocation2 + $0x658] sm:$0xff]  ;;  %v787_v60 = vld [vmem:[#allocation2 + $0x1650] sm:$0xff] }
 0x2c6   :  { %6369 = vmatprep.subr.bf16.mxu0 %v8375_v38  ;;  %v7913_v38 = vcombine.high %v236_v8, %v240_v41  ;;  %v280_v59 = vld [vmem:[#allocation2 + $0x678] sm:$0xff]  ;;  %v791_v62 = vld [vmem:[#allocation2 + $0x1670] sm:$0xff] }
 0x2c7   :  { %6493 = vmatpush1.bf16.msra.mxu1 %v7864_v19  ;;  %v7912_v19 = vcombine.low %v236_v8, %v240_v41  ;;  %v284_v8 = vld [vmem:[#allocation2 + $0x698] sm:$0xff] }
 0x2c8   :  { %6494 = vmatprep.subr.bf16.mxu1 %v7873_v21  ;;  %v7921_v21 = vcombine.high %v244_v14, %v248_v15  ;;  %v288_v41 = vld [vmem:[#allocation2 + $0x6b8] sm:$0xff] }
 0x2c9   :  { %6370 = vmatpush1.bf16.msra.mxu0 %v8374_v20  ;;  %v8422_v20 = vcombine.low %v747_v9, %v751_v10 }
 0x2ca   :  { %6371 = vmatprep.subr.bf16.mxu0 %v8383_v22  ;;  %v8431_v22 = vcombine.high %v755_v17, %v759_v18 }
 0x2cb   :  { %6495 = vmatpush1.bf16.msra.mxu1 %v7872_v29  ;;  %v7920_v29 = vcombine.low %v244_v14, %v248_v15  ;;  %v292_v14 = vld [vmem:[#allocation2 + $0x6d8] sm:$0xff] }
 0x2cc   :  { %6505 = vmatprep.subr.bf16.mxu1 %v7881_v35  ;;  %v7929_v35 = vcombine.high %v252_v24, %v256_v26  ;;  %v296_v15 = vld [vmem:[#allocation2 + $0x6f8] sm:$0xff] }
 0x2cd   :  { %6372 = vmatpush1.bf16.msra.mxu0 %v8382_v33  ;;  %v8430_v33 = vcombine.low %v755_v17, %v759_v18  ;;  %v803_v17 = vld [vmem:[#allocation2 + $0x16d0] sm:$0xff] }
 0x2ce   :  { %6382 = vmatprep.subr.bf16.mxu0 %v8391_v36  ;;  %6497 = vmatmul.mubr.bf16.vlgmr.msra.gmra.mrb[8].mxu1 %v9308_v28  ;;  %v7896_v28 = vcombine.low %v220_v50, %v224_v31  ;;  %v8439_v36 = vcombine.high %v763_v27, %v767_v11  ;;  %v268_v50 = vld [vmem:[#allocation2 + $0x618] sm:$0xff]  ;;  %v807_v18 = vld [vmem:[#allocation2 + $0x16f0] sm:$0xff] }
 0x2cf   :  { %6506 = vmatpush1.bf16.msra.mxu1 %v7880_v45  ;;  %6537 = vmatprep.mubr.bf16.mxu1 %v9316_v63  ;;  %v8423_v63 = vcombine.high %v747_v9, %v751_v10  ;;  %v7928_v45 = vcombine.low %v252_v24, %v256_v26  ;;  %v272_v31 = vld [vmem:[#allocation2 + $0x638] sm:$0xff]  ;;  %v795_v9 = vld [vmem:[#allocation2 + $0x1690] sm:$0xff] }
 0x2d0   :  { %6374 = vmatmul.mubr.bf16.vlgmr.msra.gmra.mrb[4].mxu0 %v9354_v23  ;;  %6507 = vmatprep.subr.bf16.mxu1 %v7889_v48  ;;  %v7937_v48 = vcombine.high %v260_v37, %v264_v39  ;;  %v799_v10 = vld [vmem:[#allocation2 + $0x16b0] sm:$0xff]  ;;  %v300_v24 = vld [vmem:[#allocation2 + $0x718] sm:$0xff] }
 0x2d1   :  { %6383 = vmatpush1.bf16.msra.mxu0 %v8390_v46  ;;  %6414 = vmatprep.mubr.bf16.mxu0 %v9358_v30  ;;  %v8438_v46 = vcombine.low %v763_v27, %v767_v11  ;;  %v304_v26 = vld [vmem:[#allocation2 + $0x738] sm:$0xff]  ;;  %v811_v27 = vld [vmem:[#allocation2 + $0x1710] sm:$0xff] }
 0x2d2   :  { %6384 = vmatprep.subr.bf16.mxu0 %v8399_v49  ;;  %v8447_v49 = vcombine.high %v771_v42, %v775_v44  ;;  %v815_v11 = vld [vmem:[#allocation2 + $0x1730] sm:$0xff] }
 0x2d3   :  { %6508 = vmatpush1.bf16.msra.mxu1 %v7888_v47  ;;  %v7936_v47 = vcombine.low %v260_v37, %v264_v39  ;;  %v308_v37 = vld [vmem:[#allocation2 + $0x758] sm:$0xff] }
 0x2d4   :  { %6509 = vmatprep.subr.bf16.mxu1 %v7897_v56  ;;  %v7945_v56 = vcombine.high %v268_v50, %v272_v31  ;;  %v312_v39 = vld [vmem:[#allocation2 + $0x778] sm:$0xff] }
 0x2d5   :  { %6385 = vmatpush1.bf16.msra.mxu0 %v8398_v54  ;;  %v8446_v54 = vcombine.low %v771_v42, %v775_v44  ;;  %v819_v42 = vld [vmem:[#allocation2 + $0x1750] sm:$0xff] }
 0x2d6   :  { %6386 = vmatprep.subr.bf16.mxu0 %v8407_v57  ;;  %v8455_v57 = vcombine.high %v779_v51, %v783_v53  ;;  %v823_v44 = vld [vmem:[#allocation2 + $0x1770] sm:$0xff] }
 0x2d7   :  { %6510 = vmatpush1.bf16.msra.mxu1 %v7896_v28  ;;  %v7944_v28 = vcombine.low %v268_v50, %v272_v31  ;;  %v316_v50 = vld [vmem:[#allocation2 + $0x798] sm:$0xff] }
 0x2d8   :  { %6511 = vmatprep.subr.bf16.mxu1 %v7905_v3  ;;  %v7953_v3 = vcombine.high %v276_v58, %v280_v59  ;;  %v320_v31 = vld [vmem:[#allocation2 + $0x7b8] sm:$0xff] }
 0x2d9   :  { %6387 = vmatpush1.bf16.msra.mxu0 %v8406_v1  ;;  %v8454_v1 = vcombine.low %v779_v51, %v783_v53  ;;  %v827_v51 = vld [vmem:[#allocation2 + $0x1790] sm:$0xff] }
 0x2da   :  { %6388 = vmatprep.subr.bf16.mxu0 %v8415_v4  ;;  %v8463_v4 = vcombine.high %v787_v60, %v791_v62  ;;  %v831_v53 = vld [vmem:[#allocation2 + $0x17b0] sm:$0xff] }
 0x2db   :  { %6512 = vmatpush1.bf16.msra.mxu1 %v7904_v12  ;;  %v7952_v12 = vcombine.low %v276_v58, %v280_v59  ;;  %v324_v58 = vld [vmem:[#allocation2 + $0x7d8] sm:$0xff] }
 0x2dc   :  { %6513 = vmatprep.subr.bf16.mxu1 %v7913_v38  ;;  %v7961_v38 = vcombine.high %v284_v8, %v288_v41  ;;  %v328_v59 = vld [vmem:[#allocation2 + $0x7f8] sm:$0xff] }
 0x2dd   :  { %6389 = vmatpush1.bf16.msra.mxu0 %v8414_v13  ;;  %v8462_v13 = vcombine.low %v787_v60, %v791_v62  ;;  %v835_v60 = vld [vmem:[#allocation2 + $0x17d0] sm:$0xff] }
 0x2de   :  { %6390 = vmatprep.subr.bf16.mxu0 %v8423_v63  ;;  %v8471_v63 = vcombine.high %v795_v9, %v799_v10  ;;  %v839_v62 = vld [vmem:[#allocation2 + $0x17f0] sm:$0xff] }
 0x2df   :  { %6514 = vmatpush1.bf16.msra.mxu1 %v7912_v19  ;;  %v7960_v19 = vcombine.low %v284_v8, %v288_v41  ;;  %v332_v8 = vld [vmem:[#allocation2 + $0x818] sm:$0xff] }
 0x2e0   :  { %6515 = vmatprep.subr.bf16.mxu1 %v7921_v21  ;;  %v7969_v21 = vcombine.high %v292_v14, %v296_v15  ;;  %v336_v41 = vld [vmem:[#allocation2 + $0x838] sm:$0xff] }
 0x2e1   :  { %6391 = vmatpush1.bf16.msra.mxu0 %v8422_v20  ;;  %v8470_v20 = vcombine.low %v795_v9, %v799_v10  ;;  %v843_v9 = vld [vmem:[#allocation2 + $0x1810] sm:$0xff] }
 0x2e2   :  { %6392 = vmatprep.subr.bf16.mxu0 %v8431_v22  ;;  %v8479_v22 = vcombine.high %v803_v17, %v807_v18  ;;  %v847_v10 = vld [vmem:[#allocation2 + $0x1830] sm:$0xff] }
 0x2e3   :  { %6516 = vmatpush1.bf16.msra.mxu1 %v7920_v29  ;;  %v7968_v29 = vcombine.low %v292_v14, %v296_v15  ;;  %v340_v14 = vld [vmem:[#allocation2 + $0x858] sm:$0xff] }
 0x2e4   :  { %6517 = vmatprep.subr.bf16.mxu1 %v7929_v35  ;;  %v7977_v35 = vcombine.high %v300_v24, %v304_v26  ;;  %v344_v15 = vld [vmem:[#allocation2 + $0x878] sm:$0xff] }
 0x2e5   :  { %6393 = vmatpush1.bf16.msra.mxu0 %v8430_v33  ;;  %v8478_v33 = vcombine.low %v803_v17, %v807_v18  ;;  %v851_v17 = vld [vmem:[#allocation2 + $0x1850] sm:$0xff] }
 0x2e6   :  { %6394 = vmatprep.subr.bf16.mxu0 %v8439_v36  ;;  %v8487_v36 = vcombine.high %v811_v27, %v815_v11  ;;  %v855_v18 = vld [vmem:[#allocation2 + $0x1870] sm:$0xff] }
 0x2e7   :  { %6518 = vmatpush1.bf16.msra.mxu1 %v7928_v45  ;;  %v7976_v45 = vcombine.low %v300_v24, %v304_v26  ;;  %v348_v24 = vld [vmem:[#allocation2 + $0x898] sm:$0xff] }
 0x2e8   :  { %6519 = vmatprep.subr.bf16.mxu1 %v7937_v48  ;;  %v7985_v48 = vcombine.high %v308_v37, %v312_v39  ;;  %v352_v26 = vld [vmem:[#allocation2 + $0x8b8] sm:$0xff] }
 0x2e9   :  { %6395 = vmatpush1.bf16.msra.mxu0 %v8438_v46  ;;  %v8486_v46 = vcombine.low %v811_v27, %v815_v11  ;;  %v859_v27 = vld [vmem:[#allocation2 + $0x1890] sm:$0xff] }
 0x2ea   :  { %6396 = vmatprep.subr.bf16.mxu0 %v8447_v49  ;;  %v8495_v49 = vcombine.high %v819_v42, %v823_v44  ;;  %v863_v11 = vld [vmem:[#allocation2 + $0x18b0] sm:$0xff] }
 0x2eb   :  { %6520 = vmatpush1.bf16.msra.mxu1 %v7936_v47  ;;  %v7984_v47 = vcombine.low %v308_v37, %v312_v39  ;;  %v356_v37 = vld [vmem:[#allocation2 + $0x8d8] sm:$0xff] }
 0x2ec   :  { %6521 = vmatprep.subr.bf16.mxu1 %v7945_v56  ;;  %v7993_v56 = vcombine.high %v316_v50, %v320_v31  ;;  %v360_v39 = vld [vmem:[#allocation2 + $0x8f8] sm:$0xff] }
 0x2ed   :  { %6397 = vmatpush1.bf16.msra.mxu0 %v8446_v54  ;;  %v8494_v54 = vcombine.low %v819_v42, %v823_v44  ;;  %v867_v42 = vld [vmem:[#allocation2 + $0x18d0] sm:$0xff] }
 0x2ee   :  { %6398 = vmatprep.subr.bf16.mxu0 %v8455_v57  ;;  %v8503_v57 = vcombine.high %v827_v51, %v831_v53  ;;  %v871_v44 = vld [vmem:[#allocation2 + $0x18f0] sm:$0xff] }
 0x2ef   :  { %6522 = vmatpush1.bf16.msra.mxu1 %v7944_v28  ;;  %v7992_v28 = vcombine.low %v316_v50, %v320_v31  ;;  %v368_v50 = vld [vmem:[#allocation2 + $0x938] sm:$0xff]  ;;  %v875_v31 = vld [vmem:[#allocation2 + $0x1910] sm:$0xff] }
 0x2f0   :  { %6523 = vmatprep.subr.bf16.mxu1 %v7953_v3  ;;  %v8001_v3 = vcombine.high %v324_v58, %v328_v59 }
 0x2f1   :  { %6399 = vmatpush1.bf16.msra.mxu0 %v8454_v1  ;;  %v8502_v1 = vcombine.low %v827_v51, %v831_v53  ;;  %v879_v51 = vld [vmem:[#allocation2 + $0x1930] sm:$0xff]  ;;  %v8032_v53 = vcombine.low %v356_v37, %v360_v39 }
 0x2f2   :  { %6400 = vmatprep.subr.bf16.mxu0 %v8463_v4  ;;  %v8511_v4 = vcombine.high %v835_v60, %v839_v62 }
 0x2f3   :  { %6524 = vmatpush1.bf16.msra.mxu1 %v7952_v12  ;;  %v8000_v12 = vcombine.low %v324_v58, %v328_v59  ;;  %v883_v58 = vld [vmem:[#allocation2 + $0x1950] sm:$0xff] }
 0x2f4   :  { %6525 = vmatprep.subr.bf16.mxu1 %v7961_v38  ;;  %v8009_v38 = vcombine.high %v332_v8, %v336_v41  ;;  %v887_v59 = vld [vmem:[#allocation2 + $0x1970] sm:$0xff] }
 0x2f5   :  { %6401 = vmatpush1.bf16.msra.mxu0 %v8462_v13  ;;  %v8510_v13 = vcombine.low %v835_v60, %v839_v62  ;;  %v8550_v62 = vcombine.low %v875_v31, %v879_v51 }
 0x2f6   :  { %6402 = vmatprep.subr.bf16.mxu0 %v8471_v63  ;;  %v8519_v63 = vcombine.high %v843_v9, %v847_v10 }
 0x2f7   :  { %6526 = vmatpush1.bf16.msra.mxu1 %v7960_v19  ;;  %v8008_v19 = vcombine.low %v332_v8, %v336_v41  ;;  %v891_v8 = vld [vmem:[#allocation2 + $0x1990] sm:$0xff] }
 0x2f8   :  { %6527 = vmatprep.subr.bf16.mxu1 %v7969_v21  ;;  %v8017_v21 = vcombine.high %v340_v14, %v344_v15  ;;  %v895_v41 = vld [vmem:[#allocation2 + $0x19b0] sm:$0xff] }
 0x2f9   :  { %6403 = vmatpush1.bf16.msra.mxu0 %v8470_v20  ;;  %v8518_v20 = vcombine.low %v843_v9, %v847_v10  ;;  %v8558_v10 = vcombine.low %v883_v58, %v887_v59 }
 0x2fa   :  { %6404 = vmatprep.subr.bf16.mxu0 %v8479_v22  ;;  %v8527_v22 = vcombine.high %v851_v17, %v855_v18 }
 0x2fb   :  { %6528 = vmatpush1.bf16.msra.mxu1 %v7968_v29  ;;  %v8016_v29 = vcombine.low %v340_v14, %v344_v15  ;;  %v899_v14 = vld [vmem:[#allocation2 + $0x19d0] sm:$0xff] }
 0x2fc   :  { %6529 = vmatprep.subr.bf16.mxu1 %v7977_v35  ;;  %v8025_v35 = vcombine.high %v348_v24, %v352_v26  ;;  %v903_v15 = vld [vmem:[#allocation2 + $0x19f0] sm:$0xff] }
 0x2fd   :  { %6405 = vmatpush1.bf16.msra.mxu0 %v8478_v33  ;;  %v8526_v33 = vcombine.low %v851_v17, %v855_v18  ;;  %v8566_v18 = vcombine.low %v891_v8, %v895_v41 }
 0x2fe   :  { %6406 = vmatprep.subr.bf16.mxu0 %v8487_v36  ;;  %v8535_v36 = vcombine.high %v859_v27, %v863_v11 }
 0x2ff   :  { %6530 = vmatpush1.bf16.msra.mxu1 %v7976_v45  ;;  %v8534_v45 = vcombine.low %v859_v27, %v863_v11  ;;  %v8574_v11 = vcombine.low %v899_v14, %v903_v15 }
 0x300   :  { %6531 = vmatprep.subr.bf16.mxu1 %v7985_v48  ;;  %v8543_v48 = vcombine.high %v867_v42, %v871_v44 }
 0x301   :  { %6407 = vmatpush1.bf16.msra.mxu0 %v8486_v46  ;;  %v8033_v46 = vcombine.high %v356_v37, %v360_v39  ;;  %v915_v37 = vld [vmem:[#allocation2 + $0x1a50] sm:$0xff] }
 0x302   :  { %6408 = vmatprep.subr.bf16.mxu0 %v8495_v49  ;;  %v364_v49 = vld [vmem:[#allocation2 + $0x918] sm:$0xff]  ;;  %v919_v39 = vld [vmem:[#allocation2 + $0x1a70] sm:$0xff] }
 0x303   :  { %6532 = vmatpush1.bf16.msra.mxu1 %v7984_v47  ;;  %v8542_v47 = vcombine.low %v867_v42, %v871_v44  ;;  %v8040_v60 = vcombine.low %v364_v49, %v368_v50 }
 0x304   :  { %6533 = vmatprep.subr.bf16.mxu1 %v7993_v56  ;;  %v372_v56 = vld [vmem:[#allocation2 + $0x958] sm:$0xff] }
 0x305   :  { %6409 = vmatpush1.bf16.msra.mxu0 %v8494_v54  ;;  %v8041_v54 = vcombine.high %v364_v49, %v368_v50  ;;  %v923_v49 = vld [vmem:[#allocation2 + $0x1a90] sm:$0xff] }
 0x306   :  { %6410 = vmatprep.subr.bf16.mxu0 %v8503_v57  ;;  %v376_v57 = vld [vmem:[#allocation2 + $0x978] sm:$0xff]  ;;  %v927_v50 = vld [vmem:[#allocation2 + $0x1ab0] sm:$0xff] }
 0x307   :  { %6534 = vmatpush1.bf16.msra.mxu1 %v7992_v28  ;;  %v8049_v28 = vcombine.high %v372_v56, %v376_v57  ;;  %v8048_v9 = vcombine.low %v372_v56, %v376_v57  ;;  %v931_v56 = vld [vmem:[#allocation2 + $0x1ad0] sm:$0xff] }
 0x308   :  { %6535 = vmatprep.subr.bf16.mxu1 %v8001_v3  ;;  %v380_v3 = vld [vmem:[#allocation2 + $0x998] sm:$0xff]  ;;  %v935_v57 = vld [vmem:[#allocation2 + $0x1af0] sm:$0xff] }
 0x309   :  { %6411 = vmatpush1.bf16.msra.mxu0 %v8502_v1  ;;  %v8559_v1 = vcombine.high %v883_v58, %v887_v59  ;;  %v8598_v59 = vcombine.low %v923_v49, %v927_v50 }
 0x30a   :  { %6412 = vmatprep.subr.bf16.mxu0 %v8511_v4  ;;  %v384_v4 = vld [vmem:[#allocation2 + $0x9b8] sm:$0xff] }
 0x30b   :  { %6536 = vmatpush1.bf16.msra.mxu1 %v8000_v12  ;;  %v8057_v12 = vcombine.high %v380_v3, %v384_v4  ;;  %v8056_v17 = vcombine.low %v380_v3, %v384_v4  ;;  %v939_v3 = vld [vmem:[#allocation2 + $0x1b10] sm:$0xff] }
 0x30c   :  { %6546 = vmatprep.subr.bf16.mxu1 %v8009_v38  ;;  %v388_v38 = vld [vmem:[#allocation2 + $0x9d8] sm:$0xff]  ;;  %v943_v4 = vld [vmem:[#allocation2 + $0x1b30] sm:$0xff] }
 0x30d   :  { %6413 = vmatpush1.bf16.msra.mxu0 %v8510_v13  ;;  %v8567_v13 = vcombine.high %v891_v8, %v895_v41  ;;  %v8606_v41 = vcombine.low %v931_v56, %v935_v57 }
 0x30e   :  { %6423 = vmatprep.subr.bf16.mxu0 %v8519_v63  ;;  %6538 = vmatmul.mubr.bf16.vlgmr.msra.gmra.mrb[8].mxu1 %v9339_v52  ;;  %v8024_v52 = vcombine.low %v348_v24, %v352_v26  ;;  %v392_v63 = vld [vmem:[#allocation2 + $0x9f8] sm:$0xff]  ;;  %v907_v24 = vld [vmem:[#allocation2 + $0x1a10] sm:$0xff] }
 0x30f   :  { %6547 = vmatpush1.bf16.msra.mxu1 %v8008_v19  ;;  %6578 = vmatprep.mubr.bf16.mxu1 %v9303_v16  ;;  %v8551_v16 = vcombine.high %v875_v31, %v879_v51  ;;  %v8065_v19 = vcombine.high %v388_v38, %v392_v63  ;;  %v911_v26 = vld [vmem:[#allocation2 + $0x1a30] sm:$0xff]  ;;  %v8064_v27 = vcombine.low %v388_v38, %v392_v63 }
 0x310   :  { %6415 = vmatmul.mubr.bf16.vlgmr.msra.gmra.mrb[4].mxu0 %v9373_v0  ;;  %6548 = vmatprep.subr.bf16.mxu1 %v8017_v21  ;;  %v396_v21 = vld [vmem:[#allocation2 + $0xa18] sm:$0xff]  ;;  %v8582_v44 = vcombine.low %v907_v24, %v911_v26  ;;  %v8590_v51 = vcombine.low %v915_v37, %v919_v39  ;;  %v947_v38 = vld [vmem:[#allocation2 + $0x1b50] sm:$0xff] }
 0x311   :  { %6424 = vmatpush1.bf16.msra.mxu0 %v8518_v20  ;;  %6455 = vmatprep.mubr.bf16.mxu0 %v9376_v7  ;;  %v8575_v20 = vcombine.high %v899_v14, %v903_v15  ;;  %v951_v63 = vld [vmem:[#allocation2 + $0x1b70] sm:$0xff]  ;;  %v8614_v15 = vcombine.low %v939_v3, %v943_v4 }
 0x312   :  { %6425 = vmatprep.subr.bf16.mxu0 %v8527_v22  ;;  %v400_v22 = vld [vmem:[#allocation2 + $0xa38] sm:$0xff] }
 0x313   :  { %6549 = vmatpush1.bf16.msra.mxu1 %v8016_v29  ;;  %v8073_v29 = vcombine.high %v396_v21, %v400_v22  ;;  %v8072_v42 = vcombine.low %v396_v21, %v400_v22  ;;  %v955_v21 = vld [vmem:[#allocation2 + $0x1b90] sm:$0xff] }
 0x314   :  { %6550 = vmatprep.subr.bf16.mxu1 %v8025_v35  ;;  %v404_v35 = vld [vmem:[#allocation2 + $0xa58] sm:$0xff]  ;;  %v959_v22 = vld [vmem:[#allocation2 + $0x1bb0] sm:$0xff] }
 0x315   :  { %6426 = vmatpush1.bf16.msra.mxu0 %v8526_v33  ;;  %v8583_v33 = vcombine.high %v907_v24, %v911_v26  ;;  %v8622_v26 = vcombine.low %v947_v38, %v951_v63 }
 0x316   :  { %6427 = vmatprep.subr.bf16.mxu0 %v8535_v36  ;;  %v408_v36 = vld [vmem:[#allocation2 + $0xa78] sm:$0xff] }
 0x317   :  { %6551 = vmatpush1.bf16.msra.mxu1 %v8024_v52  ;;  %v8081_v52 = vcombine.high %v404_v35, %v408_v36  ;;  %v8080_v31 = vcombine.low %v404_v35, %v408_v36  ;;  %v963_v35 = vld [vmem:[#allocation2 + $0x1bd0] sm:$0xff] }
 0x318   :  { %6552 = vmatprep.subr.bf16.mxu1 %v8033_v46  ;;  %v412_v46 = vld [vmem:[#allocation2 + $0xa98] sm:$0xff]  ;;  %v967_v36 = vld [vmem:[#allocation2 + $0x1bf0] sm:$0xff] }
 0x319   :  { %6428 = vmatpush1.bf16.msra.mxu0 %v8534_v45  ;;  %v8591_v45 = vcombine.high %v915_v37, %v919_v39  ;;  %v8630_v39 = vcombine.low %v955_v21, %v959_v22 }
 0x31a   :  { %6429 = vmatprep.subr.bf16.mxu0 %v8543_v48  ;;  %v416_v48 = vld [vmem:[#allocation2 + $0xab8] sm:$0xff] }
 0x31b   :  { %6553 = vmatpush1.bf16.msra.mxu1 %v8032_v53  ;;  %v8089_v53 = vcombine.high %v412_v46, %v416_v48  ;;  %v8088_v58 = vcombine.low %v412_v46, %v416_v48  ;;  %v6760_v46 = vmul.f32 0.01, %v9416_v6 }
 0x31c   :  { %6554 = vmatprep.subr.bf16.mxu1 %v8041_v54  ;;  %v420_v54 = vld [vmem:[#allocation2 + $0xad8] sm:$0xff] }
 0x31d   :  { %6430 = vmatpush1.bf16.msra.mxu0 %v8542_v47  ;;  %v8599_v47 = vcombine.high %v923_v49, %v927_v50  ;;  %v8638_v49 = vcombine.low %v963_v35, %v967_v36 }
 0x31e   :  { %6431 = vmatprep.subr.bf16.mxu0 %v8551_v16  ;;  %v424_v16 = vld [vmem:[#allocation2 + $0xaf8] sm:$0xff] }
 0x31f   :  { %6555 = vmatpush1.bf16.msra.mxu1 %v8040_v60  ;;  %v8097_v60 = vcombine.high %v420_v54, %v424_v16  ;;  %v8096_v8 = vcombine.low %v420_v54, %v424_v16  ;;  %v6768_v54 = vsel %vm6752_vm0, %v9416_v6, %v6760_v46  ;;  %v8898_v16 = vld [vmem:[#allocation6] ss:$8 sps:$4 sm:$0xff]   ;;  %v8906_v6 = vld [vmem:[#allocation6 + $0x24] ss:$8 sps:$4 sm:$0xff]   ;;  %v524_v46 = vld [vmem:[#allocation2 + $0xe18] sm:$0xff] }
 0x320   :  { %6556 = vmatprep.subr.bf16.mxu1 %v8049_v28  ;;  %v428_v28 = vld [vmem:[#allocation2 + $0xb18] sm:$0xff] }
 0x321   :  { %6432 = vmatpush1.bf16.msra.mxu0 %v8550_v62  ;;  %v8607_v62 = vcombine.high %v931_v56, %v935_v57  ;;  %v8903_v57 = vld [vmem:[#allocation6 + $0x14] ss:$8 sps:$4 sm:$0xff]  }
 0x322   :  { %6433 = vmatprep.subr.bf16.mxu0 %v8559_v1  ;;  %v432_v1 = vld [vmem:[#allocation2 + $0xb38] sm:$0xff] }
 0x323   :  { %6557 = vmatpush1.bf16.msra.mxu1 %v8048_v9  ;;  %v8105_v9 = vcombine.high %v428_v28, %v432_v1  ;;  %v8104_v14 = vcombine.low %v428_v28, %v432_v1  ;;  %v8901_v28 = vld [vmem:[#allocation6 + $0x10] ss:$8 sps:$4 sm:$0xff]  }
 0x324   :  { %6558 = vmatprep.subr.bf16.mxu1 %v8057_v12  ;;  %v436_v12 = vld [vmem:[#allocation2 + $0xb58] sm:$0xff] }
 0x325   :  { %6434 = vmatpush1.bf16.msra.mxu0 %v8558_v10  ;;  %v8615_v10 = vcombine.high %v939_v3, %v943_v4  ;;  %v484_v3 = vld [vmem:[#allocation2 + $0xcd8] sm:$0xff] }
 0x326   :  { %6435 = vmatprep.subr.bf16.mxu0 %v8567_v13  ;;  %v440_v13 = vld [vmem:[#allocation2 + $0xb78] sm:$0xff] }
 0x327   :  { %6559 = vmatpush1.bf16.msra.mxu1 %v8056_v17  ;;  %v8113_v17 = vcombine.high %v436_v12, %v440_v13  ;;  %v8112_v24 = vcombine.low %v436_v12, %v440_v13  ;;  %v488_v4 = vld [vmem:[#allocation2 + $0xcf8] sm:$0xff] }
 0x328   :  { %6560 = vmatprep.subr.bf16.mxu1 %v8065_v19  ;;  %v444_v19 = vld [vmem:[#allocation2 + $0xb98] sm:$0xff]  ;;  %v8160_v13 = vcombine.low %v484_v3, %v488_v4 }
 0x329   :  { %6436 = vmatpush1.bf16.msra.mxu0 %v8566_v18  ;;  %v8623_v18 = vcombine.high %v947_v38, %v951_v63  ;;  %v496_v12 = vld [vmem:[#allocation2 + $0xd38] sm:$0xff] }
 0x32a   :  { %6437 = vmatprep.subr.bf16.mxu0 %v8575_v20  ;;  %v448_v20 = vld [vmem:[#allocation2 + $0xbb8] sm:$0xff] }
 0x32b   :  { %6561 = vmatpush1.bf16.msra.mxu1 %v8064_v27  ;;  %v8121_v27 = vcombine.high %v444_v19, %v448_v20  ;;  %v8120_v37 = vcombine.low %v444_v19, %v448_v20  ;;  %v8907_v38 = vld [vmem:[#allocation6 + $0x30] ss:$8 sps:$4 sm:$0xff]   ;;  %v8915_v20 = vld [vmem:[#allocation6 + $0x54] ss:$8 sps:$4 sm:$0xff]  }
 0x32c   :  { %6562 = vmatprep.subr.bf16.mxu1 %v8073_v29  ;;  %v452_v29 = vld [vmem:[#allocation2 + $0xbd8] sm:$0xff] }
 0x32d   :  { %6438 = vmatpush1.bf16.msra.mxu0 %v8574_v11  ;;  %v8631_v11 = vcombine.high %v955_v21, %v959_v22  ;;  %v508_v21 = vld [vmem:[#allocation2 + $0xd98] sm:$0xff] }
 0x32e   :  { %6439 = vmatprep.subr.bf16.mxu0 %v8583_v33  ;;  %v456_v33 = vld [vmem:[#allocation2 + $0xbf8] sm:$0xff] }
 0x32f   :  { %6563 = vmatpush1.bf16.msra.mxu1 %v8072_v42  ;;  %v8129_v42 = vcombine.high %v452_v29, %v456_v33  ;;  %v8128_v48 = vcombine.low %v452_v29, %v456_v33  ;;  %v512_v22 = vld [vmem:[#allocation2 + $0xdb8] sm:$0xff]  ;;  %v8918_v29 = vld [vmem:[#allocation6 + $0x64] ss:$8 sps:$4 sm:$0xff]  }
 0x330   :  { %6564 = vmatprep.subr.bf16.mxu1 %v8081_v52  ;;  %v460_v52 = vld [vmem:[#allocation2 + $0xc18] sm:$0xff] }
 0x331   :  { %6440 = vmatpush1.bf16.msra.mxu0 %v8582_v44  ;;  %v8639_v44 = vcombine.high %v963_v35, %v967_v36  ;;  %v516_v33 = vld [vmem:[#allocation2 + $0xdd8] sm:$0xff] }
 0x332   :  { %6441 = vmatprep.subr.bf16.mxu0 %v8591_v45  ;;  %v464_v45 = vld [vmem:[#allocation2 + $0xc38] sm:$0xff] }
 0x333   :  { %6565 = vmatpush1.bf16.msra.mxu1 %v8080_v31  ;;  %v8137_v50 = vcombine.high %v460_v52, %v464_v45  ;;  %v8900_v31 = vld [vmem:[#allocation6 + $0x4] ss:$8 sps:$4 sm:$0xff]   ;;  %v520_v35 = vld [vmem:[#allocation2 + $0xdf8] sm:$0xff] }
 0x334   :  { %6566 = vmatprep.subr.bf16.mxu1 %v8089_v53  ;;  %v472_v53 = vld [vmem:[#allocation2 + $0xc78] sm:$0xff] }
 0x335   :  { %6442 = vmatpush1.bf16.msra.mxu0 %v8590_v51  ;;  %v468_v51 = vld [vmem:[#allocation2 + $0xc58] sm:$0xff] }
 0x336   :  { %6443 = vmatprep.subr.bf16.mxu0 %v8599_v47  ;;  %v8136_v47 = vcombine.low %v460_v52, %v464_v45  ;;  %v8145_v56 = vcombine.high %v468_v51, %v472_v53  ;;  %v8193_v52 = vcombine.high %v516_v33, %v520_v35  ;;  %v8921_v45 = vld [vmem:[#allocation6 + $0x74] ss:$8 sps:$4 sm:$0xff]  }
 0x337   :  { %6567 = vmatpush1.bf16.msra.mxu1 %v8088_v58  ;;  %v476_v58 = vld [vmem:[#allocation2 + $0xc98] sm:$0xff] }
 0x338   :  { %6568 = vmatprep.subr.bf16.mxu1 %v8097_v60  ;;  %v6776_v60 = vpack.c.bf16 %v6768_v54, %v6768_v54 }
 0x339   :  { %6444 = vmatpush1.bf16.msra.mxu0 %v8598_v59  ;;  %v480_v59 = vld [vmem:[#allocation2 + $0xcb8] sm:$0xff] }
 0x33a   :  { %6445 = vmatprep.subr.bf16.mxu0 %v8607_v62  ;;  %v8144_v62 = vcombine.low %v468_v51, %v472_v53  ;;  %v8153_v1 = vcombine.high %v476_v58, %v480_v59  ;;  %v8924_v51 = vld [vmem:[#allocation6 + $0x84] ss:$8 sps:$4 sm:$0xff]   ;;  %v532_v53 = vld [vmem:[#allocation2 + $0xe58] sm:$0xff] }
 0x33b   :  { %6569 = vmatpush1.bf16.msra.mxu1 %v8096_v8  ;;  %v8152_v8 = vcombine.low %v476_v58, %v480_v59  ;;  %v540_v58 = vld [vmem:[#allocation2 + $0xe98] sm:$0xff] }
 0x33c   :  { %6570 = vmatprep.subr.bf16.mxu1 %v8105_v9  ;;  %v8909_v9 = vld [vmem:[#allocation6 + $0x34] ss:$8 sps:$4 sm:$0xff]  }
 0x33d   :  { %6446 = vmatpush1.bf16.msra.mxu0 %v8606_v41  ;;  %v8161_v41 = vcombine.high %v484_v3, %v488_v4  ;;  %v544_v59 = vld [vmem:[#allocation2 + $0xeb8] sm:$0xff] }
 0x33e   :  { %6447 = vmatprep.subr.bf16.mxu0 %v8615_v10  ;;  %v492_v10 = vld [vmem:[#allocation2 + $0xd18] sm:$0xff]  ;;  %v8216_v4 = vcombine.low %v540_v58, %v544_v59 }
 0x33f   :  { %6571 = vmatpush1.bf16.msra.mxu1 %v8104_v14  ;;  %v8169_v63 = vcombine.high %v492_v10, %v496_v12  ;;  %v8912_v14 = vld [vmem:[#allocation6 + $0x44] ss:$8 sps:$4 sm:$0xff]   ;;  %v552_v3 = vld [vmem:[#allocation2 + $0xef8] sm:$0xff] }
 0x340   :  { %6572 = vmatprep.subr.bf16.mxu1 %v8113_v17  ;;  %v8168_v17 = vcombine.low %v492_v10, %v496_v12  ;;  %v560_v10 = vld [vmem:[#allocation2 + $0xf38] sm:$0xff] }
 0x341   :  { %6448 = vmatpush1.bf16.msra.mxu0 %v8614_v15  ;;  %v500_v15 = vld [vmem:[#allocation2 + $0xd58] sm:$0xff] }
 0x342   :  { %6449 = vmatprep.subr.bf16.mxu0 %v8623_v18  ;;  %v8910_v18 = vld [vmem:[#allocation6 + $0x40] ss:$8 sps:$4 sm:$0xff]  }
 0x343   :  { %6573 = vmatpush1.bf16.msra.mxu1 %v8112_v24 }
 0x344   :  { %6574 = vmatprep.subr.bf16.mxu1 %v8121_v27  ;;  %v8185_v27 = vcombine.high %v508_v21, %v512_v22 }
 0x345   :  { %6450 = vmatpush1.bf16.msra.mxu0 %v8622_v26  ;;  %v8913_v26 = vld [vmem:[#allocation6 + $0x50] ss:$8 sps:$4 sm:$0xff]  }
 0x346   :  { %6451 = vmatprep.subr.bf16.mxu0 %v8631_v11 }
 0x347   :  { %6575 = vmatpush1.bf16.msra.mxu1 %v8120_v37 }
 0x348   :  { %6576 = vmatprep.subr.bf16.mxu1 %v8129_v42 }
 0x349   :  { %6452 = vmatpush1.bf16.msra.mxu0 %v8630_v39  ;;  %v8184_v39 = vcombine.low %v508_v21, %v512_v22  ;;  %v572_v21 = vld [vmem:[#allocation2 + $0xf98] sm:$0xff] }
 0x34a   :  { %6453 = vmatprep.subr.bf16.mxu0 %v8639_v44  ;;  %v8916_v44 = vld [vmem:[#allocation6 + $0x60] ss:$8 sps:$4 sm:$0xff]   ;;  %v576_v22 = vld [vmem:[#allocation2 + $0xfb8] sm:$0xff] }
 0x34b   :  { %6577 = vmatpush1.bf16.msra.mxu1 %v8128_v48  ;;  %v528_v48 = vld [vmem:[#allocation2 + $0xe38] sm:$0xff] }
 0x34c   :  { %6587 = vmatprep.subr.bf16.mxu1 %v8137_v50  ;;  %v8919_v50 = vld [vmem:[#allocation6 + $0x70] ss:$8 sps:$4 sm:$0xff]   ;;  %v8200_v54 = vcombine.low %v524_v46, %v528_v48 }
 0x34d   :  { %6454 = vmatpush1.bf16.msra.mxu0 %v8638_v49  ;;  %v8192_v49 = vcombine.low %v516_v33, %v520_v35  ;;  %v8249_v33 = vcombine.high %v572_v21, %v576_v22  ;;  %v8942_v35 = vld [vmem:[#allocation6 + $0xe4] ss:$8 sps:$4 sm:$0xff]  }
 0x34e   :  { %7563 = vmatprep.subr.bf16.mxu0 %v8900_v31  ;;  %6579 = vmatmul.mubr.bf16.vlgmr.msra.gmra.mrb[8].mxu1 %v9312_v32  ;;  %v8904_v32 = vld [vmem:[#allocation6 + $0x20] ss:$8 sps:$4 sm:$0xff]   ;;  %v8201_v31 = vcombine.high %v524_v46, %v528_v48  ;;  %v8945_v46 = vld [vmem:[#allocation6 + $0xf4] ss:$8 sps:$4 sm:$0xff]  }
 0x34f   :  { %6588 = vmatpush1.bf16.msra.mxu1 %v8136_v47  ;;  %6619 = vmatprep.mubr.bf16.mxu1 %v9321_v5  ;;  %v504_v5 = vld [vmem:[#allocation2 + $0xd78] sm:$0xff] }
 0x350   :  { %6456 = vmatmul.mubr.bf16.vlgmr.msra.gmra.mrb[4].mxu0 %v9384_v40  ;;  %6589 = vmatprep.subr.bf16.mxu1 %v8145_v56  ;;  %v8177_v19 = vcombine.high %v500_v15, %v504_v5  ;;  %v8176_v24 = vcombine.low %v500_v15, %v504_v5  ;;  %v536_v47 = vld [vmem:[#allocation2 + $0xe78] sm:$0xff]  ;;  %v985_v5 = vsub.s32 3, %v9280_v43 }
 0x351   :  { %7564 = vmatpush1.bf16.msra.mxu0 %v8898_v16  ;;  %7595 = vmatprep.mubr.bf16.mxu0 %v6776_v60  ;;  %v8922_v16 = vld [vmem:[#allocation6 + $0x80] ss:$8 sps:$4 sm:$0xff]   ;;  %v8209_v56 = vcombine.high %v532_v53, %v536_v47  ;;  %v8208_v60 = vcombine.low %v532_v53, %v536_v47  ;;  %v568_v15 = vld [vmem:[#allocation2 + $0xf78] sm:$0xff]  ;;  %v8948_v47 = vld [vmem:[#allocation6 + $0x104] ss:$8 sps:$4 sm:$0xff]  }
 0x352   :  { %7565 = vmatprep.subr.bf16.mxu0 %v8903_v57  ;;  %v8927_v57 = vld [vmem:[#allocation6 + $0x94] ss:$8 sps:$4 sm:$0xff]  }
 0x353   :  { %6590 = vmatpush1.bf16.msra.mxu1 %v8144_v62  ;;  %v8925_v62 = vld [vmem:[#allocation6 + $0x90] ss:$8 sps:$4 sm:$0xff]  }
 0x354   :  { %6591 = vmatprep.subr.bf16.mxu1 %v8153_v1  ;;  %v8930_v1 = vld [vmem:[#allocation6 + $0xa4] ss:$8 sps:$4 sm:$0xff]   ;;  %v588_v48 = vld [vmem:[#allocation2 + $0x1018] sm:$0xff] }
 0x355   :  { %7566 = vmatpush1.bf16.msra.mxu0 %v8901_v28  ;;  %v8217_v28 = vcombine.high %v540_v58, %v544_v59  ;;  %v8946_v59 = vld [vmem:[#allocation6 + $0x100] ss:$8 sps:$4 sm:$0xff]  }
 0x356   :  { %7567 = vmatprep.subr.bf16.mxu0 %v8906_v6  ;;  %v548_v6 = vld [vmem:[#allocation2 + $0xed8] sm:$0xff] }
 0x357   :  { %6592 = vmatpush1.bf16.msra.mxu1 %v8152_v8  ;;  %v8928_v8 = vld [vmem:[#allocation6 + $0xa0] ss:$8 sps:$4 sm:$0xff]   ;;  %v8224_v12 = vcombine.low %v548_v6, %v552_v3 }
 0x358   :  { %6593 = vmatprep.subr.bf16.mxu1 %v8161_v41  ;;  %v8933_v41 = vld [vmem:[#allocation6 + $0xb4] ss:$8 sps:$4 sm:$0xff]  }
 0x359   :  { %7568 = vmatpush1.bf16.msra.mxu0 %v8904_v32  ;;  %v8225_v32 = vcombine.high %v548_v6, %v552_v3  ;;  %v608_v6 = vld [vmem:[#allocation2 + $0x10b8] sm:$0xff] }
 0x35a   :  { %7569 = vmatprep.subr.bf16.mxu0 %v8909_v9  ;;  %v556_v9 = vld [vmem:[#allocation2 + $0xf18] sm:$0xff] }
 0x35b   :  { %6594 = vmatpush1.bf16.msra.mxu1 %v8160_v13  ;;  %v8931_v13 = vld [vmem:[#allocation6 + $0xb0] ss:$8 sps:$4 sm:$0xff]  }
 0x35c   :  { %6595 = vmatprep.subr.bf16.mxu1 %v8169_v63  ;;  %v8936_v63 = vld [vmem:[#allocation6 + $0xc4] ss:$8 sps:$4 sm:$0xff]  }
 0x35d   :  { %7570 = vmatpush1.bf16.msra.mxu0 %v8907_v38  ;;  %v8233_v38 = vcombine.high %v556_v9, %v560_v10 }
 0x35e   :  { %7571 = vmatprep.subr.bf16.mxu0 %v8912_v14  ;;  %v564_v14 = vld [vmem:[#allocation2 + $0xf58] sm:$0xff] }
 0x35f   :  { %6596 = vmatpush1.bf16.msra.mxu1 %v8168_v17  ;;  %v8232_v17 = vcombine.low %v556_v9, %v560_v10  ;;  %v616_v9 = vld [vmem:[#allocation2 + $0x10f8] sm:$0xff] }
 0x360   :  { %6597 = vmatprep.subr.bf16.mxu1 %v8177_v19  ;;  %v8241_v19 = vcombine.high %v564_v14, %v568_v15 }
 0x361   :  { %7572 = vmatpush1.bf16.msra.mxu0 %v8910_v18  ;;  %v9436_v11 = vpop.f32.mrb[4].mxu1  ;;  %v8934_v18 = vld [vmem:[#allocation6 + $0xc0] ss:$8 sps:$4 sm:$0xff]  }
 0x362   :  { %7573 = vmatprep.subr.bf16.mxu0 %v8915_v20  ;;  %v9438_v36 = vpop.f32.mrb[5].mxu1  ;;  %v8939_v20 = vld [vmem:[#allocation6 + $0xd4] ss:$8 sps:$4 sm:$0xff]  }
 0x363   :  { %v6174_v37 = vpop.f32.mrb[6].mxu1  ;;  %6598 = vmatpush1.bf16.msra.mxu1 %v8176_v24  ;;  %v9441_v24 = vld [vmem:[#allocation4] sm:$0xff] }
 0x364   :  { %v6175_v42 = vpop.f32.mrb[7].mxu1  ;;  %6599 = vmatprep.subr.bf16.mxu1 %v8185_v27  ;;  %v8240_v27 = vcombine.low %v564_v14, %v568_v15  ;;  %v580_v37 = vld [vmem:[#allocation2 + $0xfd8] sm:$0xff] }
 0x365   :  { %7574 = vmatpush1.bf16.msra.mxu0 %v8913_v26  ;;  %v986_v26 = vrot.slane %v9441_v24, %v985_v5  ;;  %v8955_v15 = vld [vmem:[#allocation6 + $0x130] ss:$8 sps:$4 sm:$0xff]  }
 0x366   :  { %7575 = vmatprep.subr.bf16.mxu0 %v8918_v29  ;;  %v8937_v29 = vld [vmem:[#allocation6 + $0xd0] ss:$8 sps:$4 sm:$0xff]  }
 0x367   :  { %6600 = vmatpush1.bf16.msra.mxu1 %v8184_v39  ;;  %v584_v39 = vld [vmem:[#allocation2 + $0xff8] sm:$0xff]  ;;  %v8776_v42 = vadd.f32 %v9438_v36, %v986_v26 }
 0x368   :  { %6601 = vmatprep.subr.bf16.mxu1 %v8193_v52  ;;  %v8940_v52 = vld [vmem:[#allocation6 + $0xe0] ss:$8 sps:$4 sm:$0xff]   ;;  %v8943_v36 = vld [vmem:[#allocation6 + $0xf0] ss:$8 sps:$4 sm:$0xff]  }
 0x369   :  { %7576 = vmatpush1.bf16.msra.mxu0 %v8916_v44  ;;  %v8248_v44 = vcombine.low %v572_v21, %v576_v22  ;;  %vm6754_vm2 = vcmp.ge.f32.partialorder %v8776_v42, 0.0  ;;  %v8963_v22 = vld [vmem:[#allocation6 + $0x154] ss:$8 sps:$4 sm:$0xff]  }
 0x36a   :  { %7577 = vmatprep.subr.bf16.mxu0 %v8921_v45  ;;  %v8257_v45 = vcombine.high %v580_v37, %v584_v39  ;;  %v636_v26 = vld [vmem:[#allocation2 + $0x1198] sm:$0xff] }
 0x36b   :  { %6602 = vmatpush1.bf16.msra.mxu1 %v8192_v49  ;;  %v592_v49 = vld [vmem:[#allocation2 + $0x1038] sm:$0xff] }
 0x36c   :  { %6603 = vmatprep.subr.bf16.mxu1 %v8201_v31  ;;  %v6762_v31 = vmul.f32 0.01, %v8776_v42  ;;  %v8265_v53 = vcombine.high %v588_v48, %v592_v49 }
 0x36d   :  { %7578 = vmatpush1.bf16.msra.mxu0 %v8919_v50  ;;  %v6759_v50 = vmul.f32 0.01, %v9414_v2 }
 0x36e   :  { %7579 = vmatprep.subr.bf16.mxu0 %v8924_v51  ;;  %v8256_v51 = vcombine.low %v580_v37, %v584_v39  ;;  %v6770_v58 = vsel %vm6754_vm2, %v8776_v42, %v6762_v31  ;;  %v8966_v37 = vld [vmem:[#allocation6 + $0x164] ss:$8 sps:$4 sm:$0xff]   ;;  %v644_v39 = vld [vmem:[#allocation2 + $0x11d8] sm:$0xff] }
 0x36f   :  { %6604 = vmatpush1.bf16.msra.mxu1 %v8200_v54  ;;  %v6767_v54 = vsel %vm6751_vm1, %v9414_v2, %v6759_v50  ;;  %v6778_v3 = vpack.c.bf16 %v6770_v58, %v6770_v58  ;;  %v648_v42 = vld [vmem:[#allocation2 + $0x11f8] sm:$0xff] }
 0x370   :  { %6605 = vmatprep.subr.bf16.mxu1 %v8209_v56  ;;  %v600_v56 = vld [vmem:[#allocation2 + $0x1078] sm:$0xff]  ;;  %v8320_v50 = vcombine.low %v644_v39, %v648_v42 }
 0x371   :  { %7580 = vmatpush1.bf16.msra.mxu0 %v8922_v16  ;;  %v596_v16 = vld [vmem:[#allocation2 + $0x1058] sm:$0xff] }
 0x372   :  { %7581 = vmatprep.subr.bf16.mxu0 %v8927_v57  ;;  %v8264_v57 = vcombine.low %v588_v48, %v592_v49  ;;  %v8272_v2 = vcombine.low %v596_v16, %v600_v56  ;;  %v652_v48 = vld [vmem:[#allocation2 + $0x1218] sm:$0xff] }
 0x373   :  { %6606 = vmatpush1.bf16.msra.mxu1 %v8208_v60  ;;  %v6775_v60 = vpack.c.bf16 %v6767_v54, %v6767_v54  ;;  %v656_v49 = vld [vmem:[#allocation2 + $0x1238] sm:$0xff] }
 0x374   :  { %6607 = vmatprep.subr.bf16.mxu1 %v8217_v28  ;;  %v8951_v28 = vld [vmem:[#allocation6 + $0x114] ss:$8 sps:$4 sm:$0xff]   ;;  %v8967_v31 = vld [vmem:[#allocation6 + $0x170] ss:$8 sps:$4 sm:$0xff]   ;;  %v8328_v54 = vcombine.low %v652_v48, %v656_v49 }
 0x375   :  { %7582 = vmatpush1.bf16.msra.mxu0 %v8925_v62  ;;  %v8273_v62 = vcombine.high %v596_v16, %v600_v56  ;;  %v8970_v16 = vld [vmem:[#allocation6 + $0x180] ss:$8 sps:$4 sm:$0xff]   ;;  %v668_v58 = vld [vmem:[#allocation2 + $0x1298] sm:$0xff] }
 0x376   :  { %7583 = vmatprep.subr.bf16.mxu0 %v8930_v1  ;;  %v604_v1 = vld [vmem:[#allocation2 + $0x1098] sm:$0xff] }
 0x377   :  { %6608 = vmatpush1.bf16.msra.mxu1 %v8216_v4  ;;  %v8949_v4 = vld [vmem:[#allocation6 + $0x110] ss:$8 sps:$4 sm:$0xff]   ;;  %v8280_v10 = vcombine.low %v604_v1, %v608_v6 }
 0x378   :  { %6609 = vmatprep.subr.bf16.mxu1 %v8225_v32  ;;  %v8954_v32 = vld [vmem:[#allocation6 + $0x124] ss:$8 sps:$4 sm:$0xff]  }
 0x379   :  { %7584 = vmatpush1.bf16.msra.mxu0 %v8928_v8  ;;  %v8281_v8 = vcombine.high %v604_v1, %v608_v6  ;;  %v8978_v1 = vld [vmem:[#allocation6 + $0x1a4] ss:$8 sps:$4 sm:$0xff]   ;;  %v676_v6 = vld [vmem:[#allocation2 + $0x12d8] sm:$0xff] }
 0x37a   :  { %7585 = vmatprep.subr.bf16.mxu0 %v8933_v41  ;;  %v612_v41 = vld [vmem:[#allocation2 + $0x10d8] sm:$0xff] }
 0x37b   :  { %6610 = vmatpush1.bf16.msra.mxu1 %v8224_v12  ;;  %v8289_v12 = vcombine.high %v612_v41, %v616_v9  ;;  %v8288_v14 = vcombine.low %v612_v41, %v616_v9  ;;  %v684_v41 = vld [vmem:[#allocation2 + $0x1318] sm:$0xff] }
 0x37c   :  { %6611 = vmatprep.subr.bf16.mxu1 %v8233_v38  ;;  %v620_v38 = vld [vmem:[#allocation2 + $0x1118] sm:$0xff] }
 0x37d   :  { %7586 = vmatpush1.bf16.msra.mxu0 %v8931_v13  ;;  %v8957_v13 = vld [vmem:[#allocation6 + $0x134] ss:$8 sps:$4 sm:$0xff]  }
 0x37e   :  { %7587 = vmatprep.subr.bf16.mxu0 %v8936_v63  ;;  %v624_v63 = vld [vmem:[#allocation2 + $0x1138] sm:$0xff] }
 0x37f   :  { %6612 = vmatpush1.bf16.msra.mxu1 %v8232_v17  ;;  %v8297_v5 = vcombine.high %v620_v38, %v624_v63  ;;  %v8960_v17 = vld [vmem:[#allocation6 + $0x144] ss:$8 sps:$4 sm:$0xff]   ;;  %v688_v9 = vld [vmem:[#allocation2 + $0x1338] sm:$0xff] }
 0x380   :  { %6613 = vmatprep.subr.bf16.mxu1 %v8241_v19  ;;  %v8296_v19 = vcombine.low %v620_v38, %v624_v63  ;;  %v692_v38 = vld [vmem:[#allocation2 + $0x1358] sm:$0xff] }
 0x381   :  { %7588 = vmatpush1.bf16.msra.mxu0 %v8934_v18  ;;  %v628_v18 = vld [vmem:[#allocation2 + $0x1158] sm:$0xff] }
 0x382   :  { %7589 = vmatprep.subr.bf16.mxu0 %v8939_v20  ;;  %v8958_v20 = vld [vmem:[#allocation6 + $0x140] ss:$8 sps:$4 sm:$0xff]   ;;  %v696_v63 = vld [vmem:[#allocation2 + $0x1378] sm:$0xff] }
 0x383   :  { %6614 = vmatpush1.bf16.msra.mxu1 %v8240_v27  ;;  %v640_v27 = vld [vmem:[#allocation2 + $0x11b8] sm:$0xff] }
 0x384   :  { %6615 = vmatprep.subr.bf16.mxu1 %v8249_v33  ;;  %v8961_v33 = vld [vmem:[#allocation6 + $0x150] ss:$8 sps:$4 sm:$0xff]  }
 0x385   :  { %7590 = vmatpush1.bf16.msra.mxu0 %v8937_v29 }
 0x386   :  { %7591 = vmatprep.subr.bf16.mxu0 %v8942_v35  ;;  %v8313_v35 = vcombine.high %v636_v26, %v640_v27 }
 0x387   :  { %6616 = vmatpush1.bf16.msra.mxu1 %v8248_v44  ;;  %v8312_v44 = vcombine.low %v636_v26, %v640_v27  ;;  %v8990_v27 = vld [vmem:[#allocation6 + $0x1e4] ss:$8 sps:$4 sm:$0xff]  }
 0x388   :  { %6617 = vmatprep.subr.bf16.mxu1 %v8257_v45  ;;  %v8321_v45 = vcombine.high %v644_v39, %v648_v42  ;;  %v8988_v39 = vld [vmem:[#allocation6 + $0x1e0] ss:$8 sps:$4 sm:$0xff]  }
 0x389   :  { %7592 = vmatpush1.bf16.msra.mxu0 %v8940_v52  ;;  %v8964_v52 = vld [vmem:[#allocation6 + $0x160] ss:$8 sps:$4 sm:$0xff]  }
 0x38a   :  { %7593 = vmatprep.subr.bf16.mxu0 %v8945_v46  ;;  %v8969_v46 = vld [vmem:[#allocation6 + $0x174] ss:$8 sps:$4 sm:$0xff]  }
 0x38b   :  { %6618 = vmatpush1.bf16.msra.mxu1 %v8256_v51  ;;  %v8329_v51 = vcombine.high %v652_v48, %v656_v49  ;;  %v8991_v49 = vld [vmem:[#allocation6 + $0x1f0] ss:$8 sps:$4 sm:$0xff]  }
 0x38c   :  { %6628 = vmatprep.subr.bf16.mxu1 %v8265_v53  ;;  %v660_v53 = vld [vmem:[#allocation2 + $0x1258] sm:$0xff] }
 0x38d   :  { %7594 = vmatpush1.bf16.msra.mxu0 %v8943_v36  ;;  %v8972_v36 = vld [vmem:[#allocation6 + $0x184] ss:$8 sps:$4 sm:$0xff]  }
 0x38e   :  { %7604 = vmatprep.subr.bf16.mxu0 %v8948_v47  ;;  %6620 = vmatmul.mubr.bf16.vlgmr.msra.gmra.mrb[8].mxu1 %v9343_v55  ;;  %v8952_v55 = vld [vmem:[#allocation6 + $0x120] ss:$8 sps:$4 sm:$0xff]   ;;  %v664_v47 = vld [vmem:[#allocation2 + $0x1278] sm:$0xff] }
 0x38f   :  { %6629 = vmatpush1.bf16.msra.mxu1 %v8264_v57  ;;  %6660 = vmatprep.mubr.bf16.mxu1 %v9346_v61  ;;  %v632_v61 = vld [vmem:[#allocation2 + $0x1178] sm:$0xff]  ;;  %v8337_v56 = vcombine.high %v660_v53, %v664_v47 }
 0x390   :  { %7596 = vmatmul.mubr.bf16.vlgmr.msra.gmra.mrb[8].mxu0 %v6775_v60  ;;  %6630 = vmatprep.subr.bf16.mxu1 %v8273_v62  ;;  %v8305_v21 = vcombine.high %v628_v18, %v632_v61  ;;  %v8304_v29 = vcombine.low %v628_v18, %v632_v61  ;;  %v8975_v57 = vld [vmem:[#allocation6 + $0x194] ss:$8 sps:$4 sm:$0xff]   ;;  %v8336_v60 = vcombine.low %v660_v53, %v664_v47  ;;  %v8973_v62 = vld [vmem:[#allocation6 + $0x190] ss:$8 sps:$4 sm:$0xff]  }
 0x391   :  { %7605 = vmatpush1.bf16.msra.mxu0 %v8946_v59  ;;  %7636 = vmatprep.mubr.bf16.mxu0 %v6778_v3  ;;  %v672_v59 = vld [vmem:[#allocation2 + $0x12b8] sm:$0xff] }
 0x392   :  { %7606 = vmatprep.subr.bf16.mxu0 %v8951_v28  ;;  %v8345_v28 = vcombine.high %v668_v58, %v672_v59  ;;  %v680_v3 = vld [vmem:[#allocation2 + $0x12f8] sm:$0xff] }
 0x393   :  { %6631 = vmatpush1.bf16.msra.mxu1 %v8272_v2  ;;  %v8344_v2 = vcombine.low %v668_v58, %v672_v59  ;;  %v8987_v18 = vld [vmem:[#allocation6 + $0x1d4] ss:$8 sps:$4 sm:$0xff]  }
 0x394   :  { %6632 = vmatprep.subr.bf16.mxu1 %v8281_v8  ;;  %v8353_v8 = vcombine.high %v676_v6, %v680_v3  ;;  %v700_v61 = vld [vmem:[#allocation2 + $0x1398] sm:$0xff] }
 0x395   :  { %7607 = vmatpush1.bf16.msra.mxu0 %v8949_v4  ;;  %v8976_v4 = vld [vmem:[#allocation6 + $0x1a0] ss:$8 sps:$4 sm:$0xff]   ;;  %v8999_v58 = vld [vmem:[#allocation6 + $0x214] ss:$8 sps:$4 sm:$0xff]  }
 0x396   :  { %7608 = vmatprep.subr.bf16.mxu0 %v8954_v32  ;;  %v8981_v32 = vld [vmem:[#allocation6 + $0x1b4] ss:$8 sps:$4 sm:$0xff]  }
 0x397   :  { %6633 = vmatpush1.bf16.msra.mxu1 %v8280_v10  ;;  %v8352_v10 = vcombine.low %v676_v6, %v680_v3  ;;  %v9002_v6 = vld [vmem:[#allocation6 + $0x224] ss:$8 sps:$4 sm:$0xff]  }
 0x398   :  { %6634 = vmatprep.subr.bf16.mxu1 %v8289_v12  ;;  %v8361_v12 = vcombine.high %v684_v41, %v688_v9 }
 0x399   :  { %7609 = vmatpush1.bf16.msra.mxu0 %v8952_v55  ;;  %v8979_v55 = vld [vmem:[#allocation6 + $0x1b0] ss:$8 sps:$4 sm:$0xff]  }
 0x39a   :  { %7610 = vmatprep.subr.bf16.mxu0 %v8957_v13  ;;  %v8984_v13 = vld [vmem:[#allocation6 + $0x1c4] ss:$8 sps:$4 sm:$0xff]  }
 0x39b   :  { %6635 = vmatpush1.bf16.msra.mxu1 %v8288_v14  ;;  %v981_v14 = vsub.s32 2, %v9280_v43 }
 0x39c   :  { %6636 = vmatprep.subr.bf16.mxu1 %v8297_v5  ;;  %v8982_v5 = vld [vmem:[#allocation6 + $0x1c0] ss:$8 sps:$4 sm:$0xff]  }
 0x39d   :  { %7611 = vmatpush1.bf16.msra.mxu0 %v8955_v15  ;;  %v8360_v15 = vcombine.low %v684_v41, %v688_v9 }
 0x39e   :  { %7612 = vmatprep.subr.bf16.mxu0 %v8960_v17  ;;  %v8369_v17 = vcombine.high %v692_v38, %v696_v63 }
 0x39f   :  { %6637 = vmatpush1.bf16.msra.mxu1 %v8296_v19  ;;  %v704_v19 = vld [vmem:[#allocation2 + $0x13b8] sm:$0xff] }
 0x3a0   :  { %6638 = vmatprep.subr.bf16.mxu1 %v8305_v21  ;;  %v8368_v21 = vcombine.low %v692_v38, %v696_v63  ;;  %v8377_v26 = vcombine.high %v700_v61, %v704_v19  ;;  %v9006_v63 = vld [vmem:[#allocation6 + $0x240] ss:$8 sps:$4 sm:$0xff]  }
 0x3a1   :  { %7613 = vmatpush1.bf16.msra.mxu0 %v8958_v20  ;;  %v982_v20 = vrot.slane %v9441_v24, %v981_v14  ;;  %v764_v14 = vld [vmem:[#allocation2 + $0x1598] sm:$0xff] }
 0x3a2   :  { %7614 = vmatprep.subr.bf16.mxu0 %v8963_v22  ;;  %v8985_v22 = vld [vmem:[#allocation6 + $0x1d0] ss:$8 sps:$4 sm:$0xff]  }
 0x3a3   :  { %6639 = vmatpush1.bf16.msra.mxu1 %v8304_v29  ;;  %v708_v29 = vld [vmem:[#allocation2 + $0x13d8] sm:$0xff] }
 0x3a4   :  { %6640 = vmatprep.subr.bf16.mxu1 %v8313_v35  ;;  %v8775_v35 = vadd.f32 %v9436_v11, %v982_v20  ;;  %v724_v11 = vld [vmem:[#allocation2 + $0x1458] sm:$0xff] }
 0x3a5   :  { %7615 = vmatpush1.bf16.msra.mxu0 %v8961_v33  ;;  %v712_v33 = vld [vmem:[#allocation2 + $0x13f8] sm:$0xff] }
 0x3a6   :  { %7616 = vmatprep.subr.bf16.mxu0 %v8966_v37  ;;  %v8376_v37 = vcombine.low %v700_v61, %v704_v19  ;;  %v8385_v42 = vcombine.high %v708_v29, %v712_v33  ;;  %vm6753_vm3 = vcmp.ge.f32.partialorder %v8775_v35, 0.0  ;;  %v8384_v48 = vcombine.low %v708_v29, %v712_v33  ;;  %v9009_v61 = vld [vmem:[#allocation6 + $0x250] ss:$8 sps:$4 sm:$0xff]  }
 0x3a7   :  { %6641 = vmatpush1.bf16.msra.mxu1 %v8312_v44  ;;  %v8993_v44 = vld [vmem:[#allocation6 + $0x1f4] ss:$8 sps:$4 sm:$0xff]  }
 0x3a8   :  { %6642 = vmatprep.subr.bf16.mxu1 %v8321_v45  ;;  %v720_v45 = vld [vmem:[#allocation2 + $0x1438] sm:$0xff] }
 0x3a9   :  { %7617 = vmatpush1.bf16.msra.mxu0 %v8964_v52  ;;  %v716_v52 = vld [vmem:[#allocation2 + $0x1418] sm:$0xff] }
 0x3aa   :  { %7618 = vmatprep.subr.bf16.mxu0 %v8969_v46  ;;  %v6761_v46 = vmul.f32 0.01, %v8775_v35  ;;  %v8392_v53 = vcombine.low %v716_v52, %v720_v45  ;;  %v772_v19 = vld [vmem:[#allocation2 + $0x15d8] sm:$0xff] }
 0x3ab   :  { %6643 = vmatpush1.bf16.msra.mxu1 %v8320_v50  ;;  %v8393_v50 = vcombine.high %v716_v52, %v720_v45  ;;  %v776_v20 = vld [vmem:[#allocation2 + $0x15f8] sm:$0xff]  ;;  %v9020_v45 = vld [vmem:[#allocation6 + $0x284] ss:$8 sps:$4 sm:$0xff]  }
 0x3ac   :  { %6644 = vmatprep.subr.bf16.mxu1 %v8329_v51  ;;  %v8996_v51 = vld [vmem:[#allocation6 + $0x204] ss:$8 sps:$4 sm:$0xff]   ;;  %v780_v29 = vld [vmem:[#allocation2 + $0x1618] sm:$0xff] }
 0x3ad   :  { %7619 = vmatpush1.bf16.msra.mxu0 %v8967_v31  ;;  %v728_v31 = vld [vmem:[#allocation2 + $0x1478] sm:$0xff] }
 0x3ae   :  { %7620 = vmatprep.subr.bf16.mxu0 %v8972_v36  ;;  %v6769_v36 = vsel %vm6753_vm3, %v8775_v35, %v6761_v46  ;;  %v8401_v47 = vcombine.high %v724_v11, %v728_v31  ;;  %v8400_v59 = vcombine.low %v724_v11, %v728_v31  ;;  %v784_v33 = vld [vmem:[#allocation2 + $0x1638] sm:$0xff] }
 0x3af   :  { %6645 = vmatpush1.bf16.msra.mxu1 %v8328_v54  ;;  %v8994_v54 = vld [vmem:[#allocation6 + $0x200] ss:$8 sps:$4 sm:$0xff]   ;;  %v9017_v35 = vld [vmem:[#allocation6 + $0x274] ss:$8 sps:$4 sm:$0xff]   ;;  %v8456_v46 = vcombine.low %v780_v29, %v784_v33 }
 0x3b0   :  { %6646 = vmatprep.subr.bf16.mxu1 %v8337_v56  ;;  %v732_v56 = vld [vmem:[#allocation2 + $0x1498] sm:$0xff] }
 0x3b1   :  { %7621 = vmatpush1.bf16.msra.mxu0 %v8970_v16  ;;  %v6777_v16 = vpack.c.bf16 %v6769_v36, %v6769_v36  ;;  %v792_v52 = vld [vmem:[#allocation2 + $0x1678] sm:$0xff] }
 0x3b2   :  { %7622 = vmatprep.subr.bf16.mxu0 %v8975_v57  ;;  %v736_v57 = vld [vmem:[#allocation2 + $0x14b8] sm:$0xff] }
 0x3b3   :  { %6647 = vmatpush1.bf16.msra.mxu1 %v8336_v60  ;;  %v8409_v60 = vcombine.high %v732_v56, %v736_v57  ;;  %v8408_v3 = vcombine.low %v732_v56, %v736_v57  ;;  %v800_v11 = vld [vmem:[#allocation2 + $0x16b8] sm:$0xff] }
 0x3b4   :  { %6648 = vmatprep.subr.bf16.mxu1 %v8345_v28  ;;  %v740_v28 = vld [vmem:[#allocation2 + $0x14d8] sm:$0xff] }
 0x3b5   :  { %7623 = vmatpush1.bf16.msra.mxu0 %v8973_v62  ;;  %v8997_v62 = vld [vmem:[#allocation6 + $0x210] ss:$8 sps:$4 sm:$0xff]   ;;  %v9023_v31 = vld [vmem:[#allocation6 + $0x294] ss:$8 sps:$4 sm:$0xff]  }
 0x3b6   :  { %7624 = vmatprep.subr.bf16.mxu0 %v8978_v1  ;;  %v744_v1 = vld [vmem:[#allocation2 + $0x14f8] sm:$0xff] }
 0x3b7   :  { %6649 = vmatpush1.bf16.msra.mxu1 %v8344_v2  ;;  %v8417_v2 = vcombine.high %v740_v28, %v744_v1  ;;  %v8416_v41 = vcombine.low %v740_v28, %v744_v1 }
 0x3b8   :  { %6650 = vmatprep.subr.bf16.mxu1 %v8353_v8  ;;  %v752_v8 = vld [vmem:[#allocation2 + $0x1538] sm:$0xff] }
 0x3b9   :  { %7625 = vmatpush1.bf16.msra.mxu0 %v8976_v4  ;;  %v9000_v4 = vld [vmem:[#allocation6 + $0x220] ss:$8 sps:$4 sm:$0xff]  }
 0x3ba   :  { %7626 = vmatprep.subr.bf16.mxu0 %v8981_v32  ;;  %v9005_v32 = vld [vmem:[#allocation6 + $0x234] ss:$8 sps:$4 sm:$0xff]  }
 0x3bb   :  { %6651 = vmatpush1.bf16.msra.mxu1 %v8352_v10  ;;  %v9003_v10 = vld [vmem:[#allocation6 + $0x230] ss:$8 sps:$4 sm:$0xff]  }
 0x3bc   :  { %6652 = vmatprep.subr.bf16.mxu1 %v8361_v12  ;;  %v760_v12 = vld [vmem:[#allocation2 + $0x1578] sm:$0xff] }
 0x3bd   :  { %7627 = vmatpush1.bf16.msra.mxu0 %v8979_v55  ;;  %v756_v55 = vld [vmem:[#allocation2 + $0x1558] sm:$0xff] }
 0x3be   :  { %7628 = vmatprep.subr.bf16.mxu0 %v8984_v13  ;;  %v8433_v38 = vcombine.high %v756_v55, %v760_v12 }
 0x3bf   :  { %6653 = vmatpush1.bf16.msra.mxu1 %v8360_v15  ;;  %v768_v15 = vld [vmem:[#allocation2 + $0x15b8] sm:$0xff] }
 0x3c0   :  { %6654 = vmatprep.subr.bf16.mxu1 %v8369_v17  ;;  %v8432_v17 = vcombine.low %v756_v55, %v760_v12 }
 0x3c1   :  { %7629 = vmatpush1.bf16.msra.mxu0 %v8982_v5  ;;  %v9011_v5 = vld [vmem:[#allocation6 + $0x254] ss:$8 sps:$4 sm:$0xff]  }
 0x3c2   :  { %7630 = vmatprep.subr.bf16.mxu0 %v8987_v18  ;;  %v8441_v18 = vcombine.high %v764_v14, %v768_v15 }
 0x3c3   :  { %6655 = vmatpush1.bf16.msra.mxu1 %v8368_v21  ;;  %v9014_v21 = vld [vmem:[#allocation6 + $0x264] ss:$8 sps:$4 sm:$0xff]  }
 0x3c4   :  { %6656 = vmatprep.subr.bf16.mxu1 %v8377_v26  ;;  %v8449_v26 = vcombine.high %v772_v19, %v776_v20 }
 0x3c5   :  { %7631 = vmatpush1.bf16.msra.mxu0 %v8985_v22  ;;  %v8440_v22 = vcombine.low %v764_v14, %v768_v15 }
 0x3c6   :  { %7632 = vmatprep.subr.bf16.mxu0 %v8990_v27  ;;  %v9012_v27 = vld [vmem:[#allocation6 + $0x260] ss:$8 sps:$4 sm:$0xff]  }
 0x3c7   :  { %6657 = vmatpush1.bf16.msra.mxu1 %v8376_v37  ;;  %v8448_v37 = vcombine.low %v772_v19, %v776_v20 }
 0x3c8   :  { %6658 = vmatprep.subr.bf16.mxu1 %v8385_v42  ;;  %v9015_v42 = vld [vmem:[#allocation6 + $0x270] ss:$8 sps:$4 sm:$0xff]  }
 0x3c9   :  { %7633 = vmatpush1.bf16.msra.mxu0 %v8988_v39  ;;  %v8457_v39 = vcombine.high %v780_v29, %v784_v33 }
 0x3ca   :  { %7634 = vmatprep.subr.bf16.mxu0 %v8993_v44  ;;  %v788_v44 = vld [vmem:[#allocation2 + $0x1658] sm:$0xff] }
 0x3cb   :  { %6659 = vmatpush1.bf16.msra.mxu1 %v8384_v48  ;;  %v8465_v48 = vcombine.high %v788_v44, %v792_v52 }
 0x3cc   :  { %6669 = vmatprep.subr.bf16.mxu1 %v8393_v50  ;;  %v796_v50 = vld [vmem:[#allocation2 + $0x1698] sm:$0xff] }
 0x3cd   :  { %7635 = vmatpush1.bf16.msra.mxu0 %v8991_v49  ;;  %v9018_v49 = vld [vmem:[#allocation6 + $0x280] ss:$8 sps:$4 sm:$0xff]   ;;  %v8473_v36 = vcombine.high %v796_v50, %v800_v11  ;;  %v8472_v56 = vcombine.low %v796_v50, %v800_v11 }
 0x3ce   :  { %7645 = vmatprep.subr.bf16.mxu0 %v8996_v51  ;;  %6661 = vmatmul.mubr.bf16.vlgmr.msra.gmra.mrb[8].mxu1 %v9354_v23  ;;  %v748_v23 = vld [vmem:[#allocation2 + $0x1518] sm:$0xff]  ;;  %v8464_v51 = vcombine.low %v788_v44, %v792_v52 }
 0x3cf   :  { %6670 = vmatpush1.bf16.msra.mxu1 %v8392_v53  ;;  %6701 = vmatprep.mubr.bf16.mxu1 %v9358_v30  ;;  %v8425_v9 = vcombine.high %v748_v23, %v752_v8  ;;  %v9008_v30 = vld [vmem:[#allocation6 + $0x244] ss:$8 sps:$4 sm:$0xff]   ;;  %v8424_v13 = vcombine.low %v748_v23, %v752_v8  ;;  %v9021_v53 = vld [vmem:[#allocation6 + $0x290] ss:$8 sps:$4 sm:$0xff]  }
 0x3d0   :  { %7637 = vmatmul.mubr.bf16.vlgmr.msra.gmra.mrb[8].mxu0 %v6777_v16  ;;  %6671 = vmatprep.subr.bf16.mxu1 %v8401_v47  ;;  %v804_v47 = vld [vmem:[#allocation2 + $0x16d8] sm:$0xff]  ;;  %v9026_v16 = vld [vmem:[#allocation6 + $0x2a4] ss:$8 sps:$4 sm:$0xff]  }
 0x3d1   :  { %7646 = vmatpush1.bf16.msra.mxu0 %v8994_v54  ;;  %v808_v54 = vld [vmem:[#allocation2 + $0x16f8] sm:$0xff] }
 0x3d2   :  { %7647 = vmatprep.subr.bf16.mxu0 %v8999_v58  ;;  %v8481_v57 = vcombine.high %v804_v47, %v808_v54  ;;  %v9024_v58 = vld [vmem:[#allocation6 + $0x2a0] ss:$8 sps:$4 sm:$0xff]   ;;  %v8480_v28 = vcombine.low %v804_v47, %v808_v54  ;;  %v868_v44 = vld [vmem:[#allocation2 + $0x18d8] sm:$0xff] }
 0x3d3   :  { %6672 = vmatpush1.bf16.msra.mxu1 %v8400_v59  ;;  %v812_v59 = vld [vmem:[#allocation2 + $0x1718] sm:$0xff] }
 0x3d4   :  { %6673 = vmatprep.subr.bf16.mxu1 %v8409_v60  ;;  %v816_v60 = vld [vmem:[#allocation2 + $0x1738] sm:$0xff] }
 0x3d5   :  { %7648 = vmatpush1.bf16.msra.mxu0 %v8997_v62  ;;  %v9029_v62 = vld [vmem:[#allocation6 + $0x2b4] ss:$8 sps:$4 sm:$0xff]   ;;  %v8489_v1 = vcombine.high %v812_v59, %v816_v60  ;;  %v8488_v23 = vcombine.low %v812_v59, %v816_v60 }
 0x3d6   :  { %7649 = vmatprep.subr.bf16.mxu0 %v9002_v6  ;;  %v9027_v6 = vld [vmem:[#allocation6 + $0x2b0] ss:$8 sps:$4 sm:$0xff]  }
 0x3d7   :  { %6674 = vmatpush1.bf16.msra.mxu1 %v8408_v3  ;;  %v820_v3 = vld [vmem:[#allocation2 + $0x1758] sm:$0xff] }
 0x3d8   :  { %6675 = vmatprep.subr.bf16.mxu1 %v8417_v2  ;;  %v824_v2 = vld [vmem:[#allocation2 + $0x1778] sm:$0xff] }
 0x3d9   :  { %7650 = vmatpush1.bf16.msra.mxu0 %v9000_v4  ;;  %v9032_v4 = vld [vmem:[#allocation6 + $0x2c4] ss:$8 sps:$4 sm:$0xff]   ;;  %v8497_v8 = vcombine.high %v820_v3, %v824_v2  ;;  %v8496_v55 = vcombine.low %v820_v3, %v824_v2  ;;  %v872_v52 = vld [vmem:[#allocation2 + $0x18f8] sm:$0xff] }
 0x3da   :  { %7651 = vmatprep.subr.bf16.mxu0 %v9005_v32  ;;  %v9030_v32 = vld [vmem:[#allocation6 + $0x2c0] ss:$8 sps:$4 sm:$0xff]   ;;  %v8544_v50 = vcombine.low %v868_v44, %v872_v52  ;;  %v892_v47 = vld [vmem:[#allocation2 + $0x1998] sm:$0xff] }
 0x3db   :  { %6676 = vmatpush1.bf16.msra.mxu1 %v8416_v41  ;;  %v828_v41 = vld [vmem:[#allocation2 + $0x1798] sm:$0xff] }
 0x3dc   :  { %6677 = vmatprep.subr.bf16.mxu1 %v8425_v9  ;;  %v832_v9 = vld [vmem:[#allocation2 + $0x17b8] sm:$0xff] }
 0x3dd   :  { %7652 = vmatpush1.bf16.msra.mxu0 %v9003_v10  ;;  %v9035_v10 = vld [vmem:[#allocation6 + $0x2d4] ss:$8 sps:$4 sm:$0xff]   ;;  %v8505_v12 = vcombine.high %v828_v41, %v832_v9  ;;  %v8504_v14 = vcombine.low %v828_v41, %v832_v9 }
 0x3de   :  { %7653 = vmatprep.subr.bf16.mxu0 %v9008_v30  ;;  %v9033_v30 = vld [vmem:[#allocation6 + $0x2d0] ss:$8 sps:$4 sm:$0xff]  }
 0x3df   :  { %6678 = vmatpush1.bf16.msra.mxu1 %v8424_v13  ;;  %v836_v13 = vld [vmem:[#allocation2 + $0x17d8] sm:$0xff] }
 0x3e0   :  { %6679 = vmatprep.subr.bf16.mxu1 %v8433_v38  ;;  %v840_v38 = vld [vmem:[#allocation2 + $0x17f8] sm:$0xff] }
 0x3e1   :  { %7654 = vmatpush1.bf16.msra.mxu0 %v9006_v63  ;;  %v9038_v63 = vld [vmem:[#allocation6 + $0x2e4] ss:$8 sps:$4 sm:$0xff]   ;;  %v8513_v15 = vcombine.high %v836_v13, %v840_v38  ;;  %v8512_v19 = vcombine.low %v836_v13, %v840_v38  ;;  %v896_v54 = vld [vmem:[#allocation2 + $0x19b8] sm:$0xff] }
 0x3e2   :  { %7655 = vmatprep.subr.bf16.mxu0 %v9011_v5  ;;  %v9036_v5 = vld [vmem:[#allocation6 + $0x2e0] ss:$8 sps:$4 sm:$0xff]   ;;  %v900_v59 = vld [vmem:[#allocation2 + $0x19d8] sm:$0xff] }
 0x3e3   :  { %6680 = vmatpush1.bf16.msra.mxu1 %v8432_v17  ;;  %v844_v17 = vld [vmem:[#allocation2 + $0x1818] sm:$0xff] }
 0x3e4   :  { %6681 = vmatprep.subr.bf16.mxu1 %v8441_v18  ;;  %v848_v18 = vld [vmem:[#allocation2 + $0x1838] sm:$0xff] }
 0x3e5   :  { %7656 = vmatpush1.bf16.msra.mxu0 %v9009_v61  ;;  %v9041_v61 = vld [vmem:[#allocation6 + $0x2f4] ss:$8 sps:$4 sm:$0xff]   ;;  %v8521_v20 = vcombine.high %v844_v17, %v848_v18  ;;  %v8520_v29 = vcombine.low %v844_v17, %v848_v18 }
 0x3e6   :  { %7657 = vmatprep.subr.bf16.mxu0 %v9014_v21  ;;  %v9039_v21 = vld [vmem:[#allocation6 + $0x2f0] ss:$8 sps:$4 sm:$0xff]  }
 0x3e7   :  { %6682 = vmatpush1.bf16.msra.mxu1 %v8440_v22  ;;  %v852_v22 = vld [vmem:[#allocation2 + $0x1858] sm:$0xff] }
 0x3e8   :  { %6683 = vmatprep.subr.bf16.mxu1 %v8449_v26  ;;  %v856_v26 = vld [vmem:[#allocation2 + $0x1878] sm:$0xff] }
 0x3e9   :  { %7658 = vmatpush1.bf16.msra.mxu0 %v9012_v27  ;;  %v9044_v27 = vld [vmem:[#allocation6 + $0x304] ss:$8 sps:$4 sm:$0xff]   ;;  %v8529_v33 = vcombine.high %v852_v22, %v856_v26  ;;  %v904_v60 = vld [vmem:[#allocation2 + $0x19f8] sm:$0xff] }
 0x3ea   :  { %7659 = vmatprep.subr.bf16.mxu0 %v9017_v35  ;;  %v860_v35 = vld [vmem:[#allocation2 + $0x1898] sm:$0xff] }
 0x3eb   :  { %6684 = vmatpush1.bf16.msra.mxu1 %v8448_v37  ;;  %v864_v37 = vld [vmem:[#allocation2 + $0x18b8] sm:$0xff] }
 0x3ec   :  { %6685 = vmatprep.subr.bf16.mxu1 %v8457_v39  ;;  %v8528_v39 = vcombine.low %v852_v22, %v856_v26  ;;  %v912_v41 = vld [vmem:[#allocation2 + $0x1a38] sm:$0xff] }
 0x3ed   :  { %7660 = vmatpush1.bf16.msra.mxu0 %v9015_v42  ;;  %v8537_v42 = vcombine.high %v860_v35, %v864_v37  ;;  %v916_v13 = vld [vmem:[#allocation2 + $0x1a58] sm:$0xff] }
 0x3ee   :  { %7661 = vmatprep.subr.bf16.mxu0 %v9020_v45  ;;  %v8536_v45 = vcombine.low %v860_v35, %v864_v37  ;;  %v920_v38 = vld [vmem:[#allocation2 + $0x1a78] sm:$0xff] }
 0x3ef   :  { %6686 = vmatpush1.bf16.msra.mxu1 %v8456_v46  ;;  %v8545_v46 = vcombine.high %v868_v44, %v872_v52  ;;  %v8593_v17 = vcombine.high %v916_v13, %v920_v38  ;;  %v924_v18 = vld [vmem:[#allocation2 + $0x1a98] sm:$0xff]  ;;  %v9056_v52 = vld [vmem:[#allocation6 + $0x344] ss:$8 sps:$4 sm:$0xff]  }
 0x3f0   :  { %6687 = vmatprep.subr.bf16.mxu1 %v8465_v48  ;;  %v876_v48 = vld [vmem:[#allocation2 + $0x1918] sm:$0xff] }
 0x3f1   :  { %7662 = vmatpush1.bf16.msra.mxu0 %v9018_v49  ;;  %v880_v49 = vld [vmem:[#allocation2 + $0x1938] sm:$0xff] }
 0x3f2   :  { %7663 = vmatprep.subr.bf16.mxu0 %v9023_v31  ;;  %v8553_v11 = vcombine.high %v876_v48, %v880_v49  ;;  %v884_v31 = vld [vmem:[#allocation2 + $0x1958] sm:$0xff] }
 0x3f3   :  { %6688 = vmatpush1.bf16.msra.mxu1 %v8464_v51  ;;  %v8552_v51 = vcombine.low %v876_v48, %v880_v49  ;;  %v932_v26 = vld [vmem:[#allocation2 + $0x1ad8] sm:$0xff] }
 0x3f4   :  { %6689 = vmatprep.subr.bf16.mxu1 %v8473_v36  ;;  %v993_v36 = vsub.s32 5, %v9280_v43  ;;  %v9051_v44 = vld [vmem:[#allocation6 + $0x330] ss:$8 sps:$4 sm:$0xff]  }
 0x3f5   :  { %7664 = vmatpush1.bf16.msra.mxu0 %v9021_v53  ;;  %v948_v48 = vld [vmem:[#allocation2 + $0x1b58] sm:$0xff] }
 0x3f6   :  { %7665 = vmatprep.subr.bf16.mxu0 %v9026_v16  ;;  %v952_v49 = vld [vmem:[#allocation2 + $0x1b78] sm:$0xff] }
 0x3f7   :  { %6690 = vmatpush1.bf16.msra.mxu1 %v8472_v56 }
 0x3f8   :  { %6691 = vmatprep.subr.bf16.mxu1 %v8481_v57  ;;  %v994_v57 = vrot.slane %v9441_v24, %v993_v36  ;;  %v9057_v36 = vld [vmem:[#allocation6 + $0x350] ss:$8 sps:$4 sm:$0xff]  }
 0x3f9   :  { %7666 = vmatpush1.bf16.msra.mxu0 %v9024_v58  ;;  %v8569_v58 = vcombine.high %v892_v47, %v896_v54 }
 0x3fa   :  { %7667 = vmatprep.subr.bf16.mxu0 %v9029_v62 }
 0x3fb   :  { %6692 = vmatpush1.bf16.msra.mxu1 %v8480_v28 }
 0x3fc   :  { %6693 = vmatprep.subr.bf16.mxu1 %v8489_v1 }
 0x3fd   :  { %7668 = vmatpush1.bf16.msra.mxu0 %v9027_v6  ;;  %v8568_v6 = vcombine.low %v892_v47, %v896_v54  ;;  %v8624_v47 = vcombine.low %v948_v48, %v952_v49 }
 0x3fe   :  { %7669 = vmatprep.subr.bf16.mxu0 %v9032_v4  ;;  %v8577_v4 = vcombine.high %v900_v59, %v904_v60 }
 0x3ff   :  { %6694 = vmatpush1.bf16.msra.mxu1 %v8488_v23 }
 0x400   :  { %6695 = vmatprep.subr.bf16.mxu1 %v8497_v8 }
 0x401   :  { %7670 = vmatpush1.bf16.msra.mxu0 %v9030_v32  ;;  %v908_v32 = vld [vmem:[#allocation2 + $0x1a18] sm:$0xff] }
 0x402   :  { %7671 = vmatprep.subr.bf16.mxu0 %v9035_v10  ;;  %v8576_v10 = vcombine.low %v900_v59, %v904_v60 }
 0x403   :  { %6696 = vmatpush1.bf16.msra.mxu1 %v8496_v55 }
 0x404   :  { %6697 = vmatprep.subr.bf16.mxu1 %v8505_v12  ;;  %v8585_v12 = vcombine.high %v908_v32, %v912_v41 }
 0x405   :  { %7672 = vmatpush1.bf16.msra.mxu0 %v9033_v30 }
 0x406   :  { %7673 = vmatprep.subr.bf16.mxu0 %v9038_v63  ;;  %v9042_v63 = vld [vmem:[#allocation6 + $0x300] ss:$8 sps:$4 sm:$0xff]  }
 0x407   :  { %6698 = vmatpush1.bf16.msra.mxu1 %v8504_v14 }
 0x408   :  { %6699 = vmatprep.subr.bf16.mxu1 %v8513_v15  ;;  %v9047_v15 = vld [vmem:[#allocation6 + $0x314] ss:$8 sps:$4 sm:$0xff]  }
 0x409   :  { %7674 = vmatpush1.bf16.msra.mxu0 %v9036_v5  ;;  %v8584_v5 = vcombine.low %v908_v32, %v912_v41  ;;  %v9075_v32 = vld [vmem:[#allocation6 + $0x3b0] ss:$8 sps:$4 sm:$0xff]   ;;  %v9080_v41 = vld [vmem:[#allocation6 + $0x3c4] ss:$8 sps:$4 sm:$0xff]  }
 0x40a   :  { %7675 = vmatprep.subr.bf16.mxu0 %v9041_v61  ;;  %v928_v61 = vld [vmem:[#allocation2 + $0x1ab8] sm:$0xff] }
 0x40b   :  { %6700 = vmatpush1.bf16.msra.mxu1 %v8512_v19  ;;  %v9045_v19 = vld [vmem:[#allocation6 + $0x310] ss:$8 sps:$4 sm:$0xff]   ;;  %v8601_v22 = vcombine.high %v924_v18, %v928_v61  ;;  %v8600_v35 = vcombine.low %v924_v18, %v928_v61 }
 0x40c   :  { %6710 = vmatprep.subr.bf16.mxu1 %v8521_v20  ;;  %v9050_v20 = vld [vmem:[#allocation6 + $0x324] ss:$8 sps:$4 sm:$0xff]  }
 0x40d   :  { %7676 = vmatpush1.bf16.msra.mxu0 %v9039_v21  ;;  %v8592_v21 = vcombine.low %v916_v13, %v920_v38  ;;  %v997_v13 = vsub.s32 6, %v9280_v43  ;;  %v1001_v38 = vsub.s32 7, %v9280_v43 }
 0x40e   :  { %7686 = vmatprep.subr.bf16.mxu0 %v9044_v27  ;;  %6702 = vmatmul.mubr.bf16.vlgmr.msra.gmra.mrb[8].mxu1 %v9373_v0  ;;  %v888_v0 = vld [vmem:[#allocation2 + $0x1978] sm:$0xff] }
 0x40f   :  { %6711 = vmatpush1.bf16.msra.mxu1 %v8520_v29  ;;  %6742 = vmatprep.mubr.bf16.mxu1 %v9376_v7  ;;  %v989_v7 = vsub.s32 4, %v9280_v43  ;;  %v8561_v53 = vcombine.high %v884_v31, %v888_v0  ;;  %v8560_v56 = vcombine.low %v884_v31, %v888_v0  ;;  %v936_v27 = vld [vmem:[#allocation2 + $0x1af8] sm:$0xff]  ;;  %v9048_v29 = vld [vmem:[#allocation6 + $0x320] ss:$8 sps:$4 sm:$0xff]   ;;  %v8625_v0 = vcombine.high %v948_v48, %v952_v49 }
 0x410   :  { %6712 = vmatprep.subr.bf16.mxu1 %v8529_v33  ;;  %v9053_v33 = vld [vmem:[#allocation6 + $0x334] ss:$8 sps:$4 sm:$0xff]   ;;  %v8609_v37 = vcombine.high %v932_v26, %v936_v27 }
 0x411   :  { %v990_v16 = vrot.slane %v9441_v24, %v989_v7  ;;  %v960_v7 = vld [vmem:[#allocation2 + $0x1bb8] sm:$0xff] }
 0x413   :  { %6713 = vmatpush1.bf16.msra.mxu1 %v8528_v39  ;;  %v940_v39 = vld [vmem:[#allocation2 + $0x1b18] sm:$0xff] }
 0x414   :  { %6714 = vmatprep.subr.bf16.mxu1 %v8537_v42  ;;  %v944_v42 = vld [vmem:[#allocation2 + $0x1b38] sm:$0xff] }
 0x415   :  { %v8616_v31 = vcombine.low %v940_v39, %v944_v42 }
 0x417   :  { %6715 = vmatpush1.bf16.msra.mxu1 %v8536_v45  ;;  %v8608_v45 = vcombine.low %v932_v26, %v936_v27 }
 0x418   :  { %6716 = vmatprep.subr.bf16.mxu1 %v8545_v46  ;;  %v8617_v46 = vcombine.high %v940_v39, %v944_v42 }
 0x41b   :  { %6717 = vmatpush1.bf16.msra.mxu1 %v8544_v50  ;;  %v9054_v50 = vld [vmem:[#allocation6 + $0x340] ss:$8 sps:$4 sm:$0xff]  }
 0x41c   :  { %6718 = vmatprep.subr.bf16.mxu1 %v8553_v11  ;;  %v9059_v11 = vld [vmem:[#allocation6 + $0x354] ss:$8 sps:$4 sm:$0xff]  }
 0x41f   :  { %6719 = vmatpush1.bf16.msra.mxu1 %v8552_v51  ;;  %v956_v51 = vld [vmem:[#allocation2 + $0x1b98] sm:$0xff] }
 0x420   :  { %6720 = vmatprep.subr.bf16.mxu1 %v8561_v53  ;;  %v9062_v53 = vld [vmem:[#allocation6 + $0x364] ss:$8 sps:$4 sm:$0xff]   ;;  %v8633_v54 = vcombine.high %v956_v51, %v960_v7  ;;  %v8632_v59 = vcombine.low %v956_v51, %v960_v7 }
 0x423   :  { %v6457_v62 = vpop.f32.mrb[4].mxu0  ;;  %6721 = vmatpush1.bf16.msra.mxu1 %v8560_v56  ;;  %v968_v56 = vld [vmem:[#allocation2 + $0x1bf8] sm:$0xff] }
 0x424   :  { %v8777_v28 = vadd.f32 %v6457_v62, %v990_v16  ;;  %v6459_v1 = vpop.f32.mrb[5].mxu0  ;;  %6722 = vmatprep.subr.bf16.mxu1 %v8569_v58  ;;  %v964_v16 = vld [vmem:[#allocation2 + $0x1bd8] sm:$0xff] }
 0x425   :  { %v8778_v3 = vadd.f32 %v6459_v1, %v994_v57  ;;  %v6461_v2 = vpop.f32.mrb[6].mxu0  ;;  %v9060_v57 = vld [vmem:[#allocation6 + $0x360] ss:$8 sps:$4 sm:$0xff]   ;;  %v9065_v58 = vld [vmem:[#allocation6 + $0x374] ss:$8 sps:$4 sm:$0xff]   ;;  %v8641_v60 = vcombine.high %v964_v16, %v968_v56  ;;  %v8640_v1 = vcombine.low %v964_v16, %v968_v56 }
 0x426   :  { %vm6755_vm4 = vcmp.ge.f32.partialorder %v8777_v28, 0.0  ;;  %v6763_v23 = vmul.f32 0.01, %v8777_v28  ;;  %v6462_v8 = vpop.f32.mrb[7].mxu0  ;;  %v9063_v62 = vld [vmem:[#allocation6 + $0x370] ss:$8 sps:$4 sm:$0xff]  }
 0x427   :  { %vm6756_vm5 = vcmp.ge.f32.partialorder %v8778_v3, 0.0  ;;  %v6764_v24 = vmul.f32 0.01, %v8778_v3  ;;  %6723 = vmatpush1.bf16.msra.mxu1 %v8568_v6  ;;  %v9066_v6 = vld [vmem:[#allocation6 + $0x380] ss:$8 sps:$4 sm:$0xff]  }
 0x428   :  { %v6771_v9 = vsel %vm6755_vm4, %v8777_v28, %v6763_v23  ;;  %6724 = vmatprep.subr.bf16.mxu1 %v8577_v4  ;;  %v9068_v28 = vld [vmem:[#allocation6 + $0x384] ss:$8 sps:$4 sm:$0xff]   ;;  %v9069_v2 = vld [vmem:[#allocation6 + $0x390] ss:$8 sps:$4 sm:$0xff]   ;;  %v9072_v23 = vld [vmem:[#allocation6 + $0x3a0] ss:$8 sps:$4 sm:$0xff]  }
 0x429   :  { %v6772_v55 = vsel %vm6756_vm5, %v8778_v3, %v6764_v24  ;;  %v6779_v14 = vpack.c.bf16 %v6771_v9, %v6771_v9  ;;  %v9071_v3 = vld [vmem:[#allocation6 + $0x394] ss:$8 sps:$4 sm:$0xff]   ;;  %v9074_v4 = vld [vmem:[#allocation6 + $0x3a4] ss:$8 sps:$4 sm:$0xff]   ;;  %v9078_v24 = vld [vmem:[#allocation6 + $0x3c0] ss:$8 sps:$4 sm:$0xff]  }
 0x42a   :  { %v6780_v30 = vpack.c.bf16 %v6772_v55, %v6772_v55  ;;  %v9077_v8 = vld [vmem:[#allocation6 + $0x3b4] ss:$8 sps:$4 sm:$0xff]   ;;  %v9086_v55 = vld [vmem:[#allocation6 + $0x3e4] ss:$8 sps:$4 sm:$0xff]  }
 0x42b   :  { %6725 = vmatpush1.bf16.msra.mxu1 %v8576_v10  ;;  %v9083_v9 = vld [vmem:[#allocation6 + $0x3d4] ss:$8 sps:$4 sm:$0xff]   ;;  %v9081_v10 = vld [vmem:[#allocation6 + $0x3d0] ss:$8 sps:$4 sm:$0xff]  }
 0x42c   :  { %7677 = vmatprep.mubr.bf16.mxu0 %v6780_v30  ;;  %6726 = vmatprep.subr.bf16.mxu1 %v8585_v12  ;;  %v9089_v12 = vld [vmem:[#allocation6 + $0x3f4] ss:$8 sps:$4 sm:$0xff]   ;;  %v9087_v30 = vld [vmem:[#allocation6 + $0x3f0] ss:$8 sps:$4 sm:$0xff]  }
 0x42d   :  { %7678 = vmatmul.mubr.bf16.vlgmr.msra.gmra.mrb[8].mxu0 %v6779_v14 }
 0x42e   :  { %7687 = vmatpush1.bf16.msra.mxu0 %v9042_v63  ;;  %v9091_v63 = vld [vmem:[#allocation4] sm:$0xff] }
 0x42f   :  { %7688 = vmatprep.subr.bf16.mxu0 %v9047_v15  ;;  %6727 = vmatpush1.bf16.msra.mxu1 %v8584_v5  ;;  %v998_v14 = vrot.slane %v9091_v63, %v997_v13  ;;  %v1002_v15 = vrot.slane %v9091_v63, %v1001_v38 }
 0x430   :  { %6728 = vmatprep.subr.bf16.mxu1 %v8593_v17 }
 0x432   :  { %7689 = vmatpush1.bf16.msra.mxu0 %v9045_v19 }
 0x433   :  { %7690 = vmatprep.subr.bf16.mxu0 %v9050_v20  ;;  %6729 = vmatpush1.bf16.msra.mxu1 %v8592_v21 }
 0x434   :  { %6730 = vmatprep.subr.bf16.mxu1 %v8601_v22 }
 0x436   :  { %7691 = vmatpush1.bf16.msra.mxu0 %v9048_v29 }
 0x437   :  { %7692 = vmatprep.subr.bf16.mxu0 %v9053_v33  ;;  %6731 = vmatpush1.bf16.msra.mxu1 %v8600_v35  ;;  %v6911_v35 = vld [vmem:[#allocation7] sm:$0x3] }
 0x438   :  { %6732 = vmatprep.subr.bf16.mxu1 %v8609_v37  ;;  %v6916_v37 = vrot.slane %v6911_v35, %v973_v25  ;;  %v6920_v39 = vrot.slane %v6911_v35, %v977_v34 }
 0x43a   :  { %7693 = vmatpush1.bf16.msra.mxu0 %v9051_v44 }
 0x43b   :  { %7694 = vmatprep.subr.bf16.mxu0 %v9056_v52  ;;  %6733 = vmatpush1.bf16.msra.mxu1 %v8608_v45 }
 0x43c   :  { %6734 = vmatprep.subr.bf16.mxu1 %v8617_v46 }
 0x43e   :  { %7695 = vmatpush1.bf16.msra.mxu0 %v9054_v50 }
 0x43f   :  { %7696 = vmatprep.subr.bf16.mxu0 %v9059_v11  ;;  %6735 = vmatpush1.bf16.msra.mxu1 %v8616_v31 }
 0x440   :  { %6736 = vmatprep.subr.bf16.mxu1 %v8625_v0 }
 0x442   :  { %7697 = vmatpush1.bf16.msra.mxu0 %v9057_v36 }
 0x443   :  { %7698 = vmatprep.subr.bf16.mxu0 %v9062_v53  ;;  %6737 = vmatpush1.bf16.msra.mxu1 %v8624_v47 }
 0x444   :  { %6738 = vmatprep.subr.bf16.mxu1 %v8633_v54 }
 0x446   :  { %7699 = vmatpush1.bf16.msra.mxu0 %v9060_v57 }
 0x447   :  { %7700 = vmatprep.subr.bf16.mxu0 %v9065_v58  ;;  %6739 = vmatpush1.bf16.msra.mxu1 %v8632_v59 }
 0x448   :  { %6740 = vmatprep.subr.bf16.mxu1 %v8641_v60 }
 0x44a   :  { %7701 = vmatpush1.bf16.msra.mxu0 %v9063_v62 }
 0x44b   :  { %7702 = vmatprep.subr.bf16.mxu0 %v9068_v28  ;;  %6741 = vmatpush1.bf16.msra.mxu1 %v8640_v1 }
 0x44e   :  { %7703 = vmatpush1.bf16.msra.mxu0 %v9066_v6  ;;  %6743 = vmatmul.mubr.bf16.vlgmr.msra.gmra.mrb[8].mxu1 %v9384_v40  ;;  %v9084_v40 = vld [vmem:[#allocation6 + $0x3e0] ss:$8 sps:$4 sm:$0xff]  }
 0x44f   :  { %7704 = vmatprep.subr.bf16.mxu0 %v9071_v3 }
 0x452   :  { %7705 = vmatpush1.bf16.msra.mxu0 %v9069_v2 }
 0x453   :  { %7706 = vmatprep.subr.bf16.mxu0 %v9074_v4 }
 0x456   :  { %7707 = vmatpush1.bf16.msra.mxu0 %v9072_v23 }
 0x457   :  { %7708 = vmatprep.subr.bf16.mxu0 %v9077_v8 }
 0x45a   :  { %7709 = vmatpush1.bf16.msra.mxu0 %v9075_v32 }
 0x45b   :  { %7710 = vmatprep.subr.bf16.mxu0 %v9080_v41 }
 0x45e   :  { %7711 = vmatpush1.bf16.msra.mxu0 %v9078_v24 }
 0x45f   :  { %7712 = vmatprep.subr.bf16.mxu0 %v9083_v9 }
 0x462   :  { %7713 = vmatpush1.bf16.msra.mxu0 %v9081_v10 }
 0x463   :  { %7714 = vmatprep.subr.bf16.mxu0 %v9086_v55 }
 0x466   :  { %7715 = vmatpush1.bf16.msra.mxu0 %v9084_v40 }
 0x467   :  { %7716 = vmatprep.subr.bf16.mxu0 %v9089_v12 }
 0x46a   :  { %7717 = vmatpush1.bf16.msra.mxu0 %v9087_v30 }
 0x521   :  { %v6744_v5 = vpop.f32.mrb[8].mxu1 }
 0x522   :  { %v8779_v17 = vadd.f32 %v6744_v5, %v998_v14  ;;  %v6746_v18 = vpop.f32.mrb[9].mxu1 }
 0x523   :  { %v8780_v61 = vadd.f32 %v6746_v18, %v1002_v15  ;;  %v6748_v19 = vpop.f32.mrb[10].mxu1 }
 0x524   :  { %vm6757_vm6 = vcmp.ge.f32.partialorder %v8779_v17, 0.0  ;;  %v6765_v20 = vmul.f32 0.01, %v8779_v17  ;;  %v6749_v21 = vpop.f32.mrb[11].mxu1 }
 0x525   :  { %vm6758_vm7 = vcmp.ge.f32.partialorder %v8780_v61, 0.0  ;;  %v6766_v22 = vmul.f32 0.01, %v8780_v61 }
 0x526   :  { %v6773_v26 = vsel %vm6757_vm6, %v8779_v17, %v6765_v20 }
 0x527   :  { %v6774_v27 = vsel %vm6758_vm7, %v8780_v61, %v6766_v22  ;;  %v6781_v33 = vpack.c.bf16 %v6773_v26, %v6773_v26 }
 0x528   :  { %v6782_v29 = vpack.c.bf16 %v6774_v27, %v6774_v27 }
 0x52a   :  { %7718 = vmatprep.mubr.bf16.mxu0 %v6782_v29 }
 0x52b   :  { %7719 = vmatmul.mubr.bf16.vlgmr.msra.gmra.mrb[8].mxu0 %v6781_v33 }
 0x5fe   :  { %v7720_v42 = vpop.f32.mrb[8].mxu0 }
 0x5ff   :  { %v8781_v44 = vadd.f32 %v7720_v42, %v6916_v37  ;;  %v7722_v52 = vpop.f32.mrb[9].mxu0 }
 0x600   :  { %v8782_v45 = vadd.f32 %v7722_v52, %v6920_v39  ;;  %v7724_v46 = vpop.f32.mrb[10].mxu0 }
 0x601   :  { %v7725_v48 = vpop.f32.mrb[11].mxu0 }
 0x602   :  { %v7729_v49 = vcombine.low %v8781_v44, %v8782_v45 }
 0x604   :  { %8770 = vst.sshfl [vmem:[%s9476_s5] sm:$0x33 pattern:$0x76325410] %v7729_v49 }
 0x605   :  { %7743 = vsyncpa [#allocation3], 1 }
 0x606   :  { %7744 = vsyncpa [#allocation5], 1 }
 0x607   :  { %7745 = vsyncpa [#allocation8], 1 }

</bundles_post_ra>
